<compile_context>
chip_gen: v5e
topology: v5e:2x2
jax: 0.10.0
libtpu: 0.0.40
codegen_flags: <defaults>
</compile_context>

<pallas_src>
import functools

import jax
import jax.numpy as jnp
from jax import lax
from jax.experimental import pallas as pl
from jax.experimental.pallas import tpu as pltpu

LN_EPS = 1e-5  # PyTorch nn.LayerNorm default


def _round_up(x, m):
    return ((x + m - 1) // m) * m


def _tpu_traits():
    """(tensorcores_per_chip, use_bf16_for_mxu) from the attached device kind."""
    try:
        kind = jax.devices()[0].device_kind.lower()
    except Exception:
        return 1, True
    two_tc = ("v7" in kind) or ("7x" in kind)
    use_bf16 = "v5" not in kind   # v5: VPU has no bf16 -> skip cast round-trips
    return (2 if two_tc else 1), use_bf16


def _layernorm(x, gamma, beta):
    # Two-pass (centered) form: numerically safer than E[x^2]-E[x]^2.
    mu = jnp.mean(x, axis=-1, keepdims=True)
    xc = x - mu
    var = jnp.mean(xc * xc, axis=-1, keepdims=True)
    return xc * lax.rsqrt(var + LN_EPS) * gamma + beta


# -----------------------------------------------------------------------------
# Fused GeneratorLayer kernel: one grid step per batch block of size `bb`.
# -----------------------------------------------------------------------------
def generator_layer_kernel(img_ref, ques_ref, w_ref, v_ref, o_ref, *,
                           bb, l_img, l_ques, d_model, num_heads, ffn_dim,
                           col_off, compute_dtype):
    f32 = jnp.float32
    cd = compute_dtype
    D, H, F = d_model, num_heads, ffn_dim
    dh = D // H
    scale = 1.0 / float(dh) ** 0.5
    o_qkv, o_wo, o_w1, o_w2 = col_off

    # ---- weights / vectors: resident in VMEM (constant index_map) -----------
    wslab = w_ref[...]
    wqkv = wslab[0:D, o_qkv:o_qkv + 3 * D]        # (D, 3D)  fused [Wq|Wk|Wv]
    wo = wslab[0:D, o_wo:o_wo + D]                # (D, D)
    w1 = wslab[0:D, o_w1:o_w1 + F]                # (D, F)
    w2 = wslab[0:F, o_w2:o_w2 + D]                # (F, D)

    vec = v_ref[...].astype(f32)                  # (8, 128k) packed vectors
    bqkv = vec[0:1, 0:3 * D]                      # (1, 3D)  fused [bq|bk|bv]
    bo = vec[0:1, 3 * D:4 * D]
    b1 = vec[1:2, 0:F]
    b2 = vec[1:2, F:F + D]
    g1, bt1 = vec[2:3, 0:D], vec[2:3, D:2 * D]
    g2, bt2 = vec[2:3, 2 * D:3 * D], vec[2:3, 3 * D:4 * D]

    # ---- activations: (bb, L, D) block flattened to (bb*L, D) rows -----------
    x_img = img_ref[...].astype(f32).reshape(bb * l_img, D)
    x_ques = ques_ref[...].astype(f32).reshape(bb * l_ques, D)

    def split_heads(x2d, l):
        # (bb*l, D) -> (bb*H, l, dh) via static lane slices + stack (no transpose op).
        parts = [x2d[:, h * dh:(h + 1) * dh].reshape(bb, l, dh) for h in range(H)]
        return jnp.stack(parts, axis=1).reshape(bb * H, l, dh)

    def merge_heads(ctx, l):
        # (bb*H, l, dh) -> (bb*l, D) in concat-head column order.
        c = ctx.reshape(bb, H, l, dh)
        return jnp.concatenate([c[:, h] for h in range(H)], axis=-1).reshape(bb * l, D)

    def attention(q2d, k2d, v2d, residual, lq, lk):
        qh = split_heads(q2d.astype(cd), lq)
        kh = split_heads(k2d.astype(cd), lk)
        vh = split_heads(v2d.astype(cd), lk)
        s = jnp.einsum('gqd,gkd->gqk', qh, kh,
                       preferred_element_type=f32) * scale
        # TODO(synk): self_attn_mask / context_attn_mask are None in this setup;
        # a non-None mask would need a jnp.where(mask, -inf, s) here.
        s = s - jnp.max(s, axis=-1, keepdims=True)
        p = jnp.exp(s)
        p = p * pl.reciprocal(jnp.sum(p, axis=-1, keepdims=True), approx=True)
        ctx = jnp.einsum('gqk,gkd->gqd', p.astype(cd), vh,
                         preferred_element_type=f32)            # (bb*H, lq, dh)
        # concat-heads @ Wo as ONE K=D contraction (no per-head matmuls + reduce)
        out = jnp.dot(merge_heads(ctx, lq).astype(cd), wo,
                      preferred_element_type=f32) + bo
        return _layernorm(residual + out, g1, bt1)

    # ---- self-attention: key = value = query = img ---------------------------
    qkv = jnp.dot(x_img.astype(cd), wqkv, preferred_element_type=f32) + bqkv
    out1 = attention(qkv[:, 0:D], qkv[:, D:2 * D], qkv[:, 2 * D:3 * D],
                     x_img, l_img, l_img)

    # ---- cross-attention: query = out1 (Q-only), key = value = ques (KV-only) -
    q2 = jnp.dot(out1.astype(cd), wqkv[:, 0:D],
                 preferred_element_type=f32) + bqkv[:, 0:D]
    kv2 = jnp.dot(x_ques.astype(cd), wqkv[:, D:3 * D],
                  preferred_element_type=f32) + bqkv[:, D:3 * D]
    out2 = attention(q2, kv2[:, 0:D], kv2[:, D:2 * D], out1, l_img, l_ques)

    # ---- position-wise feed-forward (Conv1d k=1 folded to matmuls) -----------
    h = jnp.maximum(jnp.dot(out2.astype(cd), w1, preferred_element_type=f32) + b1, 0.0)
    y = jnp.dot(h.astype(cd), w2, preferred_element_type=f32) + b2
    out3 = _layernorm(out2 + y, g2, bt2)

    # ---- lane-dense store: (bb, 1, L*D) rows (slices + lane concat) ----------
    x3 = out3.reshape(bb, l_img, D)
    row = jnp.concatenate([x3[:, l:l + 1, :] for l in range(l_img)], axis=-1)
    o_ref[...] = row.astype(o_ref.dtype)


# -----------------------------------------------------------------------------
# Wrapper: pack weights into 2 lane-dense slabs and launch one fused pallas_call.
# -----------------------------------------------------------------------------
def generator_layer(img_in, ques_in, attn_params, ffn_params, num_heads):
    B, L_img, D = img_in.shape
    _, L_ques, _ = ques_in.shape
    wq, bq, wk, bk, wv, bv, wo, bo, g1, bt1 = attn_params
    w1, b1, w2, b2, g2, bt2 = ffn_params
    H = num_heads
    F = w1.shape[1]

    n_tc, use_bf16 = _tpu_traits()
    wdtype = jnp.bfloat16 if use_bf16 else jnp.float32

    # Batch folding: single grid step on single-TC chips (v5e/v6e); >=2 parallel
    # steps on v7x so both TensorCores get work.
    if n_tc >= 2 and B >= 2:
        bb = B // 2 if B % 2 == 0 else 1
    else:
        bb = B
    grid = (B // bb,)

    # NOTE: weights here are stored (in, out); real PyTorch Linear/Conv1d
    # checkpoints are (out, in) and must be transposed when loaded.

    # ---- one lane-dense matmul-weight slab (128-aligned column segments) -----
    seg_widths = [3 * D, D, F, D]                  # Wqkv | Wo | W1 | W2
    col_off, c = [], 0
    for wdt in seg_widths:
        col_off.append(c)
        c += _round_up(wdt, 128)
    rows_p = _round_up(max(D, F), 8)
    cols_p = _round_up(c, 128)
    wslab = jnp.zeros((rows_p, cols_p), wdtype)
    wslab = wslab.at[0:D, col_off[0]:col_off[0] + 3 * D].set(
        jnp.concatenate([wq, wk, wv], axis=1).astype(wdtype))
    wslab = wslab.at[0:D, col_off[1]:col_off[1] + D].set(wo.astype(wdtype))
    wslab = wslab.at[0:D, col_off[2]:col_off[2] + F].set(w1.astype(wdtype))
    wslab = wslab.at[0:F, col_off[3]:col_off[3] + D].set(w2.astype(wdtype))

    # ---- one (8, 128k) f32 slab for all bias / LayerNorm vectors --------------
    vw = _round_up(max(4 * D, F + D), 128)
    vslab = jnp.zeros((8, vw), jnp.float32)
    vslab = vslab.at[0:1, 0:3 * D].set(
        jnp.concatenate([bq, bk, bv], axis=1).astype(jnp.float32))
    vslab = vslab.at[0:1, 3 * D:4 * D].set(bo.astype(jnp.float32))
    vslab = vslab.at[1:2, 0:F].set(b1.astype(jnp.float32))
    vslab = vslab.at[1:2, F:F + D].set(b2.astype(jnp.float32))
    vslab = vslab.at[2:3, 0:D].set(g1.astype(jnp.float32))
    vslab = vslab.at[2:3, D:2 * D].set(bt1.astype(jnp.float32))
    vslab = vslab.at[2:3, 2 * D:3 * D].set(g2.astype(jnp.float32))
    vslab = vslab.at[2:3, 3 * D:4 * D].set(bt2.astype(jnp.float32))

    kernel = functools.partial(
        generator_layer_kernel, bb=bb, l_img=L_img, l_ques=L_ques,
        d_model=D, num_heads=H, ffn_dim=F, col_off=tuple(col_off),
        compute_dtype=wdtype)

    const2 = lambda i: (0, 0)
    out = pl.pallas_call(
        kernel,
        out_shape=jax.ShapeDtypeStruct((B, 1, L_img * D), img_in.dtype),
        grid=grid,
        in_specs=[
            pl.BlockSpec((bb, L_img, D), lambda i: (i, 0, 0)),    # img_in
            pl.BlockSpec((bb, L_ques, D), lambda i: (i, 0, 0)),   # ques_in
            pl.BlockSpec((rows_p, cols_p), const2),               # packed weights
            pl.BlockSpec((8, vw), const2),                        # packed vectors
        ],
        out_specs=pl.BlockSpec((bb, 1, L_img * D), lambda i: (i, 0, 0)),
        compiler_params=pltpu.CompilerParams(
            dimension_semantics=("parallel",)),
    )(img_in, ques_in, wslab, vslab)
    return out.reshape(B, L_img, D)


if __name__ == "__main__":
    B, L_IMG, L_QUES, D_MODEL, NUM_HEADS, FFN_DIM = 2, 16, 8, 32, 8, 64

    key = jax.random.PRNGKey(0)
    ks = jax.random.split(key, 16)

    def init(k, shape, scale=0.1):
        return (scale * jax.random.normal(k, shape)).astype(jnp.float32)

    img_in = init(ks[0], (B, L_IMG, D_MODEL), scale=1.0)
    ques_in = init(ks[1], (B, L_QUES, D_MODEL), scale=1.0)

    # MultiHeadAttention parameters (Linear weights stored as (in, out)).
    attn_params = (
        init(ks[2], (D_MODEL, D_MODEL)), init(ks[3], (1, D_MODEL)),   # Wq, bq
        init(ks[4], (D_MODEL, D_MODEL)), init(ks[5], (1, D_MODEL)),   # Wk, bk
        init(ks[6], (D_MODEL, D_MODEL)), init(ks[7], (1, D_MODEL)),   # Wv, bv
        init(ks[8], (D_MODEL, D_MODEL)), init(ks[9], (1, D_MODEL)),   # Wo, bo
        jnp.ones((1, D_MODEL), jnp.float32),                          # LN gamma
        jnp.zeros((1, D_MODEL), jnp.float32),                         # LN beta
    )

    # PositionalWiseFeedForward parameters (Conv1d k=1 -> matmul weights).
    ffn_params = (
        init(ks[10], (D_MODEL, FFN_DIM)), init(ks[11], (1, FFN_DIM)), # W1, b1
        init(ks[12], (FFN_DIM, D_MODEL)), init(ks[13], (1, D_MODEL)), # W2, b2
        jnp.ones((1, D_MODEL), jnp.float32),                          # LN gamma
        jnp.zeros((1, D_MODEL), jnp.float32),                         # LN beta
    )

    out = generator_layer(img_in, ques_in, attn_params, ffn_params, NUM_HEADS)
    out = jax.block_until_ready(out)
    assert out.shape == (B, L_IMG, D_MODEL)
    assert jnp.all(jnp.isfinite(out))
    print("KERNEL_OK")
</pallas_src>

<mosaic_0001>
module attributes {stable_mosaic.version = 11 : i64} {
  func.func @generator_layer_kernel(%arg0: i32, %arg1: memref<2x16x32xf32, #tpu.memory_space<vmem>>, %arg2: memref<2x8x32xf32, #tpu.memory_space<vmem>>, %arg3: memref<64x512xbf16, #tpu.memory_space<vmem>>, %arg4: memref<8x128xf32, #tpu.memory_space<vmem>>, %arg5: memref<2x1x512xf32, #tpu.memory_space<vmem>>) attributes {dimension_semantics = [#tpu.dimension_semantics<parallel>], iteration_bounds = array<i64: 1>, scalar_prefetch = 0 : i64, scratch_operands = 0 : i64, tpu.core_type = #tpu.core_type<tc>, window_params = [{transform_indices = @transform_0, window_bounds = array<i64: 2, 16, 32>}, {transform_indices = @transform_1, window_bounds = array<i64: 2, 8, 32>}, {pipeline_mode = #tpu.pipeline_mode<synchronous>, transform_indices = @transform_2, window_bounds = array<i64: 64, 512>}, {pipeline_mode = #tpu.pipeline_mode<synchronous>, transform_indices = @transform_3, window_bounds = array<i64: 8, 128>}, {transform_indices = @transform_4, window_bounds = array<i64: 2, 1, 512>}]} {
    %c0 = arith.constant 0 : index
    %c0_0 = arith.constant 0 : index
    %0 = vector.load %arg3[%c0, %c0_0] : memref<64x512xbf16, #tpu.memory_space<vmem>>, vector<64x512xbf16>
    %1 = vector.extract_strided_slice %0 {offsets = [0, 0], sizes = [32, 96], strides = [1, 1]} : vector<64x512xbf16> to vector<32x96xbf16>
    %2 = vector.extract_strided_slice %0 {offsets = [0, 128], sizes = [32, 32], strides = [1, 1]} : vector<64x512xbf16> to vector<32x32xbf16>
    %3 = vector.extract_strided_slice %0 {offsets = [0, 256], sizes = [32, 64], strides = [1, 1]} : vector<64x512xbf16> to vector<32x64xbf16>
    %4 = vector.extract_strided_slice %0 {offsets = [0, 384], sizes = [64, 32], strides = [1, 1]} : vector<64x512xbf16> to vector<64x32xbf16>
    %c0_1 = arith.constant 0 : index
    %c0_2 = arith.constant 0 : index
    %5 = vector.load %arg4[%c0_1, %c0_2] : memref<8x128xf32, #tpu.memory_space<vmem>>, vector<8x128xf32>
    %6 = vector.extract_strided_slice %5 {offsets = [0, 0], sizes = [1, 96], strides = [1, 1]} : vector<8x128xf32> to vector<1x96xf32>
    %7 = vector.extract_strided_slice %5 {offsets = [0, 96], sizes = [1, 32], strides = [1, 1]} : vector<8x128xf32> to vector<1x32xf32>
    %8 = vector.extract_strided_slice %5 {offsets = [1, 0], sizes = [1, 64], strides = [1, 1]} : vector<8x128xf32> to vector<1x64xf32>
    %9 = vector.extract_strided_slice %5 {offsets = [1, 64], sizes = [1, 32], strides = [1, 1]} : vector<8x128xf32> to vector<1x32xf32>
    %10 = vector.extract_strided_slice %5 {offsets = [2, 0], sizes = [1, 32], strides = [1, 1]} : vector<8x128xf32> to vector<1x32xf32>
    %11 = vector.extract_strided_slice %5 {offsets = [2, 32], sizes = [1, 32], strides = [1, 1]} : vector<8x128xf32> to vector<1x32xf32>
    %12 = vector.extract_strided_slice %5 {offsets = [2, 64], sizes = [1, 32], strides = [1, 1]} : vector<8x128xf32> to vector<1x32xf32>
    %13 = vector.extract_strided_slice %5 {offsets = [2, 96], sizes = [1, 32], strides = [1, 1]} : vector<8x128xf32> to vector<1x32xf32>
    %c0_3 = arith.constant 0 : index
    %c0_4 = arith.constant 0 : index
    %c0_5 = arith.constant 0 : index
    %14 = vector.load %arg1[%c0_3, %c0_4, %c0_5] : memref<2x16x32xf32, #tpu.memory_space<vmem>>, vector<2x16x32xf32>
    %15 = vector.shape_cast %14 : vector<2x16x32xf32> to vector<32x32xf32>
    %c0_6 = arith.constant 0 : index
    %c0_7 = arith.constant 0 : index
    %c0_8 = arith.constant 0 : index
    %16 = vector.load %arg2[%c0_6, %c0_7, %c0_8] : memref<2x8x32xf32, #tpu.memory_space<vmem>>, vector<2x8x32xf32>
    %17 = vector.shape_cast %16 : vector<2x8x32xf32> to vector<16x32xf32>
    %18 = arith.truncf %15 : vector<32x32xf32> to vector<32x32xbf16>
    %cst = arith.constant dense<0.000000e+00> : vector<32x96xf32>
    %19 = tpu.matmul %18, %1, %cst {dimension_numbers = #tpu.dot_dimension_numbers<[1], [0], [0], [1], [0, 0, 1, 1], [], []>} : vector<32x32xbf16>, vector<32x96xbf16>, vector<32x96xf32> -> vector<32x96xf32>
    %20 = vector.broadcast %6 : vector<1x96xf32> to vector<32x96xf32>
    %21 = arith.addf %19, %20 : vector<32x96xf32>
    %22 = vector.extract_strided_slice %21 {offsets = [0, 0], sizes = [32, 32], strides = [1, 1]} : vector<32x96xf32> to vector<32x32xf32>
    %23 = vector.extract_strided_slice %21 {offsets = [0, 32], sizes = [32, 32], strides = [1, 1]} : vector<32x96xf32> to vector<32x32xf32>
    %24 = vector.extract_strided_slice %21 {offsets = [0, 64], sizes = [32, 32], strides = [1, 1]} : vector<32x96xf32> to vector<32x32xf32>
    %25 = arith.truncf %22 : vector<32x32xf32> to vector<32x32xbf16>
    %26 = vector.extract_strided_slice %25 {offsets = [0, 0], sizes = [32, 4], strides = [1, 1]} : vector<32x32xbf16> to vector<32x4xbf16>
    %27 = vector.shape_cast %26 : vector<32x4xbf16> to vector<2x16x4xbf16>
    %28 = vector.extract_strided_slice %25 {offsets = [0, 4], sizes = [32, 4], strides = [1, 1]} : vector<32x32xbf16> to vector<32x4xbf16>
    %29 = vector.shape_cast %28 : vector<32x4xbf16> to vector<2x16x4xbf16>
    %30 = vector.extract_strided_slice %25 {offsets = [0, 8], sizes = [32, 4], strides = [1, 1]} : vector<32x32xbf16> to vector<32x4xbf16>
    %31 = vector.shape_cast %30 : vector<32x4xbf16> to vector<2x16x4xbf16>
    %32 = vector.extract_strided_slice %25 {offsets = [0, 12], sizes = [32, 4], strides = [1, 1]} : vector<32x32xbf16> to vector<32x4xbf16>
    %33 = vector.shape_cast %32 : vector<32x4xbf16> to vector<2x16x4xbf16>
    %34 = vector.extract_strided_slice %25 {offsets = [0, 16], sizes = [32, 4], strides = [1, 1]} : vector<32x32xbf16> to vector<32x4xbf16>
    %35 = vector.shape_cast %34 : vector<32x4xbf16> to vector<2x16x4xbf16>
    %36 = vector.extract_strided_slice %25 {offsets = [0, 20], sizes = [32, 4], strides = [1, 1]} : vector<32x32xbf16> to vector<32x4xbf16>
    %37 = vector.shape_cast %36 : vector<32x4xbf16> to vector<2x16x4xbf16>
    %38 = vector.extract_strided_slice %25 {offsets = [0, 24], sizes = [32, 4], strides = [1, 1]} : vector<32x32xbf16> to vector<32x4xbf16>
    %39 = vector.shape_cast %38 : vector<32x4xbf16> to vector<2x16x4xbf16>
    %40 = vector.extract_strided_slice %25 {offsets = [0, 28], sizes = [32, 4], strides = [1, 1]} : vector<32x32xbf16> to vector<32x4xbf16>
    %41 = vector.shape_cast %40 : vector<32x4xbf16> to vector<2x16x4xbf16>
    %42 = vector.shape_cast %27 : vector<2x16x4xbf16> to vector<2x1x16x4xbf16>
    %43 = vector.shape_cast %29 : vector<2x16x4xbf16> to vector<2x1x16x4xbf16>
    %44 = vector.shape_cast %31 : vector<2x16x4xbf16> to vector<2x1x16x4xbf16>
    %45 = vector.shape_cast %33 : vector<2x16x4xbf16> to vector<2x1x16x4xbf16>
    %46 = vector.shape_cast %35 : vector<2x16x4xbf16> to vector<2x1x16x4xbf16>
    %47 = vector.shape_cast %37 : vector<2x16x4xbf16> to vector<2x1x16x4xbf16>
    %48 = vector.shape_cast %39 : vector<2x16x4xbf16> to vector<2x1x16x4xbf16>
    %49 = vector.shape_cast %41 : vector<2x16x4xbf16> to vector<2x1x16x4xbf16>
    %50 = tpu.concatenate %42, %43, %44, %45, %46, %47, %48, %49 in 1 : vector<2x1x16x4xbf16>, vector<2x1x16x4xbf16>, vector<2x1x16x4xbf16>, vector<2x1x16x4xbf16>, vector<2x1x16x4xbf16>, vector<2x1x16x4xbf16>, vector<2x1x16x4xbf16>, vector<2x1x16x4xbf16> -> vector<2x8x16x4xbf16>
    %51 = vector.shape_cast %50 : vector<2x8x16x4xbf16> to vector<16x16x4xbf16>
    %52 = arith.truncf %23 : vector<32x32xf32> to vector<32x32xbf16>
    %53 = vector.extract_strided_slice %52 {offsets = [0, 0], sizes = [32, 4], strides = [1, 1]} : vector<32x32xbf16> to vector<32x4xbf16>
    %54 = vector.shape_cast %53 : vector<32x4xbf16> to vector<2x16x4xbf16>
    %55 = vector.extract_strided_slice %52 {offsets = [0, 4], sizes = [32, 4], strides = [1, 1]} : vector<32x32xbf16> to vector<32x4xbf16>
    %56 = vector.shape_cast %55 : vector<32x4xbf16> to vector<2x16x4xbf16>
    %57 = vector.extract_strided_slice %52 {offsets = [0, 8], sizes = [32, 4], strides = [1, 1]} : vector<32x32xbf16> to vector<32x4xbf16>
    %58 = vector.shape_cast %57 : vector<32x4xbf16> to vector<2x16x4xbf16>
    %59 = vector.extract_strided_slice %52 {offsets = [0, 12], sizes = [32, 4], strides = [1, 1]} : vector<32x32xbf16> to vector<32x4xbf16>
    %60 = vector.shape_cast %59 : vector<32x4xbf16> to vector<2x16x4xbf16>
    %61 = vector.extract_strided_slice %52 {offsets = [0, 16], sizes = [32, 4], strides = [1, 1]} : vector<32x32xbf16> to vector<32x4xbf16>
    %62 = vector.shape_cast %61 : vector<32x4xbf16> to vector<2x16x4xbf16>
    %63 = vector.extract_strided_slice %52 {offsets = [0, 20], sizes = [32, 4], strides = [1, 1]} : vector<32x32xbf16> to vector<32x4xbf16>
    %64 = vector.shape_cast %63 : vector<32x4xbf16> to vector<2x16x4xbf16>
    %65 = vector.extract_strided_slice %52 {offsets = [0, 24], sizes = [32, 4], strides = [1, 1]} : vector<32x32xbf16> to vector<32x4xbf16>
    %66 = vector.shape_cast %65 : vector<32x4xbf16> to vector<2x16x4xbf16>
    %67 = vector.extract_strided_slice %52 {offsets = [0, 28], sizes = [32, 4], strides = [1, 1]} : vector<32x32xbf16> to vector<32x4xbf16>
    %68 = vector.shape_cast %67 : vector<32x4xbf16> to vector<2x16x4xbf16>
    %69 = vector.shape_cast %54 : vector<2x16x4xbf16> to vector<2x1x16x4xbf16>
    %70 = vector.shape_cast %56 : vector<2x16x4xbf16> to vector<2x1x16x4xbf16>
    %71 = vector.shape_cast %58 : vector<2x16x4xbf16> to vector<2x1x16x4xbf16>
    %72 = vector.shape_cast %60 : vector<2x16x4xbf16> to vector<2x1x16x4xbf16>
    %73 = vector.shape_cast %62 : vector<2x16x4xbf16> to vector<2x1x16x4xbf16>
    %74 = vector.shape_cast %64 : vector<2x16x4xbf16> to vector<2x1x16x4xbf16>
    %75 = vector.shape_cast %66 : vector<2x16x4xbf16> to vector<2x1x16x4xbf16>
    %76 = vector.shape_cast %68 : vector<2x16x4xbf16> to vector<2x1x16x4xbf16>
    %77 = tpu.concatenate %69, %70, %71, %72, %73, %74, %75, %76 in 1 : vector<2x1x16x4xbf16>, vector<2x1x16x4xbf16>, vector<2x1x16x4xbf16>, vector<2x1x16x4xbf16>, vector<2x1x16x4xbf16>, vector<2x1x16x4xbf16>, vector<2x1x16x4xbf16>, vector<2x1x16x4xbf16> -> vector<2x8x16x4xbf16>
    %78 = vector.shape_cast %77 : vector<2x8x16x4xbf16> to vector<16x16x4xbf16>
    %79 = arith.truncf %24 : vector<32x32xf32> to vector<32x32xbf16>
    %80 = vector.extract_strided_slice %79 {offsets = [0, 0], sizes = [32, 4], strides = [1, 1]} : vector<32x32xbf16> to vector<32x4xbf16>
    %81 = vector.shape_cast %80 : vector<32x4xbf16> to vector<2x16x4xbf16>
    %82 = vector.extract_strided_slice %79 {offsets = [0, 4], sizes = [32, 4], strides = [1, 1]} : vector<32x32xbf16> to vector<32x4xbf16>
    %83 = vector.shape_cast %82 : vector<32x4xbf16> to vector<2x16x4xbf16>
    %84 = vector.extract_strided_slice %79 {offsets = [0, 8], sizes = [32, 4], strides = [1, 1]} : vector<32x32xbf16> to vector<32x4xbf16>
    %85 = vector.shape_cast %84 : vector<32x4xbf16> to vector<2x16x4xbf16>
    %86 = vector.extract_strided_slice %79 {offsets = [0, 12], sizes = [32, 4], strides = [1, 1]} : vector<32x32xbf16> to vector<32x4xbf16>
    %87 = vector.shape_cast %86 : vector<32x4xbf16> to vector<2x16x4xbf16>
    %88 = vector.extract_strided_slice %79 {offsets = [0, 16], sizes = [32, 4], strides = [1, 1]} : vector<32x32xbf16> to vector<32x4xbf16>
    %89 = vector.shape_cast %88 : vector<32x4xbf16> to vector<2x16x4xbf16>
    %90 = vector.extract_strided_slice %79 {offsets = [0, 20], sizes = [32, 4], strides = [1, 1]} : vector<32x32xbf16> to vector<32x4xbf16>
    %91 = vector.shape_cast %90 : vector<32x4xbf16> to vector<2x16x4xbf16>
    %92 = vector.extract_strided_slice %79 {offsets = [0, 24], sizes = [32, 4], strides = [1, 1]} : vector<32x32xbf16> to vector<32x4xbf16>
    %93 = vector.shape_cast %92 : vector<32x4xbf16> to vector<2x16x4xbf16>
    %94 = vector.extract_strided_slice %79 {offsets = [0, 28], sizes = [32, 4], strides = [1, 1]} : vector<32x32xbf16> to vector<32x4xbf16>
    %95 = vector.shape_cast %94 : vector<32x4xbf16> to vector<2x16x4xbf16>
    %96 = vector.shape_cast %81 : vector<2x16x4xbf16> to vector<2x1x16x4xbf16>
    %97 = vector.shape_cast %83 : vector<2x16x4xbf16> to vector<2x1x16x4xbf16>
    %98 = vector.shape_cast %85 : vector<2x16x4xbf16> to vector<2x1x16x4xbf16>
    %99 = vector.shape_cast %87 : vector<2x16x4xbf16> to vector<2x1x16x4xbf16>
    %100 = vector.shape_cast %89 : vector<2x16x4xbf16> to vector<2x1x16x4xbf16>
    %101 = vector.shape_cast %91 : vector<2x16x4xbf16> to vector<2x1x16x4xbf16>
    %102 = vector.shape_cast %93 : vector<2x16x4xbf16> to vector<2x1x16x4xbf16>
    %103 = vector.shape_cast %95 : vector<2x16x4xbf16> to vector<2x1x16x4xbf16>
    %104 = tpu.concatenate %96, %97, %98, %99, %100, %101, %102, %103 in 1 : vector<2x1x16x4xbf16>, vector<2x1x16x4xbf16>, vector<2x1x16x4xbf16>, vector<2x1x16x4xbf16>, vector<2x1x16x4xbf16>, vector<2x1x16x4xbf16>, vector<2x1x16x4xbf16>, vector<2x1x16x4xbf16> -> vector<2x8x16x4xbf16>
    %105 = vector.shape_cast %104 : vector<2x8x16x4xbf16> to vector<16x16x4xbf16>
    "tpu.trace_start"() <{level = 10 : i32, message = "gqd,gkd->gqk"}> : () -> ()
    %cst_9 = arith.constant dense<0.000000e+00> : vector<16x16x16xf32>
    %106 = tpu.matmul %51, %78, %cst_9 {dimension_numbers = #tpu.dot_dimension_numbers<[2], [2], [1], [1], [0, 0, 0, 1, 1, 1], [0], [0]>} : vector<16x16x4xbf16>, vector<16x16x4xbf16>, vector<16x16x16xf32> -> vector<16x16x16xf32>
    "tpu.trace_stop"() : () -> ()
    %cst_10 = arith.constant 5.000000e-01 : f32
    %107 = vector.broadcast %cst_10 : f32 to vector<16x16x16xf32>
    %108 = arith.mulf %106, %107 : vector<16x16x16xf32>
    %cst_11 = arith.constant dense<0xFF800000> : vector<16x16xf32>
    %109 = vector.multi_reduction <maximumf>, %108, %cst_11 [2] : vector<16x16x16xf32> to vector<16x16xf32>
    %110 = vector.shape_cast %109 : vector<16x16xf32> to vector<16x16x1xf32>
    %111 = vector.broadcast %110 : vector<16x16x1xf32> to vector<16x16x16xf32>
    %112 = arith.subf %108, %111 : vector<16x16x16xf32>
    %113 = math.exp %112 : vector<16x16x16xf32>
    %cst_12 = arith.constant dense<0.000000e+00> : vector<16x16xf32>
    %114 = vector.multi_reduction <add>, %113, %cst_12 [2] : vector<16x16x16xf32> to vector<16x16xf32>
    %115 = vector.shape_cast %114 : vector<16x16xf32> to vector<16x16x1xf32>
    %116 = tpu.reciprocal %115 {approx = true} : vector<16x16x1xf32> -> vector<16x16x1xf32>
    %117 = vector.broadcast %116 : vector<16x16x1xf32> to vector<16x16x16xf32>
    %118 = arith.mulf %113, %117 : vector<16x16x16xf32>
    %119 = arith.truncf %118 : vector<16x16x16xf32> to vector<16x16x16xbf16>
    "tpu.trace_start"() <{level = 10 : i32, message = "gqk,gkd->gqd"}> : () -> ()
    %cst_13 = arith.constant dense<0.000000e+00> : vector<16x16x4xf32>
    %120 = tpu.matmul %119, %105, %cst_13 {dimension_numbers = #tpu.dot_dimension_numbers<[2], [1], [1], [2], [0, 0, 0, 1, 1, 2], [0], [0]>} : vector<16x16x16xbf16>, vector<16x16x4xbf16>, vector<16x16x4xf32> -> vector<16x16x4xf32>
    "tpu.trace_stop"() : () -> ()
    %121 = vector.shape_cast %120 : vector<16x16x4xf32> to vector<2x8x16x4xf32>
    %122 = vector.extract_strided_slice %121 {offsets = [0, 0, 0, 0], sizes = [2, 1, 16, 4], strides = [1, 1, 1, 1]} : vector<2x8x16x4xf32> to vector<2x1x16x4xf32>
    %123 = vector.shape_cast %122 : vector<2x1x16x4xf32> to vector<2x16x4xf32>
    %124 = vector.extract_strided_slice %121 {offsets = [0, 1, 0, 0], sizes = [2, 1, 16, 4], strides = [1, 1, 1, 1]} : vector<2x8x16x4xf32> to vector<2x1x16x4xf32>
    %125 = vector.shape_cast %124 : vector<2x1x16x4xf32> to vector<2x16x4xf32>
    %126 = vector.extract_strided_slice %121 {offsets = [0, 2, 0, 0], sizes = [2, 1, 16, 4], strides = [1, 1, 1, 1]} : vector<2x8x16x4xf32> to vector<2x1x16x4xf32>
    %127 = vector.shape_cast %126 : vector<2x1x16x4xf32> to vector<2x16x4xf32>
    %128 = vector.extract_strided_slice %121 {offsets = [0, 3, 0, 0], sizes = [2, 1, 16, 4], strides = [1, 1, 1, 1]} : vector<2x8x16x4xf32> to vector<2x1x16x4xf32>
    %129 = vector.shape_cast %128 : vector<2x1x16x4xf32> to vector<2x16x4xf32>
    %130 = vector.extract_strided_slice %121 {offsets = [0, 4, 0, 0], sizes = [2, 1, 16, 4], strides = [1, 1, 1, 1]} : vector<2x8x16x4xf32> to vector<2x1x16x4xf32>
    %131 = vector.shape_cast %130 : vector<2x1x16x4xf32> to vector<2x16x4xf32>
    %132 = vector.extract_strided_slice %121 {offsets = [0, 5, 0, 0], sizes = [2, 1, 16, 4], strides = [1, 1, 1, 1]} : vector<2x8x16x4xf32> to vector<2x1x16x4xf32>
    %133 = vector.shape_cast %132 : vector<2x1x16x4xf32> to vector<2x16x4xf32>
    %134 = vector.extract_strided_slice %121 {offsets = [0, 6, 0, 0], sizes = [2, 1, 16, 4], strides = [1, 1, 1, 1]} : vector<2x8x16x4xf32> to vector<2x1x16x4xf32>
    %135 = vector.shape_cast %134 : vector<2x1x16x4xf32> to vector<2x16x4xf32>
    %136 = vector.extract_strided_slice %121 {offsets = [0, 7, 0, 0], sizes = [2, 1, 16, 4], strides = [1, 1, 1, 1]} : vector<2x8x16x4xf32> to vector<2x1x16x4xf32>
    %137 = vector.shape_cast %136 : vector<2x1x16x4xf32> to vector<2x16x4xf32>
    %138 = tpu.concatenate %123, %125, %127, %129, %131, %133, %135, %137 in 2 : vector<2x16x4xf32>, vector<2x16x4xf32>, vector<2x16x4xf32>, vector<2x16x4xf32>, vector<2x16x4xf32>, vector<2x16x4xf32>, vector<2x16x4xf32>, vector<2x16x4xf32> -> vector<2x16x32xf32>
    %139 = vector.shape_cast %138 : vector<2x16x32xf32> to vector<32x32xf32>
    %140 = arith.truncf %139 : vector<32x32xf32> to vector<32x32xbf16>
    %cst_14 = arith.constant dense<0.000000e+00> : vector<32x32xf32>
    %141 = tpu.matmul %140, %2, %cst_14 {dimension_numbers = #tpu.dot_dimension_numbers<[1], [0], [0], [1], [0, 0, 1, 1], [], []>} : vector<32x32xbf16>, vector<32x32xbf16>, vector<32x32xf32> -> vector<32x32xf32>
    %142 = vector.broadcast %7 : vector<1x32xf32> to vector<32x32xf32>
    %143 = arith.addf %141, %142 : vector<32x32xf32>
    %144 = arith.addf %15, %143 : vector<32x32xf32>
    %cst_15 = arith.constant dense<0.000000e+00> : vector<32xf32>
    %145 = vector.multi_reduction <add>, %144, %cst_15 [1] : vector<32x32xf32> to vector<32xf32>
    %146 = vector.shape_cast %145 : vector<32xf32> to vector<32x1xf32>
    %cst_16 = arith.constant 3.200000e+01 : f32
    %147 = vector.broadcast %cst_16 : f32 to vector<32x1xf32>
    %148 = arith.divf %146, %147 : vector<32x1xf32>
    %149 = vector.broadcast %148 : vector<32x1xf32> to vector<32x32xf32>
    %150 = arith.subf %144, %149 : vector<32x32xf32>
    %151 = arith.mulf %150, %150 : vector<32x32xf32>
    %cst_17 = arith.constant dense<0.000000e+00> : vector<32xf32>
    %152 = vector.multi_reduction <add>, %151, %cst_17 [1] : vector<32x32xf32> to vector<32xf32>
    %153 = vector.shape_cast %152 : vector<32xf32> to vector<32x1xf32>
    %cst_18 = arith.constant 3.200000e+01 : f32
    %154 = vector.broadcast %cst_18 : f32 to vector<32x1xf32>
    %155 = arith.divf %153, %154 : vector<32x1xf32>
    %cst_19 = arith.constant 9.99999974E-6 : f32
    %156 = vector.broadcast %cst_19 : f32 to vector<32x1xf32>
    %157 = arith.addf %155, %156 : vector<32x1xf32>
    %158 = math.rsqrt %157 : vector<32x1xf32>
    %159 = vector.broadcast %158 : vector<32x1xf32> to vector<32x32xf32>
    %160 = arith.mulf %150, %159 : vector<32x32xf32>
    %161 = vector.broadcast %10 : vector<1x32xf32> to vector<32x32xf32>
    %162 = arith.mulf %160, %161 : vector<32x32xf32>
    %163 = vector.broadcast %11 : vector<1x32xf32> to vector<32x32xf32>
    %164 = arith.addf %162, %163 : vector<32x32xf32>
    %165 = arith.truncf %164 : vector<32x32xf32> to vector<32x32xbf16>
    %166 = vector.extract_strided_slice %1 {offsets = [0, 0], sizes = [32, 32], strides = [1, 1]} : vector<32x96xbf16> to vector<32x32xbf16>
    %cst_20 = arith.constant dense<0.000000e+00> : vector<32x32xf32>
    %167 = tpu.matmul %165, %166, %cst_20 {dimension_numbers = #tpu.dot_dimension_numbers<[1], [0], [0], [1], [0, 0, 1, 1], [], []>} : vector<32x32xbf16>, vector<32x32xbf16>, vector<32x32xf32> -> vector<32x32xf32>
    %168 = vector.extract_strided_slice %6 {offsets = [0, 0], sizes = [1, 32], strides = [1, 1]} : vector<1x96xf32> to vector<1x32xf32>
    %169 = vector.broadcast %168 : vector<1x32xf32> to vector<32x32xf32>
    %170 = arith.addf %167, %169 : vector<32x32xf32>
    %171 = arith.truncf %17 : vector<16x32xf32> to vector<16x32xbf16>
    %172 = vector.extract_strided_slice %1 {offsets = [0, 32], sizes = [32, 64], strides = [1, 1]} : vector<32x96xbf16> to vector<32x64xbf16>
    %cst_21 = arith.constant dense<0.000000e+00> : vector<16x64xf32>
    %173 = tpu.matmul %171, %172, %cst_21 {dimension_numbers = #tpu.dot_dimension_numbers<[1], [0], [0], [1], [0, 0, 1, 1], [], []>} : vector<16x32xbf16>, vector<32x64xbf16>, vector<16x64xf32> -> vector<16x64xf32>
    %174 = vector.extract_strided_slice %6 {offsets = [0, 32], sizes = [1, 64], strides = [1, 1]} : vector<1x96xf32> to vector<1x64xf32>
    %175 = vector.broadcast %174 : vector<1x64xf32> to vector<16x64xf32>
    %176 = arith.addf %173, %175 : vector<16x64xf32>
    %177 = vector.extract_strided_slice %176 {offsets = [0, 0], sizes = [16, 32], strides = [1, 1]} : vector<16x64xf32> to vector<16x32xf32>
    %178 = vector.extract_strided_slice %176 {offsets = [0, 32], sizes = [16, 32], strides = [1, 1]} : vector<16x64xf32> to vector<16x32xf32>
    %179 = arith.truncf %170 : vector<32x32xf32> to vector<32x32xbf16>
    %180 = vector.extract_strided_slice %179 {offsets = [0, 0], sizes = [32, 4], strides = [1, 1]} : vector<32x32xbf16> to vector<32x4xbf16>
    %181 = vector.shape_cast %180 : vector<32x4xbf16> to vector<2x16x4xbf16>
    %182 = vector.extract_strided_slice %179 {offsets = [0, 4], sizes = [32, 4], strides = [1, 1]} : vector<32x32xbf16> to vector<32x4xbf16>
    %183 = vector.shape_cast %182 : vector<32x4xbf16> to vector<2x16x4xbf16>
    %184 = vector.extract_strided_slice %179 {offsets = [0, 8], sizes = [32, 4], strides = [1, 1]} : vector<32x32xbf16> to vector<32x4xbf16>
    %185 = vector.shape_cast %184 : vector<32x4xbf16> to vector<2x16x4xbf16>
    %186 = vector.extract_strided_slice %179 {offsets = [0, 12], sizes = [32, 4], strides = [1, 1]} : vector<32x32xbf16> to vector<32x4xbf16>
    %187 = vector.shape_cast %186 : vector<32x4xbf16> to vector<2x16x4xbf16>
    %188 = vector.extract_strided_slice %179 {offsets = [0, 16], sizes = [32, 4], strides = [1, 1]} : vector<32x32xbf16> to vector<32x4xbf16>
    %189 = vector.shape_cast %188 : vector<32x4xbf16> to vector<2x16x4xbf16>
    %190 = vector.extract_strided_slice %179 {offsets = [0, 20], sizes = [32, 4], strides = [1, 1]} : vector<32x32xbf16> to vector<32x4xbf16>
    %191 = vector.shape_cast %190 : vector<32x4xbf16> to vector<2x16x4xbf16>
    %192 = vector.extract_strided_slice %179 {offsets = [0, 24], sizes = [32, 4], strides = [1, 1]} : vector<32x32xbf16> to vector<32x4xbf16>
    %193 = vector.shape_cast %192 : vector<32x4xbf16> to vector<2x16x4xbf16>
    %194 = vector.extract_strided_slice %179 {offsets = [0, 28], sizes = [32, 4], strides = [1, 1]} : vector<32x32xbf16> to vector<32x4xbf16>
    %195 = vector.shape_cast %194 : vector<32x4xbf16> to vector<2x16x4xbf16>
    %196 = vector.shape_cast %181 : vector<2x16x4xbf16> to vector<2x1x16x4xbf16>
    %197 = vector.shape_cast %183 : vector<2x16x4xbf16> to vector<2x1x16x4xbf16>
    %198 = vector.shape_cast %185 : vector<2x16x4xbf16> to vector<2x1x16x4xbf16>
    %199 = vector.shape_cast %187 : vector<2x16x4xbf16> to vector<2x1x16x4xbf16>
    %200 = vector.shape_cast %189 : vector<2x16x4xbf16> to vector<2x1x16x4xbf16>
    %201 = vector.shape_cast %191 : vector<2x16x4xbf16> to vector<2x1x16x4xbf16>
    %202 = vector.shape_cast %193 : vector<2x16x4xbf16> to vector<2x1x16x4xbf16>
    %203 = vector.shape_cast %195 : vector<2x16x4xbf16> to vector<2x1x16x4xbf16>
    %204 = tpu.concatenate %196, %197, %198, %199, %200, %201, %202, %203 in 1 : vector<2x1x16x4xbf16>, vector<2x1x16x4xbf16>, vector<2x1x16x4xbf16>, vector<2x1x16x4xbf16>, vector<2x1x16x4xbf16>, vector<2x1x16x4xbf16>, vector<2x1x16x4xbf16>, vector<2x1x16x4xbf16> -> vector<2x8x16x4xbf16>
    %205 = vector.shape_cast %204 : vector<2x8x16x4xbf16> to vector<16x16x4xbf16>
    %206 = arith.truncf %177 : vector<16x32xf32> to vector<16x32xbf16>
    %207 = vector.extract_strided_slice %206 {offsets = [0, 0], sizes = [16, 4], strides = [1, 1]} : vector<16x32xbf16> to vector<16x4xbf16>
    %208 = vector.shape_cast %207 : vector<16x4xbf16> to vector<2x8x4xbf16>
    %209 = vector.extract_strided_slice %206 {offsets = [0, 4], sizes = [16, 4], strides = [1, 1]} : vector<16x32xbf16> to vector<16x4xbf16>
    %210 = vector.shape_cast %209 : vector<16x4xbf16> to vector<2x8x4xbf16>
    %211 = vector.extract_strided_slice %206 {offsets = [0, 8], sizes = [16, 4], strides = [1, 1]} : vector<16x32xbf16> to vector<16x4xbf16>
    %212 = vector.shape_cast %211 : vector<16x4xbf16> to vector<2x8x4xbf16>
    %213 = vector.extract_strided_slice %206 {offsets = [0, 12], sizes = [16, 4], strides = [1, 1]} : vector<16x32xbf16> to vector<16x4xbf16>
    %214 = vector.shape_cast %213 : vector<16x4xbf16> to vector<2x8x4xbf16>
    %215 = vector.extract_strided_slice %206 {offsets = [0, 16], sizes = [16, 4], strides = [1, 1]} : vector<16x32xbf16> to vector<16x4xbf16>
    %216 = vector.shape_cast %215 : vector<16x4xbf16> to vector<2x8x4xbf16>
    %217 = vector.extract_strided_slice %206 {offsets = [0, 20], sizes = [16, 4], strides = [1, 1]} : vector<16x32xbf16> to vector<16x4xbf16>
    %218 = vector.shape_cast %217 : vector<16x4xbf16> to vector<2x8x4xbf16>
    %219 = vector.extract_strided_slice %206 {offsets = [0, 24], sizes = [16, 4], strides = [1, 1]} : vector<16x32xbf16> to vector<16x4xbf16>
    %220 = vector.shape_cast %219 : vector<16x4xbf16> to vector<2x8x4xbf16>
    %221 = vector.extract_strided_slice %206 {offsets = [0, 28], sizes = [16, 4], strides = [1, 1]} : vector<16x32xbf16> to vector<16x4xbf16>
    %222 = vector.shape_cast %221 : vector<16x4xbf16> to vector<2x8x4xbf16>
    %223 = vector.shape_cast %208 : vector<2x8x4xbf16> to vector<2x1x8x4xbf16>
    %224 = vector.shape_cast %210 : vector<2x8x4xbf16> to vector<2x1x8x4xbf16>
    %225 = vector.shape_cast %212 : vector<2x8x4xbf16> to vector<2x1x8x4xbf16>
    %226 = vector.shape_cast %214 : vector<2x8x4xbf16> to vector<2x1x8x4xbf16>
    %227 = vector.shape_cast %216 : vector<2x8x4xbf16> to vector<2x1x8x4xbf16>
    %228 = vector.shape_cast %218 : vector<2x8x4xbf16> to vector<2x1x8x4xbf16>
    %229 = vector.shape_cast %220 : vector<2x8x4xbf16> to vector<2x1x8x4xbf16>
    %230 = vector.shape_cast %222 : vector<2x8x4xbf16> to vector<2x1x8x4xbf16>
    %231 = tpu.concatenate %223, %224, %225, %226, %227, %228, %229, %230 in 1 : vector<2x1x8x4xbf16>, vector<2x1x8x4xbf16>, vector<2x1x8x4xbf16>, vector<2x1x8x4xbf16>, vector<2x1x8x4xbf16>, vector<2x1x8x4xbf16>, vector<2x1x8x4xbf16>, vector<2x1x8x4xbf16> -> vector<2x8x8x4xbf16>
    %232 = vector.shape_cast %231 : vector<2x8x8x4xbf16> to vector<16x8x4xbf16>
    %233 = arith.truncf %178 : vector<16x32xf32> to vector<16x32xbf16>
    %234 = vector.extract_strided_slice %233 {offsets = [0, 0], sizes = [16, 4], strides = [1, 1]} : vector<16x32xbf16> to vector<16x4xbf16>
    %235 = vector.shape_cast %234 : vector<16x4xbf16> to vector<2x8x4xbf16>
    %236 = vector.extract_strided_slice %233 {offsets = [0, 4], sizes = [16, 4], strides = [1, 1]} : vector<16x32xbf16> to vector<16x4xbf16>
    %237 = vector.shape_cast %236 : vector<16x4xbf16> to vector<2x8x4xbf16>
    %238 = vector.extract_strided_slice %233 {offsets = [0, 8], sizes = [16, 4], strides = [1, 1]} : vector<16x32xbf16> to vector<16x4xbf16>
    %239 = vector.shape_cast %238 : vector<16x4xbf16> to vector<2x8x4xbf16>
    %240 = vector.extract_strided_slice %233 {offsets = [0, 12], sizes = [16, 4], strides = [1, 1]} : vector<16x32xbf16> to vector<16x4xbf16>
    %241 = vector.shape_cast %240 : vector<16x4xbf16> to vector<2x8x4xbf16>
    %242 = vector.extract_strided_slice %233 {offsets = [0, 16], sizes = [16, 4], strides = [1, 1]} : vector<16x32xbf16> to vector<16x4xbf16>
    %243 = vector.shape_cast %242 : vector<16x4xbf16> to vector<2x8x4xbf16>
    %244 = vector.extract_strided_slice %233 {offsets = [0, 20], sizes = [16, 4], strides = [1, 1]} : vector<16x32xbf16> to vector<16x4xbf16>
    %245 = vector.shape_cast %244 : vector<16x4xbf16> to vector<2x8x4xbf16>
    %246 = vector.extract_strided_slice %233 {offsets = [0, 24], sizes = [16, 4], strides = [1, 1]} : vector<16x32xbf16> to vector<16x4xbf16>
    %247 = vector.shape_cast %246 : vector<16x4xbf16> to vector<2x8x4xbf16>
    %248 = vector.extract_strided_slice %233 {offsets = [0, 28], sizes = [16, 4], strides = [1, 1]} : vector<16x32xbf16> to vector<16x4xbf16>
    %249 = vector.shape_cast %248 : vector<16x4xbf16> to vector<2x8x4xbf16>
    %250 = vector.shape_cast %235 : vector<2x8x4xbf16> to vector<2x1x8x4xbf16>
    %251 = vector.shape_cast %237 : vector<2x8x4xbf16> to vector<2x1x8x4xbf16>
    %252 = vector.shape_cast %239 : vector<2x8x4xbf16> to vector<2x1x8x4xbf16>
    %253 = vector.shape_cast %241 : vector<2x8x4xbf16> to vector<2x1x8x4xbf16>
    %254 = vector.shape_cast %243 : vector<2x8x4xbf16> to vector<2x1x8x4xbf16>
    %255 = vector.shape_cast %245 : vector<2x8x4xbf16> to vector<2x1x8x4xbf16>
    %256 = vector.shape_cast %247 : vector<2x8x4xbf16> to vector<2x1x8x4xbf16>
    %257 = vector.shape_cast %249 : vector<2x8x4xbf16> to vector<2x1x8x4xbf16>
    %258 = tpu.concatenate %250, %251, %252, %253, %254, %255, %256, %257 in 1 : vector<2x1x8x4xbf16>, vector<2x1x8x4xbf16>, vector<2x1x8x4xbf16>, vector<2x1x8x4xbf16>, vector<2x1x8x4xbf16>, vector<2x1x8x4xbf16>, vector<2x1x8x4xbf16>, vector<2x1x8x4xbf16> -> vector<2x8x8x4xbf16>
    %259 = vector.shape_cast %258 : vector<2x8x8x4xbf16> to vector<16x8x4xbf16>
    "tpu.trace_start"() <{level = 10 : i32, message = "gqd,gkd->gqk"}> : () -> ()
    %cst_22 = arith.constant dense<0.000000e+00> : vector<16x16x8xf32>
    %260 = tpu.matmul %205, %232, %cst_22 {dimension_numbers = #tpu.dot_dimension_numbers<[2], [2], [1], [1], [0, 0, 0, 1, 1, 1], [0], [0]>} : vector<16x16x4xbf16>, vector<16x8x4xbf16>, vector<16x16x8xf32> -> vector<16x16x8xf32>
    "tpu.trace_stop"() : () -> ()
    %cst_23 = arith.constant 5.000000e-01 : f32
    %261 = vector.broadcast %cst_23 : f32 to vector<16x16x8xf32>
    %262 = arith.mulf %260, %261 : vector<16x16x8xf32>
    %cst_24 = arith.constant dense<0xFF800000> : vector<16x16xf32>
    %263 = vector.multi_reduction <maximumf>, %262, %cst_24 [2] : vector<16x16x8xf32> to vector<16x16xf32>
    %264 = vector.shape_cast %263 : vector<16x16xf32> to vector<16x16x1xf32>
    %265 = vector.broadcast %264 : vector<16x16x1xf32> to vector<16x16x8xf32>
    %266 = arith.subf %262, %265 : vector<16x16x8xf32>
    %267 = math.exp %266 : vector<16x16x8xf32>
    %cst_25 = arith.constant dense<0.000000e+00> : vector<16x16xf32>
    %268 = vector.multi_reduction <add>, %267, %cst_25 [2] : vector<16x16x8xf32> to vector<16x16xf32>
    %269 = vector.shape_cast %268 : vector<16x16xf32> to vector<16x16x1xf32>
    %270 = tpu.reciprocal %269 {approx = true} : vector<16x16x1xf32> -> vector<16x16x1xf32>
    %271 = vector.broadcast %270 : vector<16x16x1xf32> to vector<16x16x8xf32>
    %272 = arith.mulf %267, %271 : vector<16x16x8xf32>
    %273 = arith.truncf %272 : vector<16x16x8xf32> to vector<16x16x8xbf16>
    "tpu.trace_start"() <{level = 10 : i32, message = "gqk,gkd->gqd"}> : () -> ()
    %cst_26 = arith.constant dense<0.000000e+00> : vector<16x16x4xf32>
    %274 = tpu.matmul %273, %259, %cst_26 {dimension_numbers = #tpu.dot_dimension_numbers<[2], [1], [1], [2], [0, 0, 0, 1, 1, 2], [0], [0]>} : vector<16x16x8xbf16>, vector<16x8x4xbf16>, vector<16x16x4xf32> -> vector<16x16x4xf32>
    "tpu.trace_stop"() : () -> ()
    %275 = vector.shape_cast %274 : vector<16x16x4xf32> to vector<2x8x16x4xf32>
    %276 = vector.extract_strided_slice %275 {offsets = [0, 0, 0, 0], sizes = [2, 1, 16, 4], strides = [1, 1, 1, 1]} : vector<2x8x16x4xf32> to vector<2x1x16x4xf32>
    %277 = vector.shape_cast %276 : vector<2x1x16x4xf32> to vector<2x16x4xf32>
    %278 = vector.extract_strided_slice %275 {offsets = [0, 1, 0, 0], sizes = [2, 1, 16, 4], strides = [1, 1, 1, 1]} : vector<2x8x16x4xf32> to vector<2x1x16x4xf32>
    %279 = vector.shape_cast %278 : vector<2x1x16x4xf32> to vector<2x16x4xf32>
    %280 = vector.extract_strided_slice %275 {offsets = [0, 2, 0, 0], sizes = [2, 1, 16, 4], strides = [1, 1, 1, 1]} : vector<2x8x16x4xf32> to vector<2x1x16x4xf32>
    %281 = vector.shape_cast %280 : vector<2x1x16x4xf32> to vector<2x16x4xf32>
    %282 = vector.extract_strided_slice %275 {offsets = [0, 3, 0, 0], sizes = [2, 1, 16, 4], strides = [1, 1, 1, 1]} : vector<2x8x16x4xf32> to vector<2x1x16x4xf32>
    %283 = vector.shape_cast %282 : vector<2x1x16x4xf32> to vector<2x16x4xf32>
    %284 = vector.extract_strided_slice %275 {offsets = [0, 4, 0, 0], sizes = [2, 1, 16, 4], strides = [1, 1, 1, 1]} : vector<2x8x16x4xf32> to vector<2x1x16x4xf32>
    %285 = vector.shape_cast %284 : vector<2x1x16x4xf32> to vector<2x16x4xf32>
    %286 = vector.extract_strided_slice %275 {offsets = [0, 5, 0, 0], sizes = [2, 1, 16, 4], strides = [1, 1, 1, 1]} : vector<2x8x16x4xf32> to vector<2x1x16x4xf32>
    %287 = vector.shape_cast %286 : vector<2x1x16x4xf32> to vector<2x16x4xf32>
    %288 = vector.extract_strided_slice %275 {offsets = [0, 6, 0, 0], sizes = [2, 1, 16, 4], strides = [1, 1, 1, 1]} : vector<2x8x16x4xf32> to vector<2x1x16x4xf32>
    %289 = vector.shape_cast %288 : vector<2x1x16x4xf32> to vector<2x16x4xf32>
    %290 = vector.extract_strided_slice %275 {offsets = [0, 7, 0, 0], sizes = [2, 1, 16, 4], strides = [1, 1, 1, 1]} : vector<2x8x16x4xf32> to vector<2x1x16x4xf32>
    %291 = vector.shape_cast %290 : vector<2x1x16x4xf32> to vector<2x16x4xf32>
    %292 = tpu.concatenate %277, %279, %281, %283, %285, %287, %289, %291 in 2 : vector<2x16x4xf32>, vector<2x16x4xf32>, vector<2x16x4xf32>, vector<2x16x4xf32>, vector<2x16x4xf32>, vector<2x16x4xf32>, vector<2x16x4xf32>, vector<2x16x4xf32> -> vector<2x16x32xf32>
    %293 = vector.shape_cast %292 : vector<2x16x32xf32> to vector<32x32xf32>
    %294 = arith.truncf %293 : vector<32x32xf32> to vector<32x32xbf16>
    %cst_27 = arith.constant dense<0.000000e+00> : vector<32x32xf32>
    %295 = tpu.matmul %294, %2, %cst_27 {dimension_numbers = #tpu.dot_dimension_numbers<[1], [0], [0], [1], [0, 0, 1, 1], [], []>} : vector<32x32xbf16>, vector<32x32xbf16>, vector<32x32xf32> -> vector<32x32xf32>
    %296 = vector.broadcast %7 : vector<1x32xf32> to vector<32x32xf32>
    %297 = arith.addf %295, %296 : vector<32x32xf32>
    %298 = arith.addf %164, %297 : vector<32x32xf32>
    %cst_28 = arith.constant dense<0.000000e+00> : vector<32xf32>
    %299 = vector.multi_reduction <add>, %298, %cst_28 [1] : vector<32x32xf32> to vector<32xf32>
    %300 = vector.shape_cast %299 : vector<32xf32> to vector<32x1xf32>
    %cst_29 = arith.constant 3.200000e+01 : f32
    %301 = vector.broadcast %cst_29 : f32 to vector<32x1xf32>
    %302 = arith.divf %300, %301 : vector<32x1xf32>
    %303 = vector.broadcast %302 : vector<32x1xf32> to vector<32x32xf32>
    %304 = arith.subf %298, %303 : vector<32x32xf32>
    %305 = arith.mulf %304, %304 : vector<32x32xf32>
    %cst_30 = arith.constant dense<0.000000e+00> : vector<32xf32>
    %306 = vector.multi_reduction <add>, %305, %cst_30 [1] : vector<32x32xf32> to vector<32xf32>
    %307 = vector.shape_cast %306 : vector<32xf32> to vector<32x1xf32>
    %cst_31 = arith.constant 3.200000e+01 : f32
    %308 = vector.broadcast %cst_31 : f32 to vector<32x1xf32>
    %309 = arith.divf %307, %308 : vector<32x1xf32>
    %cst_32 = arith.constant 9.99999974E-6 : f32
    %310 = vector.broadcast %cst_32 : f32 to vector<32x1xf32>
    %311 = arith.addf %309, %310 : vector<32x1xf32>
    %312 = math.rsqrt %311 : vector<32x1xf32>
    %313 = vector.broadcast %312 : vector<32x1xf32> to vector<32x32xf32>
    %314 = arith.mulf %304, %313 : vector<32x32xf32>
    %315 = vector.broadcast %10 : vector<1x32xf32> to vector<32x32xf32>
    %316 = arith.mulf %314, %315 : vector<32x32xf32>
    %317 = vector.broadcast %11 : vector<1x32xf32> to vector<32x32xf32>
    %318 = arith.addf %316, %317 : vector<32x32xf32>
    %319 = arith.truncf %318 : vector<32x32xf32> to vector<32x32xbf16>
    %cst_33 = arith.constant dense<0.000000e+00> : vector<32x64xf32>
    %320 = tpu.matmul %319, %3, %cst_33 {dimension_numbers = #tpu.dot_dimension_numbers<[1], [0], [0], [1], [0, 0, 1, 1], [], []>} : vector<32x32xbf16>, vector<32x64xbf16>, vector<32x64xf32> -> vector<32x64xf32>
    %321 = vector.broadcast %8 : vector<1x64xf32> to vector<32x64xf32>
    %322 = arith.addf %320, %321 : vector<32x64xf32>
    %cst_34 = arith.constant 0.000000e+00 : f32
    %323 = vector.broadcast %cst_34 : f32 to vector<32x64xf32>
    %324 = arith.maximumf %322, %323 : vector<32x64xf32>
    %325 = arith.truncf %324 : vector<32x64xf32> to vector<32x64xbf16>
    %cst_35 = arith.constant dense<0.000000e+00> : vector<32x32xf32>
    %326 = tpu.matmul %325, %4, %cst_35 {dimension_numbers = #tpu.dot_dimension_numbers<[1], [0], [0], [1], [0, 0, 1, 1], [], []>} : vector<32x64xbf16>, vector<64x32xbf16>, vector<32x32xf32> -> vector<32x32xf32>
    %327 = vector.broadcast %9 : vector<1x32xf32> to vector<32x32xf32>
    %328 = arith.addf %326, %327 : vector<32x32xf32>
    %329 = arith.addf %318, %328 : vector<32x32xf32>
    %cst_36 = arith.constant dense<0.000000e+00> : vector<32xf32>
    %330 = vector.multi_reduction <add>, %329, %cst_36 [1] : vector<32x32xf32> to vector<32xf32>
    %331 = vector.shape_cast %330 : vector<32xf32> to vector<32x1xf32>
    %cst_37 = arith.constant 3.200000e+01 : f32
    %332 = vector.broadcast %cst_37 : f32 to vector<32x1xf32>
    %333 = arith.divf %331, %332 : vector<32x1xf32>
    %334 = vector.broadcast %333 : vector<32x1xf32> to vector<32x32xf32>
    %335 = arith.subf %329, %334 : vector<32x32xf32>
    %336 = arith.mulf %335, %335 : vector<32x32xf32>
    %cst_38 = arith.constant dense<0.000000e+00> : vector<32xf32>
    %337 = vector.multi_reduction <add>, %336, %cst_38 [1] : vector<32x32xf32> to vector<32xf32>
    %338 = vector.shape_cast %337 : vector<32xf32> to vector<32x1xf32>
    %cst_39 = arith.constant 3.200000e+01 : f32
    %339 = vector.broadcast %cst_39 : f32 to vector<32x1xf32>
    %340 = arith.divf %338, %339 : vector<32x1xf32>
    %cst_40 = arith.constant 9.99999974E-6 : f32
    %341 = vector.broadcast %cst_40 : f32 to vector<32x1xf32>
    %342 = arith.addf %340, %341 : vector<32x1xf32>
    %343 = math.rsqrt %342 : vector<32x1xf32>
    %344 = vector.broadcast %343 : vector<32x1xf32> to vector<32x32xf32>
    %345 = arith.mulf %335, %344 : vector<32x32xf32>
    %346 = vector.broadcast %12 : vector<1x32xf32> to vector<32x32xf32>
    %347 = arith.mulf %345, %346 : vector<32x32xf32>
    %348 = vector.broadcast %13 : vector<1x32xf32> to vector<32x32xf32>
    %349 = arith.addf %347, %348 : vector<32x32xf32>
    %350 = vector.shape_cast %349 : vector<32x32xf32> to vector<2x16x32xf32>
    %351 = vector.extract_strided_slice %350 {offsets = [0, 0, 0], sizes = [2, 1, 32], strides = [1, 1, 1]} : vector<2x16x32xf32> to vector<2x1x32xf32>
    %352 = vector.extract_strided_slice %350 {offsets = [0, 1, 0], sizes = [2, 1, 32], strides = [1, 1, 1]} : vector<2x16x32xf32> to vector<2x1x32xf32>
    %353 = vector.extract_strided_slice %350 {offsets = [0, 2, 0], sizes = [2, 1, 32], strides = [1, 1, 1]} : vector<2x16x32xf32> to vector<2x1x32xf32>
    %354 = vector.extract_strided_slice %350 {offsets = [0, 3, 0], sizes = [2, 1, 32], strides = [1, 1, 1]} : vector<2x16x32xf32> to vector<2x1x32xf32>
    %355 = vector.extract_strided_slice %350 {offsets = [0, 4, 0], sizes = [2, 1, 32], strides = [1, 1, 1]} : vector<2x16x32xf32> to vector<2x1x32xf32>
    %356 = vector.extract_strided_slice %350 {offsets = [0, 5, 0], sizes = [2, 1, 32], strides = [1, 1, 1]} : vector<2x16x32xf32> to vector<2x1x32xf32>
    %357 = vector.extract_strided_slice %350 {offsets = [0, 6, 0], sizes = [2, 1, 32], strides = [1, 1, 1]} : vector<2x16x32xf32> to vector<2x1x32xf32>
    %358 = vector.extract_strided_slice %350 {offsets = [0, 7, 0], sizes = [2, 1, 32], strides = [1, 1, 1]} : vector<2x16x32xf32> to vector<2x1x32xf32>
    %359 = vector.extract_strided_slice %350 {offsets = [0, 8, 0], sizes = [2, 1, 32], strides = [1, 1, 1]} : vector<2x16x32xf32> to vector<2x1x32xf32>
    %360 = vector.extract_strided_slice %350 {offsets = [0, 9, 0], sizes = [2, 1, 32], strides = [1, 1, 1]} : vector<2x16x32xf32> to vector<2x1x32xf32>
    %361 = vector.extract_strided_slice %350 {offsets = [0, 10, 0], sizes = [2, 1, 32], strides = [1, 1, 1]} : vector<2x16x32xf32> to vector<2x1x32xf32>
    %362 = vector.extract_strided_slice %350 {offsets = [0, 11, 0], sizes = [2, 1, 32], strides = [1, 1, 1]} : vector<2x16x32xf32> to vector<2x1x32xf32>
    %363 = vector.extract_strided_slice %350 {offsets = [0, 12, 0], sizes = [2, 1, 32], strides = [1, 1, 1]} : vector<2x16x32xf32> to vector<2x1x32xf32>
    %364 = vector.extract_strided_slice %350 {offsets = [0, 13, 0], sizes = [2, 1, 32], strides = [1, 1, 1]} : vector<2x16x32xf32> to vector<2x1x32xf32>
    %365 = vector.extract_strided_slice %350 {offsets = [0, 14, 0], sizes = [2, 1, 32], strides = [1, 1, 1]} : vector<2x16x32xf32> to vector<2x1x32xf32>
    %366 = vector.extract_strided_slice %350 {offsets = [0, 15, 0], sizes = [2, 1, 32], strides = [1, 1, 1]} : vector<2x16x32xf32> to vector<2x1x32xf32>
    %367 = tpu.concatenate %351, %352, %353, %354, %355, %356, %357, %358, %359, %360, %361, %362, %363, %364, %365, %366 in 2 : vector<2x1x32xf32>, vector<2x1x32xf32>, vector<2x1x32xf32>, vector<2x1x32xf32>, vector<2x1x32xf32>, vector<2x1x32xf32>, vector<2x1x32xf32>, vector<2x1x32xf32>, vector<2x1x32xf32>, vector<2x1x32xf32>, vector<2x1x32xf32>, vector<2x1x32xf32>, vector<2x1x32xf32>, vector<2x1x32xf32>, vector<2x1x32xf32>, vector<2x1x32xf32> -> vector<2x1x512xf32>
    %c0_41 = arith.constant 0 : index
    %c0_42 = arith.constant 0 : index
    %c0_43 = arith.constant 0 : index
    %368 = vector.load %arg5[%c0_41, %c0_42, %c0_43] : memref<2x1x512xf32, #tpu.memory_space<vmem>>, vector<2x1x512xf32>
    tpu.vector_store %arg5[%c0_41, %c0_42, %c0_43], %367 {strides = array<i32>} : memref<2x1x512xf32, #tpu.memory_space<vmem>>, vector<2x1x512xf32>,
    return
  }
  func.func @transform_0(%arg0: i32) -> (i32, i32, i32) {
    %c0_i32 = arith.constant 0 : i32
    %c0_i32_0 = arith.constant 0 : i32
    %c0_i32_1 = arith.constant 0 : i32
    return %arg0, %c0_i32, %c0_i32_0 : i32, i32, i32
  }
  func.func @transform_1(%arg0: i32) -> (i32, i32, i32) {
    %c0_i32 = arith.constant 0 : i32
    %c0_i32_0 = arith.constant 0 : i32
    %c0_i32_1 = arith.constant 0 : i32
    return %arg0, %c0_i32, %c0_i32_0 : i32, i32, i32
  }
  func.func @transform_2(%arg0: i32) -> (i32, i32) {
    %c0_i32 = arith.constant 0 : i32
    %c0_i32_0 = arith.constant 0 : i32
    %c0_i32_1 = arith.constant 0 : i32
    return %c0_i32, %c0_i32_0 : i32, i32
  }
  func.func @transform_3(%arg0: i32) -> (i32, i32) {
    %c0_i32 = arith.constant 0 : i32
    %c0_i32_0 = arith.constant 0 : i32
    %c0_i32_1 = arith.constant 0 : i32
    return %c0_i32, %c0_i32_0 : i32, i32
  }
  func.func @transform_4(%arg0: i32) -> (i32, i32, i32) {
    %c0_i32 = arith.constant 0 : i32
    %c0_i32_0 = arith.constant 0 : i32
    %c0_i32_1 = arith.constant 0 : i32
    return %arg0, %c0_i32, %c0_i32_0 : i32, i32, i32
  }
}

</mosaic_0001>

<bundles_post_ra>
// kernel: tpu_custom_call.1
= control target key start
LH: loop header
LB: loop body
LE: loop exit
PB: predicated region body
PF: predicated region fallthrough
CT: control target
= control target key end

     0   :  { %9 = vsyncpa [#allocation3], 0  ;;  %s6028_s0 = inlined_call_operand.hbm [shape: f32[2,16,32], index: 0, kind: input, shape index: {}]   ;;  %s6029_s1 = inlined_call_operand.hbm [shape: f32[2,8,32], index: 1, kind: input, shape index: {}]   ;;  %s6030_s2 = inlined_call_operand.hbm [shape: bf16[64,512], index: 2, kind: input, shape index: {}]   ;;  %s6031_s3 = inlined_call_operand.hbm [shape: f32[8,128], index: 3, kind: input, shape index: {}]   ;;  %s6032_s4 = inlined_call_operand.hbm [shape: f32[2,1,512], index: 4, kind: output, shape index: {}]  }
   0x1   :  { %10 = vsyncpa [#allocation6], 0 }
   0x2   :  { %11 = vsyncpa [#allocation9], 0 }
   0x3   :  { %12 = vsyncpa [#allocation4], 0  ;;  %s30_s17 = sshll.u32 %s6029_s1, 4  ;;  %s4481_s18 = smov [#allocation5]   ;;  %s31_s17 = int_to_ptr.hbm [resolvable:$true] %s30_s17 }
   0x4   :  { %s32_s19 = sshll.u32 %s4481_s18, 4  ;;  %s17_s22 = sshll.u32 %s6028_s0, 4  ;;  %s33_s19 = int_to_ptr.vmem [resolvable:$true] %s32_s19  ;;  %s18_s22 = int_to_ptr.hbm [resolvable:$true] %s17_s22 }
   0x5   :  { %s4482_s23 = smov 128   ;;  %s4483_s24 = smov 8  }
   0x6   :  { %38 = dma.hbm_to_vmem [thread:$0]  %s31_s17, 256, %s33_s19, [#allocation6], %s4482_s23, %s4482_s23, %s4483_s24  }
   0x7   :  { %s4484_s25 = smov [#allocation2]   ;;  %s43_s29 = sshll.u32 %s6030_s2, 4  ;;  %s44_s29 = int_to_ptr.hbm [resolvable:$true] %s43_s29 }
   0x8   :  { %s19_s26 = sshll.u32 %s4484_s25, 4  ;;  %s4485_s1 = smov [#allocation7]   ;;  %s20_s26 = int_to_ptr.vmem [resolvable:$true] %s19_s26 }
   0x9   :  { %25 = dma.hbm_to_vmem [thread:$0]  %s18_s22, 512, %s20_s26, [#allocation3], %s4482_s23, %s4482_s23, %s4483_s24  }
   0xa   :  { %s45_s30 = sshll.u32 %s4485_s1, 4  ;;  %s57_s6 = sshll.u32 %s6031_s3, 4  ;;  %s46_s30 = int_to_ptr.vmem [resolvable:$true] %s45_s30  ;;  %s58_s6 = int_to_ptr.hbm [resolvable:$true] %s57_s6 }
   0xb   :  { %s4486_s7 = smov 256   ;;  %s4487_s8 = smov 16  }
   0xc   :  { %51 = dma.hbm_to_vmem [thread:$0]  %s44_s29, 2048, %s46_s30, [#allocation6], %s4486_s7, %s4486_s7, %s4487_s8  }
   0xd   :  { %s4488_s9 = smov [#allocation8]  }
   0xe   :  { %s59_s10 = sshll.u32 %s4488_s9, 4  ;;  %s60_s10 = int_to_ptr.vmem [resolvable:$true] %s59_s10 }
   0xf   :  { %62 = dma.hbm_to_vmem [thread:$0]  %s58_s6, 128, %s60_s10, [#allocation9]  }
  0x10   :  { %4473 = dma.done.wait [#allocation3], 512  }
  0x11   :  { %4474 = vsyncadd [#allocation3], 4294966784 }
  0x12   :  { %4475 = dma.done.wait [#allocation6], 2304  }
  0x13   :  { %4476 = vsyncadd [#allocation6], 4294964992 }
  0x14   :  { %4477 = dma.done.wait [#allocation9], 128  }
  0x15   :  { %4478 = vsyncadd [#allocation9], 4294967168  ;;  %v3777_v0 = vld [vmem:[#allocation7 + $0x20] sm:$0xf]  ;;  %v3894_v1 = vld [vmem:[#allocation7 + $0x2c] sm:$0xf0] }
  0x16   :  { %v3773_v2 = vld [vmem:[#allocation7] sm:$0xf]  ;;  %v4546_v3 = vor.u32 %v3894_v1, %v3777_v0  ;;  %v3890_v4 = vld [vmem:[#allocation7 + $0xc] sm:$0xf0]  ;;  %v94_v7 = vld [vmem:[#allocation2 + $0x8] sm:$0xff]  ;;  %vm114_vm0 = vcmask 261120  }
  0x17   :  { %v93_v5 = vld [vmem:[#allocation2] sm:$0xff]  ;;  %v4550_v6 = vor.u32 %v3890_v4, %v3773_v2  ;;  %v95_v8 = vld [vmem:[#allocation2 + $0x10] sm:$0xff]  ;;  %v96_v9 = vld [vmem:[#allocation2 + $0x18] sm:$0xff]  ;;  %s4489_s2 = smov 116   ;;  %s4490_s3 = smov 120   ;;  %vm209_vm1 = vcmask 31744  }
  0x18   :  { %127 = vmatpush.bf16.msra.mxu0 %v4546_v3  ;;  %3898 = vmatpush.bf16.msra.mxu2 %v4546_v3  ;;  %v99_v10 = vpack.c.bf16 %v94_v7, %v93_v5  ;;  %v100_v11 = vpack.c.bf16 %v96_v9, %v95_v8  ;;  %v92_v12 = vld [vmem:[#allocation8] sm:$0xff]  ;;  %s4491_s11 = smov 124   ;;  %s4492_s12 = smov 108   ;;  %vm637_vm2 = vcmask 130048   ;;  %vm1538_vm3 = vcmask 64512  }
  0x19   :  { %v4556_v13 = vperm.slane %v92_v12, 0  ;;  %s4493_s13 = smov 104   ;;  %s4494_s14 = smov 112   ;;  %vm1543_vm4 = vcmask 97280   ;;  %vm1552_vm5 = vcmask 162816   ;;  %vm1557_vm6 = vcmask 195584  }
  0x1a   :  { %s4495_s15 = smov 100   ;;  %s4496_s16 = smov 96   ;;  %vm1562_vm7 = vcmask 228352  }
  0x1b   :  { %s4497_s17 = smov 64   ;;  %s4498_s18 = smov 12  }
  0x1c   :  { %128 = vmatpush.bf16.msra.mxu0 %v4550_v6  ;;  %3899 = vmatpush.bf16.msra.mxu2 %v4550_v6  ;;  %s4499_s19 = smov 4   ;;  %s4500_s20 = smov 24  }
  0x1d   :  { %s4501_s21 = smov 20   ;;  %s4502_s22 = smov 28  }
  0x1e   :  { %s4503_s23 = smov 32   ;;  %s3756_s28 = sshll.u32 %s6032_s4, 4  ;;  %s3757_s28 = int_to_ptr.hbm [resolvable:$true] %s3756_s28 }
  0x1f   :  { %3779 = vmatmul.msk.bf16.vlgmr.msra.gmra.mxu0 %vm114_vm0, %v99_v10  ;;  %3780 = vmatmul.msk.bf16.vlgmr.msra.gmra.mxu2 %vm114_vm0, %v100_v11 }
  0x9c   :  { %v130_v14 = vpop.f32.mrf.mxu0 }
  0x9d   :  { %v131_v15 = vadd.f32 %v130_v14, %v4556_v13 }
  0x9f   :  { %v140_v16 = vpack.c.bf16 %v131_v15, %v131_v15 }
  0xa1   :  { %164 = vrot.lane.b32.xlu2 %v140_v16, %s4489_s2  ;;  %156 = vrot.lane.b32.xlu1 %v140_v16, %s4490_s3  ;;  %v204_v27 = vunpack.c.l.b16 %v140_v16 }
  0xa2   :  { %148 = vrot.lane.b32.xlu0 %v140_v16, %s4491_s11  ;;  %v135_v17 = vpop.f32.mrf.mxu2 }
  0xa3   :  { %v136_v18 = vadd.f32 %v135_v17, %v4556_v13 }
  0xa4   :  { %v132_v20 = vpop.f32.mrf.mxu0 }
  0xa5   :  { %v4566_v19 = vpack.c.bf16 %v136_v18, %v136_v18  ;;  %v133_v21 = vadd.f32 %v132_v20, %v4556_v13 }
  0xa7   :  { %v141_v22 = vpack.c.bf16 %v133_v21, %v133_v21  ;;  %v405_v15 = vunpack.c.l.b16 %v4566_v19 }
  0xa9   :  { %180 = vrot.lane.b32.xlu2 %v140_v16, %s4492_s12  ;;  %188 = vrot.lane.b32.xlu1 %v140_v16, %s4493_s13  ;;  %v205_v26 = vunpack.c.l.b16 %v141_v22 }
  0xaa   :  { %172 = vrot.lane.b32.xlu0 %v140_v16, %s4494_s14  ;;  %v137_v23 = vpop.f32.mrf.mxu2 }
  0xab   :  { %v138_v24 = vadd.f32 %v137_v23, %v4556_v13  ;;  %v4594_v28 = vpack.c.b16 %v205_v26, %v204_v27 }
  0xad   :  { %v4587_v25 = vpack.c.bf16 %v138_v24, %v138_v24 }
  0xb1   :  { %152 = vrot.lane.b32.xlu2 %v4566_v19, %s4491_s11  ;;  %160 = vrot.lane.b32.xlu1 %v4566_v19, %s4490_s3 }
  0xb2   :  { %196 = vrot.lane.b32.xlu0 %v140_v16, %s4495_s15  ;;  %v406_v16 = vunpack.c.l.b16 %v4587_v25 }
  0xb4   :  { %v4655_v20 = vpack.c.b16 %v406_v16, %v405_v15 }
  0xb9   :  { %176 = vrot.lane.b32.xlu2 %v4566_v19, %s4494_s14  ;;  %184 = vrot.lane.b32.xlu1 %v4566_v19, %s4492_s12 }
  0xba   :  { %150 = vrot.lane.b32.xlu0 %v141_v22, %s4491_s11 }
  0xc1   :  { %166 = vrot.lane.b32.xlu2 %v141_v22, %s4489_s2  ;;  %158 = vrot.lane.b32.xlu1 %v141_v22, %s4490_s3 }
  0xc2   :  { %168 = vrot.lane.b32.xlu0 %v4566_v19, %s4489_s2 }
  0xc9   :  { %190 = vrot.lane.b32.xlu2 %v141_v22, %s4493_s13  ;;  %174 = vrot.lane.b32.xlu1 %v141_v22, %s4494_s14 }
  0xca   :  { %182 = vrot.lane.b32.xlu0 %v141_v22, %s4492_s12 }
  0xd1   :  { %162 = vrot.lane.b32.xlu2 %v4587_v25, %s4490_s3  ;;  %198 = vrot.lane.b32.xlu1 %v141_v22, %s4495_s15 }
  0xd2   :  { %154 = vrot.lane.b32.xlu0 %v4587_v25, %s4491_s11 }
  0xd9   :  { %186 = vrot.lane.b32.xlu2 %v4587_v25, %s4492_s12  ;;  %207 = vrot.lane.b32.xlu1 %v4594_v28, %s4496_s16 }
  0xda   :  { %178 = vrot.lane.b32.xlu0 %v4587_v25, %s4494_s14 }
  0xe1   :  { %170 = vrot.lane.b32.xlu1 %v4587_v25, %s4489_s2 }
  0xe9   :  { %194 = vrot.lane.b32.xlu1 %v4587_v25, %s4493_s13 }
  0xfb   :  { %v165_v29 = vpop.permute.xlu2 %164 }
  0xfc   :  { %v280_v60 = vunpack.c.l.b16 %v165_v29 }
 0x103   :  { %v181_v32 = vpop.permute.xlu2 %180 }
 0x104   :  { %v330_v62 = vunpack.c.l.b16 %v181_v32 }
 0x10b   :  { %v153_v35 = vpop.permute.xlu2 %152 }
 0x10c   :  { %v430_v8 = vunpack.c.l.b16 %v153_v35 }
 0x113   :  { %v157_v30 = vpop.permute.xlu1 %156  ;;  %v4606_v38 = vpop.permute.xlu2 %176 }
 0x114   :  { %v149_v31 = vpop.permute.xlu0 %148  ;;  %v255_v45 = vunpack.c.l.b16 %v157_v30 }
 0x115   :  { %v230_v41 = vunpack.c.l.b16 %v149_v31 }
 0x11b   :  { %v189_v33 = vpop.permute.xlu1 %188  ;;  %v167_v48 = vpop.permute.xlu2 %166 }
 0x11c   :  { %v173_v34 = vpop.permute.xlu0 %172  ;;  %v281_v56 = vunpack.c.l.b16 %v167_v48  ;;  %v355_v61 = vunpack.c.l.b16 %v189_v33 }
 0x11d   :  { %v305_v51 = vunpack.c.l.b16 %v173_v34 }
 0x11e   :  { %v4628_v63 = vpack.c.b16 %v281_v56, %v280_v60 }
 0x123   :  { %v161_v36 = vpop.permute.xlu1 %160  ;;  %v191_v55 = vpop.permute.xlu2 %190 }
 0x124   :  { %v197_v37 = vpop.permute.xlu0 %196  ;;  %v356_v57 = vunpack.c.l.b16 %v191_v55  ;;  %v455_v18 = vunpack.c.l.b16 %v161_v36 }
 0x125   :  { %v380_v10 = vunpack.c.l.b16 %v197_v37 }
 0x126   :  { %v4630_v0 = vpack.c.b16 %v356_v57, %v355_v61 }
 0x12b   :  { %v4608_v39 = vpop.permute.xlu1 %184  ;;  %v163_v14 = vpop.permute.xlu2 %162 }
 0x12c   :  { %v151_v40 = vpop.permute.xlu0 %150  ;;  %v456_v17 = vunpack.c.l.b16 %v163_v14  ;;  %v530_v31 = vunpack.c.l.b16 %v4608_v39 }
 0x12d   :  { %v231_v42 = vunpack.c.l.b16 %v151_v40 }
 0x12e   :  { %v4657_v21 = vpack.c.b16 %v456_v17, %v455_v18 }
 0x12f   :  { %v4610_v43 = vpack.c.b16 %v231_v42, %v230_v41 }
 0x131   :  { %233 = vrot.lane.b32.xlu2 %v4610_v43, %s4496_s16 }
 0x133   :  { %v159_v44 = vpop.permute.xlu1 %158  ;;  %v187_v29 = vpop.permute.xlu2 %186 }
 0x134   :  { %v256_v46 = vunpack.c.l.b16 %v159_v44  ;;  %v169_v47 = vpop.permute.xlu0 %168  ;;  %v531_v30 = vunpack.c.l.b16 %v187_v29 }
 0x135   :  { %v480_v26 = vunpack.c.l.b16 %v169_v47 }
 0x136   :  { %v4614_v49 = vpack.c.b16 %v256_v46, %v255_v45  ;;  %v4683_v32 = vpack.c.b16 %v531_v30, %v530_v31 }
 0x138   :  { %258 = vrot.lane.b32.xlu0 %v4614_v49, %s4496_s16 }
 0x139   :  { %200 = vrot.lane.b32.xlu2 %v4566_v19, %s4495_s15 }
 0x13b   :  { %v175_v50 = vpop.permute.xlu1 %174 }
 0x13c   :  { %v306_v52 = vunpack.c.l.b16 %v175_v50  ;;  %v183_v53 = vpop.permute.xlu0 %182 }
 0x13d   :  { %v331_v58 = vunpack.c.l.b16 %v183_v53 }
 0x13e   :  { %v4620_v54 = vpack.c.b16 %v306_v52, %v305_v51 }
 0x13f   :  { %v4632_v1 = vpack.c.b16 %v331_v58, %v330_v62 }
 0x140   :  { %192 = vrot.lane.b32.xlu0 %v4566_v19, %s4493_s13  ;;  %308 = vrot.lane.b32.xlu1 %v4620_v54, %s4496_s16 }
 0x141   :  { %1027 = vrot.lane.b32.xlu2 %v4594_v28, %s4497_s17 }
 0x143   :  { %v199_v59 = vpop.permute.xlu1 %198 }
 0x144   :  { %v155_v2 = vpop.permute.xlu0 %154  ;;  %v381_v5 = vunpack.c.l.b16 %v199_v59 }
 0x145   :  { %v431_v4 = vunpack.c.l.b16 %v155_v2 }
 0x146   :  { %v4643_v12 = vpack.c.b16 %v381_v5, %v380_v10 }
 0x147   :  { %v4641_v11 = vpack.c.b16 %v431_v4, %v430_v8 }
 0x148   :  { %283 = vrot.lane.b32.xlu0 %v4628_v63, %s4496_s16  ;;  %358 = vrot.lane.b32.xlu1 %v4630_v0, %s4496_s16 }
 0x149   :  { %333 = vrot.lane.b32.xlu2 %v4632_v1, %s4496_s16 }
 0x14b   :  { %v208_v7 = vpop.permute.xlu1 %207 }
 0x14c   :  { %v214_v9 = vsel %vm209_vm1, %v208_v7, 0  ;;  %v179_v22 = vpop.permute.xlu0 %178 }
 0x14d   :  { %223 = vmatpush.bf16.xpose.msra.mxu1 %v214_v9  ;;  %v506_v19 = vunpack.c.l.b16 %v179_v22 }
 0x150   :  { %202 = vrot.lane.b32.xlu0 %v4587_v25, %s4495_s15  ;;  %433 = vrot.lane.b32.xlu1 %v4641_v11, %s4496_s16  ;;  %v505_v25 = vunpack.c.l.b16 %v4606_v38 }
 0x151   :  { %383 = vrot.lane.b32.xlu2 %v4643_v12, %s4496_s16 }
 0x152   :  { %v4666_v27 = vpack.c.b16 %v506_v19, %v505_v25 }
 0x153   :  { %v171_v23 = vpop.permute.xlu1 %170 }
 0x154   :  { %3781 = vmatmul.msk.bf16.vlgmr.msra.gmra.mxu1 %vm209_vm1, %v4594_v28  ;;  %v481_v24 = vunpack.c.l.b16 %v171_v23 }
 0x156   :  { %v4668_v28 = vpack.c.b16 %v481_v24, %v480_v26 }
 0x158   :  { %408 = vrot.lane.b32.xlu0 %v4655_v20, %s4496_s16  ;;  %1102 = vrot.lane.b32.xlu1 %v4628_v63, %s4497_s17 }
 0x159   :  { %458 = vrot.lane.b32.xlu2 %v4657_v21, %s4496_s16 }
 0x15b   :  { %v195_v38 = vpop.permute.xlu1 %194 }
 0x15c   :  { %v556_v46 = vunpack.c.l.b16 %v195_v38 }
 0x160   :  { %508 = vrot.lane.b32.xlu1 %v4666_v27, %s4496_s16  ;;  %483 = vrot.lane.b32.xlu0 %v4668_v28, %s4496_s16 }
 0x161   :  { %1077 = vrot.lane.b32.xlu2 %v4614_v49, %s4497_s17 }
 0x168   :  { %1177 = vrot.lane.b32.xlu1 %v4630_v0, %s4497_s17  ;;  %1052 = vrot.lane.b32.xlu0 %v4610_v43, %s4497_s17 }
 0x169   :  { %1127 = vrot.lane.b32.xlu2 %v4620_v54, %s4497_s17 }
 0x170   :  { %1202 = vrot.lane.b32.xlu1 %v4643_v12, %s4497_s17 }
 0x171   :  { %533 = vrot.lane.b32.xlu2 %v4683_v32, %s4496_s16 }
 0x179   :  { %1252 = vrot.lane.b32.xlu2 %v4641_v11, %s4497_s17 }
 0x18b   :  { %v234_v33 = vpop.permute.xlu2 %233 }
 0x18c   :  { %v239_v34 = vsel %vm209_vm1, %v234_v33, 0 }
 0x18d   :  { %248 = vmatpush.bf16.xpose.msrb.mxu2 %v239_v34 }
 0x193   :  { %v201_v35 = vpop.permute.xlu2 %200 }
 0x194   :  { %3782 = vmatmul.msk.bf16.vlgmr.msrb.gmra.mxu2 %vm209_vm1, %v4610_v43  ;;  %v580_v60 = vunpack.c.l.b16 %v201_v35 }
 0x19b   :  { %v4694_v36 = vpop.permute.xlu2 %1027 }
 0x1a3   :  { %v334_v37 = vpop.permute.xlu2 %333 }
 0x1a4   :  { %v339_v42 = vsel %vm209_vm1, %v334_v37, 0 }
 0x1aa   :  { %v259_v39 = vpop.permute.xlu0 %258 }
 0x1ab   :  { %v384_v40 = vpop.permute.xlu2 %383  ;;  %v264_v41 = vsel %vm209_vm1, %v259_v39, 0 }
 0x1ac   :  { %273 = vmatpush.bf16.xpose.msra.mxu3 %v264_v41  ;;  %v389_v57 = vsel %vm209_vm1, %v384_v40, 0 }
 0x1b2   :  { %v193_v44 = vpop.permute.xlu0 %192  ;;  %v309_v45 = vpop.permute.xlu1 %308 }
 0x1b3   :  { %v555_v47 = vunpack.c.l.b16 %v193_v44  ;;  %v459_v48 = vpop.permute.xlu2 %458  ;;  %v314_v50 = vsel %vm209_vm1, %v309_v45, 0  ;;  %3783 = vmatmul.msk.bf16.vlgmr.msra.gmra.mxu3 %vm209_vm1, %v4614_v49 }
 0x1b4   :  { %348 = vmatpush.bf16.xpose.msrb.mxu3 %v339_v42  ;;  %323 = vmatpush.bf16.xpose.msra.mxu2 %v314_v50  ;;  %v464_v49 = vsel %vm209_vm1, %v459_v48, 0 }
 0x1b5   :  { %v4701_v43 = vpack.c.b16 %v556_v46, %v555_v47 }
 0x1b7   :  { %558 = vrot.lane.b32.xlu0 %v4701_v43, %s4496_s16 }
 0x1ba   :  { %v284_v51 = vpop.permute.xlu0 %283  ;;  %v359_v52 = vpop.permute.xlu1 %358 }
 0x1bb   :  { %v1078_v53 = vpop.permute.xlu2 %1077  ;;  %3785 = vmatmul.msk.bf16.vlgmr.msra.gmra.mxu2 %vm209_vm1, %v4620_v54  ;;  %v289_v55 = vsel %vm209_vm1, %v284_v51, 0  ;;  %v364_v56 = vsel %vm209_vm1, %v359_v52, 0 }
 0x1bc   :  { %298 = vmatpush.bf16.xpose.msrb.mxu1 %v289_v55  ;;  %373 = vmatpush.bf16.xpose.msrb.mxu0 %v364_v56 }
 0x1bf   :  { %1152 = vrot.lane.b32.xlu0 %v4632_v1, %s4497_s17 }
 0x1c2   :  { %v203_v58 = vpop.permute.xlu0 %202  ;;  %v434_v59 = vpop.permute.xlu1 %433 }
 0x1c3   :  { %v581_v61 = vunpack.c.l.b16 %v203_v58  ;;  %v1128_v54 = vpop.permute.xlu2 %1127  ;;  %v439_v62 = vsel %vm209_vm1, %v434_v59, 0  ;;  %3784 = vmatmul.msk.bf16.vlgmr.msrb.gmra.mxu1 %vm209_vm1, %v4628_v63  ;;  %3786 = vmatmul.msk.bf16.vlgmr.msrb.gmra.mxu3 %vm209_vm1, %v4632_v1 }
 0x1c4   :  { %398 = vmatpush.bf16.xpose.msra.mxu1 %v389_v57  ;;  %473 = vmatpush.bf16.xpose.msra.mxu0 %v464_v49 }
 0x1c5   :  { %3787 = vmatmul.msk.bf16.vlgmr.msrb.gmra.mxu0 %vm209_vm1, %v4630_v0  ;;  %448 = vmatpush.bf16.xpose.msra.mxu3 %v439_v62  ;;  %v4720_v2 = vpack.c.b16 %v581_v61, %v580_v60 }
 0x1c7   :  { %583 = vrot.lane.b32.xlu1 %v4720_v2, %s4496_s16  ;;  %1227 = vrot.lane.b32.xlu0 %v4655_v20, %s4497_s17 }
 0x1ca   :  { %v409_v4 = vpop.permute.xlu0 %408  ;;  %v1103_v5 = vpop.permute.xlu1 %1102 }
 0x1cb   :  { %v414_v7 = vsel %vm209_vm1, %v409_v4, 0  ;;  %v534_v63 = vpop.permute.xlu2 %533 }
 0x1cc   :  { %v539_v8 = vsel %vm209_vm1, %v534_v63, 0  ;;  %423 = vmatpush.bf16.xpose.msrb.mxu2 %v414_v7 }
 0x1cd   :  { %548 = vmatpush.bf16.xpose.msrb.mxu3 %v539_v8 }
 0x1cf   :  { %1277 = vrot.lane.b32.xlu1 %v4657_v21, %s4497_s17 }
 0x1d1   :  { %v225_v0 = vpop.f32.mrf.mxu1 }
 0x1d2   :  { %v4730_v1 = vmul.f32 0.5, %v225_v0  ;;  %v484_v9 = vpop.permute.xlu0 %483  ;;  %v509_v10 = vpop.permute.xlu1 %508 }
 0x1d3   :  { %v489_v14 = vsel %vm209_vm1, %v484_v9, 0  ;;  %v514_v15 = vsel %vm209_vm1, %v509_v10, 0  ;;  %3788 = vmatmul.msk.bf16.vlgmr.msra.gmra.mxu1 %vm209_vm1, %v4643_v12  ;;  %3789 = vmatmul.msk.bf16.vlgmr.msrb.gmra.mxu2 %vm209_vm1, %v4655_v20  ;;  %v4765_v35 = vpop.permute.xlu2 %1252 }
 0x1d4   :  { %3790 = vmatmul.msk.bf16.vlgmr.msra.gmra.mxu3 %vm209_vm1, %v4641_v11  ;;  %v638_v16 = vsel %vm637_vm2, %v4730_v1, -inf  ;;  %498 = vmatpush.bf16.xpose.msrb.mxu1 %v489_v14 }
 0x1d5   :  { %3791 = vmatmul.msk.bf16.vlgmr.msra.gmra.mxu0 %vm209_vm1, %v4657_v21  ;;  %523 = vmatpush.bf16.xpose.msra.mxu2 %v514_v15 }
 0x1d6   :  { %639 = vmax.xlane.f32.xlu2 %v638_v16 }
 0x1d9   :  { %v227_v11 = vpop.f32.mrf.mxu1 }
 0x1da   :  { %v1053_v17 = vpop.permute.xlu0 %1052  ;;  %v4751_v12 = vmul.f32 0.5, %v227_v11  ;;  %v1178_v20 = vpop.permute.xlu1 %1177 }
 0x1db   :  { %1065 = vmatpush.bf16.msra.mxu3 %v1053_v17 }
 0x1dc   :  { %v641_v18 = vsel %vm637_vm2, %v4751_v12, -inf }
 0x1dd   :  { %1040 = vmatpush.bf16.msrb.mxu2 %v4694_v36 }
 0x1e2   :  { %v1203_v23 = vpop.permute.xlu1 %1202 }
 0x1e3   :  { %3792 = vmatmul.msk.bf16.vlgmr.msrb.gmra.mxu1 %vm209_vm1, %v4668_v28  ;;  %3793 = vmatmul.msk.bf16.vlgmr.msra.gmra.mxu2 %vm209_vm1, %v4666_v27 }
 0x1e4   :  { %3794 = vmatmul.msk.bf16.vlgmr.msrb.gmra.mxu3 %vm209_vm1, %v4683_v32  ;;  %1140 = vmatpush.bf16.msra.mxu2 %v1128_v54 }
 0x1f1   :  { %642 = vmax.xlane.f32.xlu0 %v641_v18 }
 0x217   :  { %v250_v41 = vpop.f32.mrf.mxu2 }
 0x218   :  { %v4784_v51 = vmul.f32 0.5, %v250_v41 }
 0x21a   :  { %v644_v59 = vsel %vm637_vm2, %v4784_v51, -inf }
 0x21f   :  { %v252_v57 = vpop.f32.mrf.mxu2 }
 0x220   :  { %v4812_v14 = vmul.f32 0.5, %v252_v57 }
 0x222   :  { %v647_v18 = vsel %vm637_vm2, %v4812_v14, -inf }
 0x229   :  { %v559_v21 = vpop.permute.xlu0 %558 }
 0x22a   :  { %v564_v22 = vsel %vm209_vm1, %v559_v21, 0 }
 0x22b   :  { %573 = vmatpush.bf16.xpose.msrb.mxu0 %v564_v22 }
 0x231   :  { %v1153_v19 = vpop.permute.xlu0 %1152 }
 0x232   :  { %3795 = vmatmul.msk.bf16.vlgmr.msrb.gmra.mxu0 %vm209_vm1, %v4701_v43  ;;  %1165 = vmatpush.bf16.msrb.mxu3 %v1153_v19 }
 0x233   :  { %1090 = vmatpush.bf16.msra.mxu0 %v1078_v53 }
 0x236   :  { %v275_v24 = vpop.f32.mrf.mxu3 }
 0x237   :  { %1190 = vmatpush.bf16.msrb.mxu0 %v1178_v20  ;;  %v4758_v25 = vmul.f32 0.5, %v275_v24 }
 0x239   :  { %v584_v26 = vpop.permute.xlu1 %583  ;;  %v650_v29 = vsel %vm637_vm2, %v4758_v25, -inf  ;;  %v4806_v0 = vpop.permute.xlu0 %1227 }
 0x23a   :  { %v589_v30 = vsel %vm209_vm1, %v584_v26, 0  ;;  %651 = vmax.xlane.f32.xlu2 %v650_v29 }
 0x23b   :  { %598 = vmatpush.bf16.xpose.msra.mxu1 %v589_v30 }
 0x23e   :  { %v277_v31 = vpop.f32.mrf.mxu3  ;;  %v325_v7 = vpop.f32.mrf.mxu2 }
 0x23f   :  { %v4763_v33 = vmul.f32 0.5, %v277_v31 }
 0x240   :  { %v300_v34 = vpop.f32.mrf.mxu1 }
 0x241   :  { %v4767_v36 = vmul.f32 0.5, %v300_v34  ;;  %v653_v38 = vsel %vm637_vm2, %v4763_v33, -inf  ;;  %v4855_v57 = vpop.permute.xlu1 %1277 }
 0x242   :  { %v375_v37 = vpop.f32.mrf.mxu0  ;;  %654 = vmax.xlane.f32.xlu0 %v653_v38  ;;  %3796 = vmatmul.msk.bf16.vlgmr.msra.gmra.mxu1 %vm209_vm1, %v4720_v2  ;;  %v4837_v38 = vmul.f32 0.5, %v325_v7 }
 0x243   :  { %1115 = vmatpush.bf16.msrb.mxu1 %v1103_v5  ;;  %v656_v39 = vsel %vm637_vm2, %v4767_v36, -inf  ;;  %v4775_v40 = vmul.f32 0.5, %v375_v37 }
 0x244   :  { %657 = vmax.xlane.f32.xlu1 %v656_v39 }
 0x245   :  { %v674_v50 = vsel %vm637_vm2, %v4775_v40, -inf }
 0x246   :  { %v350_v54 = vpop.f32.mrf.mxu3  ;;  %v327_v17 = vpop.f32.mrf.mxu2 }
 0x247   :  { %1215 = vmatpush.bf16.msra.mxu1 %v1203_v23  ;;  %v4819_v21 = vmul.f32 0.5, %v327_v17  ;;  %v4821_v23 = vmul.f32 0.5, %v350_v54 }
 0x248   :  { %v302_v42 = vpop.f32.mrf.mxu1 }
 0x249   :  { %v640_v44 = vpop.xlane.xlu2 %639  ;;  %v4777_v45 = vmul.f32 0.5, %v302_v42  ;;  %v665_v19 = vsel %vm637_vm2, %v4819_v21, -inf  ;;  %v668_v26 = vsel %vm637_vm2, %v4821_v23, -inf }
 0x24a   :  { %v377_v46 = vpop.f32.mrf.mxu0  ;;  %v734_v47 = vsub.f32 %v4730_v1, %v640_v44  ;;  %v662_v44 = vsel %vm637_vm2, %v4837_v38, -inf }
 0x24b   :  { %v659_v48 = vsel %vm637_vm2, %v4777_v45, -inf  ;;  %v4786_v53 = vmul.f32 0.5, %v377_v46 }
 0x24c   :  { %660 = vmax.xlane.f32.xlu2 %v659_v48  ;;  %675 = vmax.xlane.f32.xlu1 %v674_v50  ;;  %v766_v52 = vmul.f32 1.442695, %v734_v47 }
 0x24d   :  { %v677_v60 = vsel %vm637_vm2, %v4786_v53, -inf }
 0x24e   :  { %4065 = vpow2.f32 %v766_v52  ;;  %v352_v15 = vpop.f32.mrf.mxu3 }
 0x24f   :  { %v4845_v46 = vmul.f32 0.5, %v352_v15 }
 0x250   :  { %v400_v55 = vpop.f32.mrf.mxu1 }
 0x251   :  { %v4788_v56 = vmul.f32 0.5, %v400_v55  ;;  %v671_v52 = vsel %vm637_vm2, %v4845_v46, -inf }
 0x252   :  { %v475_v49 = vpop.f32.mrf.mxu0 }
 0x253   :  { %v680_v58 = vsel %vm637_vm2, %v4788_v56, -inf  ;;  %v4796_v61 = vmul.f32 0.5, %v475_v49 }
 0x254   :  { %681 = vmax.xlane.f32.xlu0 %v680_v58  ;;  %645 = vmax.xlane.f32.xlu1 %v644_v59  ;;  %v4798_v4 = vpop.eup %4065 }
 0x255   :  { %678 = vmax.xlane.f32.xlu2 %v677_v60  ;;  %v698_v8 = vsel %vm637_vm2, %v4796_v61, -inf  ;;  %v830_v9 = vsel %vm637_vm2, %v4798_v4, 0.0 }
 0x256   :  { %v425_v41 = vpop.f32.mrf.mxu2 }
 0x257   :  { %v450_v24 = vpop.f32.mrf.mxu3  ;;  %v4841_v42 = vmul.f32 0.5, %v425_v41 }
 0x258   :  { %v402_v62 = vpop.f32.mrf.mxu1 }
 0x259   :  { %v4800_v5 = vmul.f32 0.5, %v402_v62  ;;  %v686_v47 = vsel %vm637_vm2, %v4841_v42, -inf }
 0x25a   :  { %v477_v1 = vpop.f32.mrf.mxu0 }
 0x25b   :  { %v683_v63 = vsel %vm637_vm2, %v4800_v5, -inf  ;;  %v4810_v10 = vmul.f32 0.5, %v477_v1 }
 0x25c   :  { %684 = vmax.xlane.f32.xlu1 %v683_v63  ;;  %699 = vmax.xlane.f32.xlu0 %v698_v8 }
 0x25d   :  { %831 = vadd.xlane.f32.xlu2 %v830_v9  ;;  %v701_v16 = vsel %vm637_vm2, %v4810_v10, -inf }
 0x25e   :  { %v427_v58 = vpop.f32.mrf.mxu2 }
 0x25f   :  { %v452_v48 = vpop.f32.mrf.mxu3 }
 0x260   :  { %v500_v29 = vpop.f32.mrf.mxu1  ;;  %v4849_v50 = vmul.f32 0.5, %v452_v48 }
 0x261   :  { %v4831_v31 = vmul.f32 0.5, %v500_v29 }
 0x262   :  { %v695_v55 = vsel %vm637_vm2, %v4849_v50, -inf }
 0x263   :  { %v704_v39 = vsel %vm637_vm2, %v4831_v31, -inf }
 0x264   :  { %v643_v11 = vpop.xlane.xlu0 %642  ;;  %702 = vmax.xlane.f32.xlu1 %v701_v16 }
 0x265   :  { %v735_v20 = vsub.f32 %v4751_v12, %v643_v11  ;;  %648 = vmax.xlane.f32.xlu2 %v647_v18  ;;  %v4829_v12 = vmul.f32 0.5, %v450_v24  ;;  %v4869_v11 = vmul.f32 0.5, %v427_v58 }
 0x266   :  { %v525_v15 = vpop.f32.mrf.mxu2 }
 0x267   :  { %v768_v22 = vmul.f32 1.442695, %v735_v20  ;;  %v692_v37 = vsel %vm637_vm2, %v4829_v12, -inf  ;;  %v550_v9 = vpop.f32.mrf.mxu3  ;;  %v4871_v18 = vmul.f32 0.5, %v525_v15  ;;  %v689_v29 = vsel %vm637_vm2, %v4869_v11, -inf }
 0x268   :  { %v502_v54 = vpop.f32.mrf.mxu1 }
 0x269   :  { %4067 = vpow2.f32 %v768_v22  ;;  %v4861_v62 = vmul.f32 0.5, %v502_v54 }
 0x26b   :  { %v707_v16 = vsel %vm637_vm2, %v4861_v62, -inf }
 0x26c   :  { %666 = vmax.xlane.f32.xlu1 %v665_v19 }
 0x26d   :  { %669 = vmax.xlane.f32.xlu2 %v668_v26 }
 0x26e   :  { %v527_v41 = vpop.f32.mrf.mxu2 }
 0x26f   :  { %v4827_v30 = vpop.eup %4067 }
 0x270   :  { %v833_v34 = vsel %vm637_vm2, %v4827_v30, 0.0 }
 0x271   :  { %834 = vadd.xlane.f32.xlu0 %v833_v34  ;;  %v710_v34 = vsel %vm637_vm2, %v4871_v18, -inf }
 0x274   :  { %693 = vmax.xlane.f32.xlu1 %v692_v37 }
 0x275   :  { %705 = vmax.xlane.f32.xlu2 %v704_v39  ;;  %v552_v39 = vpop.f32.mrf.mxu3 }
 0x279   :  { %663 = vmax.xlane.f32.xlu0 %v662_v44  ;;  %v4882_v44 = vmul.f32 0.5, %v550_v9 }
 0x27b   :  { %v716_v54 = vsel %vm637_vm2, %v4882_v44, -inf }
 0x27d   :  { %687 = vmax.xlane.f32.xlu2 %v686_v47  ;;  %v4884_v47 = vmul.f32 0.5, %v552_v39 }
 0x281   :  { %672 = vmax.xlane.f32.xlu0 %v671_v52  ;;  %v4886_v52 = vmul.f32 0.5, %v527_v41 }
 0x285   :  { %696 = vmax.xlane.f32.xlu2 %v695_v55 }
 0x2ad   :  { %v652_v7 = vpop.xlane.xlu2 %651 }
 0x2af   :  { %v575_v49 = vpop.f32.mrf.mxu0 }
 0x2b0   :  { %v4857_v59 = vmul.f32 0.5, %v575_v49 }
 0x2b2   :  { %v722_v60 = vsel %vm637_vm2, %v4857_v59, -inf }
 0x2b3   :  { %723 = vmax.xlane.f32.xlu0 %v722_v60 }
 0x2b5   :  { %v655_v48 = vpop.xlane.xlu0 %654 }
 0x2b7   :  { %v577_v63 = vpop.f32.mrf.mxu0  ;;  %v658_v8 = vpop.xlane.xlu1 %657 }
 0x2b8   :  { %v4863_v1 = vmul.f32 0.5, %v577_v63  ;;  %v740_v58 = vsub.f32 %v4767_v36, %v658_v8  ;;  %v719_v63 = vsel %vm637_vm2, %v4884_v47, -inf }
 0x2ba   :  { %v725_v17 = vsel %vm637_vm2, %v4863_v1, -inf  ;;  %v778_v36 = vmul.f32 1.442695, %v740_v58 }
 0x2bb   :  { %708 = vmax.xlane.f32.xlu0 %v707_v16  ;;  %726 = vmax.xlane.f32.xlu1 %v725_v17  ;;  %v713_v16 = vsel %vm637_vm2, %v4886_v52, -inf  ;;  %v738_v17 = vsub.f32 %v4758_v25, %v652_v7 }
 0x2bf   :  { %v661_v20 = vpop.xlane.xlu2 %660  ;;  %v600_v22 = vpop.f32.mrf.mxu1 }
 0x2c0   :  { %v4873_v19 = vmul.f32 0.5, %v600_v22  ;;  %v676_v24 = vpop.xlane.xlu1 %675 }
 0x2c1   :  { %v746_v26 = vsub.f32 %v4775_v40, %v676_v24  ;;  %v774_v24 = vmul.f32 1.442695, %v738_v17 }
 0x2c2   :  { %v728_v37 = vsel %vm637_vm2, %v4873_v19, -inf }
 0x2c3   :  { %690 = vmax.xlane.f32.xlu0 %v689_v29  ;;  %711 = vmax.xlane.f32.xlu1 %v710_v34  ;;  %v790_v40 = vmul.f32 1.442695, %v746_v26 }
 0x2c4   :  { %729 = vmax.xlane.f32.xlu2 %v728_v37  ;;  %v741_v37 = vsub.f32 %v4777_v45, %v661_v20  ;;  %v739_v20 = vsub.f32 %v4763_v33, %v655_v48 }
 0x2c5   :  { %4069 = vpow2.f32 %v790_v40 }
 0x2c7   :  { %v602_v9 = vpop.f32.mrf.mxu1  ;;  %v682_v8 = vpop.xlane.xlu0 %681 }
 0x2c8   :  { %v679_v55 = vpop.xlane.xlu2 %678  ;;  %v646_v49 = vpop.xlane.xlu1 %645  ;;  %v748_v29 = vsub.f32 %v4788_v56, %v682_v8  ;;  %v776_v8 = vmul.f32 1.442695, %v739_v20 }
 0x2c9   :  { %v736_v60 = vsub.f32 %v4784_v51, %v646_v49  ;;  %v4897_v51 = vmul.f32 0.5, %v602_v9  ;;  %v780_v49 = vmul.f32 1.442695, %v741_v37 }
 0x2ca   :  { %v794_v41 = vmul.f32 1.442695, %v748_v29 }
 0x2cb   :  { %v770_v15 = vmul.f32 1.442695, %v736_v60  ;;  %717 = vmax.xlane.f32.xlu0 %v716_v54  ;;  %720 = vmax.xlane.f32.xlu1 %v719_v63  ;;  %v4899_v22 = vpop.eup %4069  ;;  %v731_v34 = vsel %vm637_vm2, %v4897_v51, -inf }
 0x2cc   :  { %714 = vmax.xlane.f32.xlu2 %v713_v16  ;;  %v866_v25 = vsel %vm637_vm2, %v4899_v22, 0.0 }
 0x2cd   :  { %4071 = vpow2.f32 %v770_v15  ;;  %v747_v15 = vsub.f32 %v4786_v53, %v679_v55 }
 0x2ce   :  { %4073 = vpow2.f32 %v778_v36 }
 0x2cf   :  { %4075 = vpow2.f32 %v774_v24  ;;  %v700_v16 = vpop.xlane.xlu0 %699  ;;  %v792_v24 = vmul.f32 1.442695, %v747_v15 }
 0x2d0   :  { %v832_v26 = vpop.xlane.xlu2 %831  ;;  %v685_v39 = vpop.xlane.xlu1 %684  ;;  %4077 = vpow2.f32 %v794_v41  ;;  %v754_v29 = vsub.f32 %v4796_v61, %v700_v16 }
 0x2d1   :  { %v749_v60 = vsub.f32 %v4800_v5, %v685_v39  ;;  %4079 = vpow2.f32 %v780_v49 }
 0x2d2   :  { %v806_v41 = vmul.f32 1.442695, %v754_v29 }
 0x2d3   :  { %732 = vmax.xlane.f32.xlu0 %v731_v34  ;;  %v4906_v7 = vpop.eup %4071  ;;  %v796_v17 = vmul.f32 1.442695, %v749_v60 }
 0x2d4   :  { %867 = vadd.xlane.f32.xlu2 %v866_v25  ;;  %v836_v40 = vsel %vm637_vm2, %v4906_v7, 0.0  ;;  %v4911_v56 = vpop.eup %4073 }
 0x2d5   :  { %837 = vadd.xlane.f32.xlu1 %v836_v40  ;;  %v4915_v63 = vpop.eup %4075  ;;  %v848_v45 = vsel %vm637_vm2, %v4911_v56, 0.0 }
 0x2d6   :  { %v842_v5 = vsel %vm637_vm2, %v4915_v63, 0.0 }
 0x2d8   :  { %v649_v58 = vpop.xlane.xlu2 %648  ;;  %v703_v36 = vpop.xlane.xlu1 %702 }
 0x2d9   :  { %v737_v54 = vsub.f32 %v4812_v14, %v649_v58  ;;  %v4923_v14 = vpop.eup %4077  ;;  %v755_v33 = vsub.f32 %v4810_v10, %v703_v36 }
 0x2da   :  { %v4926_v48 = vpop.eup %4079  ;;  %v872_v53 = vsel %vm637_vm2, %v4923_v14, 0.0 }
 0x2db   :  { %v772_v9 = vmul.f32 1.442695, %v737_v54  ;;  %849 = vadd.xlane.f32.xlu0 %v848_v45  ;;  %v851_v10 = vsel %vm637_vm2, %v4926_v48, 0.0 }
 0x2dd   :  { %4081 = vpow2.f32 %v772_v9  ;;  %843 = vadd.xlane.f32.xlu1 %v842_v5 }
 0x2de   :  { %4083 = vrcp.f32 %v832_v26  ;;  %v808_v26 = vmul.f32 1.442695, %v755_v33 }
 0x2df   :  { %4085 = vpow2.f32 %v796_v17 }
 0x2e0   :  { %4087 = vpow2.f32 %v776_v8  ;;  %v667_v58 = vpop.xlane.xlu1 %666  ;;  %v670_v54 = vpop.xlane.xlu2 %669 }
 0x2e1   :  { %4089 = vpow2.f32 %v792_v24  ;;  %v744_v36 = vsub.f32 %v4821_v23, %v670_v54 }
 0x2e3   :  { %v4930_v55 = vpop.eup %4081  ;;  %873 = vadd.xlane.f32.xlu0 %v872_v53 }
 0x2e4   :  { %v835_v34 = vpop.xlane.xlu0 %834  ;;  %v839_v25 = vsel %vm637_vm2, %v4930_v55, 0.0  ;;  %v4084_v37 = vpop.eup %4083 }
 0x2e5   :  { %840 = vadd.xlane.f32.xlu2 %v839_v25  ;;  %852 = vadd.xlane.f32.xlu1 %v851_v10  ;;  %v4937_v39 = vpop.eup %4085  ;;  %4091 = vrcp.f32 %v835_v34  ;;  %v958_v49 = vmul.f32 %v4084_v37, %v4798_v4  ;;  %v786_v34 = vmul.f32 1.442695, %v744_v36  ;;  %v743_v37 = vsub.f32 %v4819_v21, %v667_v58 }
 0x2e6   :  { %v4939_v40 = vpop.eup %4087  ;;  %4093 = vpow2.f32 %v808_v26  ;;  %v875_v60 = vsel %vm637_vm2, %v4937_v39, 0.0 }
 0x2e7   :  { %v4941_v61 = vpop.eup %4089  ;;  %4095 = vpow2.f32 %v806_v41  ;;  %v845_v20 = vsel %vm637_vm2, %v4939_v40, 0.0  ;;  %v990_v17 = vpack.c.bf16 %v958_v49, %v958_v49 }
 0x2e8   :  { %v869_v16 = vsel %vm637_vm2, %v4941_v61, 0.0  ;;  %v694_v26 = vpop.xlane.xlu1 %693  ;;  %v706_v54 = vpop.xlane.xlu2 %705 }
 0x2e9   :  { %v1024_v53 = vunpack.c.l.b16 %v990_v17  ;;  %v752_v49 = vsub.f32 %v4829_v12, %v694_v26  ;;  %v756_v58 = vsub.f32 %v4831_v31, %v706_v54 }
 0x2eb   :  { %876 = vadd.xlane.f32.xlu0 %v875_v60  ;;  %v4092_v9 = vpop.eup %4091 }
 0x2ec   :  { %v664_v45 = vpop.xlane.xlu0 %663  ;;  %v959_v4 = vmul.f32 %v4092_v9, %v4827_v30  ;;  %v4952_v5 = vpop.eup %4093 }
 0x2ed   :  { %v742_v15 = vsub.f32 %v4837_v38, %v664_v45  ;;  %846 = vadd.xlane.f32.xlu2 %v845_v20  ;;  %870 = vadd.xlane.f32.xlu1 %v869_v16  ;;  %v4955_v33 = vpop.eup %4095  ;;  %v893_v38 = vsel %vm637_vm2, %v4952_v5, 0.0  ;;  %v802_v20 = vmul.f32 1.442695, %v752_v49  ;;  %v810_v16 = vmul.f32 1.442695, %v756_v58 }
 0x2ee   :  { %v991_v24 = vpack.c.bf16 %v959_v4, %v959_v4  ;;  %v890_v10 = vsel %vm637_vm2, %v4955_v33, 0.0 }
 0x2ef   :  { %v782_v8 = vmul.f32 1.442695, %v742_v15 }
 0x2f0   :  { %v1025_v29 = vunpack.c.l.b16 %v991_v24  ;;  %v688_v15 = vpop.xlane.xlu2 %687 }
 0x2f1   :  { %4097 = vpow2.f32 %v782_v8  ;;  %v750_v36 = vsub.f32 %v4841_v42, %v688_v15 }
 0x2f2   :  { %v1026_v25 = vpack.c.b16 %v1025_v29, %v1024_v53  ;;  %4099 = vpow2.f32 %v786_v34 }
 0x2f3   :  { %894 = vadd.xlane.f32.xlu0 %v893_v38  ;;  %v798_v24 = vmul.f32 1.442695, %v750_v36 }
 0x2f4   :  { %v673_v30 = vpop.xlane.xlu0 %672  ;;  %3797 = vmatmul.msk.bf16.vlgmr.msrb.gmra.mxu2 %vm637_vm2, %v1026_v25 }
 0x2f5   :  { %v745_v23 = vsub.f32 %v4845_v46, %v673_v30  ;;  %891 = vadd.xlane.f32.xlu2 %v890_v10  ;;  %1240 = vmatpush.bf16.msrb.mxu2 %v4806_v0  ;;  %v784_v46 = vmul.f32 1.442695, %v743_v37 }
 0x2f7   :  { %v4964_v41 = vpop.eup %4097  ;;  %v788_v60 = vmul.f32 1.442695, %v745_v23 }
 0x2f8   :  { %v854_v45 = vsel %vm637_vm2, %v4964_v41, 0.0  ;;  %v4970_v9 = vpop.eup %4099  ;;  %v697_v53 = vpop.xlane.xlu2 %696 }
 0x2f9   :  { %4101 = vpow2.f32 %v788_v60  ;;  %855 = vadd.xlane.f32.xlu1 %v854_v45  ;;  %v860_v12 = vsel %vm637_vm2, %v4970_v9, 0.0  ;;  %v753_v38 = vsub.f32 %v4849_v50, %v697_v53 }
 0x2fa   :  { %4103 = vpow2.f32 %v784_v46 }
 0x2fb   :  { %4105 = vpow2.f32 %v802_v20  ;;  %v804_v42 = vmul.f32 1.442695, %v753_v38 }
 0x2fc   :  { %4107 = vpow2.f32 %v810_v16 }
 0x2fd   :  { %4109 = vpow2.f32 %v798_v24 }
 0x2fe   :  { %4111 = vpow2.f32 %v804_v42 }
 0x2ff   :  { %v4972_v21 = vpop.eup %4101 }
 0x300   :  { %v863_v0 = vsel %vm637_vm2, %v4972_v21, 0.0  ;;  %v4979_v17 = vpop.eup %4103 }
 0x301   :  { %861 = vadd.xlane.f32.xlu1 %v860_v12  ;;  %864 = vadd.xlane.f32.xlu0 %v863_v0  ;;  %v4981_v4 = vpop.eup %4105  ;;  %v857_v31 = vsel %vm637_vm2, %v4979_v17, 0.0 }
 0x302   :  { %v884_v8 = vsel %vm637_vm2, %v4981_v4, 0.0  ;;  %v4988_v29 = vpop.eup %4107 }
 0x303   :  { %v896_v34 = vsel %vm637_vm2, %v4988_v29, 0.0  ;;  %v4993_v25 = vpop.eup %4109 }
 0x304   :  { %v878_v26 = vsel %vm637_vm2, %v4993_v25, 0.0  ;;  %v4997_v30 = vpop.eup %4111 }
 0x305   :  { %v887_v10 = vsel %vm637_vm2, %v4997_v30, 0.0 }
 0x309   :  { %858 = vadd.xlane.f32.xlu1 %v857_v31  ;;  %885 = vadd.xlane.f32.xlu0 %v884_v8 }
 0x311   :  { %897 = vadd.xlane.f32.xlu1 %v896_v34 }
 0x319   :  { %879 = vadd.xlane.f32.xlu1 %v878_v26 }
 0x321   :  { %888 = vadd.xlane.f32.xlu1 %v887_v10 }
 0x326   :  { %v724_v23 = vpop.xlane.xlu0 %723 }
 0x327   :  { %v762_v15 = vsub.f32 %v4857_v59, %v724_v23 }
 0x32e   :  { %v709_v50 = vpop.xlane.xlu0 %708  ;;  %v727_v37 = vpop.xlane.xlu1 %726 }
 0x32f   :  { %v757_v49 = vsub.f32 %v4861_v62, %v709_v50  ;;  %v763_v60 = vsub.f32 %v4863_v1, %v727_v37 }
 0x331   :  { %v812_v54 = vmul.f32 1.442695, %v757_v49  ;;  %v824_v45 = vmul.f32 1.442695, %v763_v60 }
 0x333   :  { %4113 = vpow2.f32 %v812_v54 }
 0x334   :  { %4115 = vpow2.f32 %v824_v45 }
 0x336   :  { %v691_v46 = vpop.xlane.xlu0 %690  ;;  %v712_v20 = vpop.xlane.xlu1 %711 }
 0x337   :  { %v751_v58 = vsub.f32 %v4869_v11, %v691_v46  ;;  %v758_v12 = vsub.f32 %v4871_v18, %v712_v20  ;;  %v730_v8 = vpop.xlane.xlu2 %729  ;;  %v822_v11 = vmul.f32 1.442695, %v762_v15 }
 0x338   :  { %v764_v53 = vsub.f32 %v4873_v19, %v730_v8 }
 0x339   :  { %v5005_v0 = vpop.eup %4113  ;;  %v800_v16 = vmul.f32 1.442695, %v751_v58  ;;  %v814_v36 = vmul.f32 1.442695, %v758_v12 }
 0x33a   :  { %v5008_v31 = vpop.eup %4115  ;;  %v899_v62 = vsel %vm637_vm2, %v5005_v0, 0.0  ;;  %v826_v23 = vmul.f32 1.442695, %v764_v53 }
 0x33b   :  { %4117 = vpow2.f32 %v800_v16  ;;  %900 = vadd.xlane.f32.xlu2 %v899_v62  ;;  %v917_v1 = vsel %vm637_vm2, %v5008_v31, 0.0 }
 0x33c   :  { %918 = vadd.xlane.f32.xlu1 %v917_v1  ;;  %4119 = vpow2.f32 %v814_v36 }
 0x33d   :  { %4121 = vpow2.f32 %v822_v11 }
 0x33e   :  { %v718_v18 = vpop.xlane.xlu0 %717  ;;  %v721_v24 = vpop.xlane.xlu1 %720 }
 0x33f   :  { %v760_v59 = vsub.f32 %v4882_v44, %v718_v18  ;;  %v761_v42 = vsub.f32 %v4884_v47, %v721_v24  ;;  %v5025_v19 = vpop.xlane.xlu2 %714 }
 0x341   :  { %v5016_v38 = vpop.eup %4117  ;;  %v818_v34 = vmul.f32 1.442695, %v760_v59  ;;  %v820_v44 = vmul.f32 1.442695, %v761_v42 }
 0x342   :  { %v881_v26 = vsel %vm637_vm2, %v5016_v38, 0.0  ;;  %v5021_v10 = vpop.eup %4119 }
 0x343   :  { %4123 = vpow2.f32 %v818_v34  ;;  %882 = vadd.xlane.f32.xlu2 %v881_v26  ;;  %v902_v50 = vsel %vm637_vm2, %v5021_v10, 0.0  ;;  %v5029_v49 = vpop.eup %4121 }
 0x344   :  { %903 = vadd.xlane.f32.xlu0 %v902_v50  ;;  %4125 = vpow2.f32 %v826_v23  ;;  %v914_v54 = vsel %vm637_vm2, %v5029_v49, 0.0 }
 0x345   :  { %4127 = vpow2.f32 %v820_v44 }
 0x346   :  { %v5027_v37 = vpop.xlane.xlu0 %732 }
 0x347   :  { %v868_v12 = vpop.xlane.xlu2 %867 }
 0x348   :  { %v838_v60 = vpop.xlane.xlu1 %837 }
 0x349   :  { %v5031_v47 = vpop.eup %4123  ;;  %4129 = vrcp.f32 %v838_v60 }
 0x34a   :  { %v908_v45 = vsel %vm637_vm2, %v5031_v47, 0.0  ;;  %v5037_v46 = vpop.eup %4125 }
 0x34b   :  { %915 = vadd.xlane.f32.xlu2 %v914_v54  ;;  %909 = vadd.xlane.f32.xlu1 %v908_v45  ;;  %v5039_v58 = vpop.eup %4127  ;;  %v920_v16 = vsel %vm637_vm2, %v5037_v46, 0.0 }
 0x34c   :  { %v911_v36 = vsel %vm637_vm2, %v5039_v58, 0.0 }
 0x34e   :  { %v850_v20 = vpop.xlane.xlu0 %849 }
 0x34f   :  { %4131 = vrcp.f32 %v850_v20  ;;  %v4130_v8 = vpop.eup %4129 }
 0x350   :  { %v844_v15 = vpop.xlane.xlu1 %843  ;;  %v960_v24 = vmul.f32 %v4130_v8, %v4906_v7 }
 0x352   :  { %v992_v26 = vpack.c.bf16 %v960_v24, %v960_v24 }
 0x353   :  { %921 = vadd.xlane.f32.xlu2 %v920_v16  ;;  %912 = vadd.xlane.f32.xlu1 %v911_v36 }
 0x354   :  { %v1049_v20 = vunpack.c.l.b16 %v992_v26 }
 0x355   :  { %v4132_v18 = vpop.eup %4131 }
 0x356   :  { %v874_v62 = vpop.xlane.xlu0 %873  ;;  %v964_v59 = vmul.f32 %v4132_v18, %v4911_v56 }
 0x358   :  { %v841_v1 = vpop.xlane.xlu2 %840  ;;  %1302 = vrot.lane.b32.xlu0 %v4668_v28, %s4497_s17  ;;  %v853_v11 = vpop.xlane.xlu1 %852  ;;  %v996_v60 = vpack.c.bf16 %v964_v59, %v964_v59  ;;  %v765_v59 = vsub.f32 %v4897_v51, %v5027_v37 }
 0x359   :  { %4133 = vrcp.f32 %v841_v1 }
 0x35a   :  { %4135 = vrcp.f32 %v853_v11  ;;  %v1099_v16 = vunpack.c.l.b16 %v996_v60 }
 0x35b   :  { %4137 = vrcp.f32 %v844_v15 }
 0x35e   :  { %v877_v34 = vpop.xlane.xlu0 %876 }
 0x35f   :  { %v4134_v53 = vpop.eup %4133 }
 0x360   :  { %v4136_v42 = vpop.eup %4135  ;;  %v961_v23 = vmul.f32 %v4134_v53, %v4930_v55  ;;  %v847_v50 = vpop.xlane.xlu2 %846 }
 0x361   :  { %v4138_v44 = vpop.eup %4137  ;;  %v965_v54 = vmul.f32 %v4136_v42, %v4926_v48  ;;  %4139 = vrcp.f32 %v847_v50  ;;  %v871_v15 = vpop.xlane.xlu1 %870  ;;  %v828_v50 = vmul.f32 1.442695, %v765_v59 }
 0x362   :  { %v993_v28 = vpack.c.bf16 %v961_v23, %v961_v23  ;;  %4141 = vrcp.f32 %v877_v34  ;;  %v962_v7 = vmul.f32 %v4138_v44, %v4915_v63 }
 0x363   :  { %v997_v45 = vpack.c.bf16 %v965_v54, %v965_v54  ;;  %4143 = vrcp.f32 %v874_v62 }
 0x364   :  { %v1050_v56 = vunpack.c.l.b16 %v993_v28  ;;  %v994_v18 = vpack.c.bf16 %v962_v7, %v962_v7  ;;  %4145 = vrcp.f32 %v871_v15 }
 0x365   :  { %v1100_v36 = vunpack.c.l.b16 %v997_v45  ;;  %4147 = vrcp.f32 %v868_v12 }
 0x366   :  { %v1051_v1 = vpack.c.b16 %v1050_v56, %v1049_v20  ;;  %v1074_v53 = vunpack.c.l.b16 %v994_v18  ;;  %v895_v34 = vpop.xlane.xlu0 %894  ;;  %4149 = vpow2.f32 %v828_v50 }
 0x367   :  { %v4140_v8 = vpop.eup %4139  ;;  %v1101_v55 = vpack.c.b16 %v1100_v36, %v1099_v16 }
 0x368   :  { %v4142_v11 = vpop.eup %4141  ;;  %v963_v24 = vmul.f32 %v4140_v8, %v4939_v40  ;;  %3798 = vmatmul.msk.bf16.vlgmr.msra.gmra.mxu3 %vm637_vm2, %v1051_v1  ;;  %v892_v28 = vpop.xlane.xlu2 %891 }
 0x369   :  { %3800 = vmatmul.msk.bf16.vlgmr.msrb.gmra.mxu1 %vm637_vm2, %v1101_v55  ;;  %1265 = vmatpush.bf16.msra.mxu3 %v4765_v35  ;;  %v4144_v63 = vpop.eup %4143  ;;  %v973_v62 = vmul.f32 %v4142_v11, %v4937_v39 }
 0x36a   :  { %v995_v48 = vpack.c.bf16 %v963_v24, %v963_v24  ;;  %v972_v35 = vmul.f32 %v4144_v63, %v4923_v14  ;;  %v4146_v23 = vpop.eup %4145 }
 0x36b   :  { %1327 = vrot.lane.b32.xlu2 %v4666_v27, %s4497_s17  ;;  %v1005_v12 = vpack.c.bf16 %v973_v62, %v973_v62  ;;  %v4148_v39 = vpop.eup %4147  ;;  %v971_v51 = vmul.f32 %v4146_v23, %v4941_v61 }
 0x36c   :  { %v1075_v40 = vunpack.c.l.b16 %v995_v48  ;;  %1377 = vrot.lane.b32.xlu1 %v4701_v43, %s4497_s17  ;;  %v856_v42 = vpop.xlane.xlu1 %855  ;;  %v1004_v27 = vpack.c.bf16 %v972_v35, %v972_v35  ;;  %v970_v43 = vmul.f32 %v4148_v39, %v4899_v22 }
 0x36d   :  { %v1200_v37 = vunpack.c.l.b16 %v1005_v12  ;;  %v1003_v54 = vpack.c.bf16 %v971_v51, %v971_v51 }
 0x36e   :  { %v1076_v26 = vpack.c.b16 %v1075_v40, %v1074_v53  ;;  %v1199_v60 = vunpack.c.l.b16 %v1004_v27  ;;  %v1002_v20 = vpack.c.bf16 %v970_v43, %v970_v43 }
 0x370   :  { %3799 = vmatmul.msk.bf16.vlgmr.msra.gmra.mxu0 %vm637_vm2, %v1076_v26  ;;  %v1201_v45 = vpack.c.b16 %v1200_v37, %v1199_v60  ;;  %v1174_v22 = vunpack.c.l.b16 %v1002_v20 }
 0x371   :  { %1290 = vmatpush.bf16.msra.mxu0 %v4855_v57  ;;  %v5071_v57 = vpop.eup %4149 }
 0x372   :  { %v923_v59 = vsel %vm637_vm2, %v5071_v57, 0.0 }
 0x373   :  { %1352 = vrot.lane.b32.xlu2 %v4683_v32, %s4497_s17  ;;  %v1175_v32 = vunpack.c.l.b16 %v1003_v54 }
 0x374   :  { %v865_v14 = vpop.xlane.xlu0 %864  ;;  %v862_v44 = vpop.xlane.xlu1 %861 }
 0x375   :  { %4151 = vrcp.f32 %v865_v14  ;;  %v1176_v8 = vpack.c.b16 %v1175_v32, %v1174_v22 }
 0x376   :  { %4153 = vrcp.f32 %v862_v44 }
 0x377   :  { %4155 = vrcp.f32 %v895_v34 }
 0x378   :  { %4157 = vrcp.f32 %v856_v42 }
 0x379   :  { %4159 = vrcp.f32 %v892_v28  ;;  %3804 = vmatmul.msk.bf16.vlgmr.msra.gmra.mxu1 %vm637_vm2, %v1201_v45 }
 0x37b   :  { %v4152_v61 = vpop.eup %4151 }
 0x37c   :  { %v4154_v7 = vpop.eup %4153  ;;  %v969_v56 = vmul.f32 %v4152_v61, %v4972_v21  ;;  %v859_v15 = vpop.xlane.xlu1 %858 }
 0x37d   :  { %v4156_v16 = vpop.eup %4155  ;;  %v968_v36 = vmul.f32 %v4154_v7, %v4970_v9  ;;  %4161 = vrcp.f32 %v859_v15  ;;  %v886_v27 = vpop.xlane.xlu0 %885 }
 0x37e   :  { %v4158_v1 = vpop.eup %4157  ;;  %v1001_v55 = vpack.c.bf16 %v969_v56, %v969_v56  ;;  %v979_v62 = vmul.f32 %v4156_v16, %v4952_v5  ;;  %v759_v5 = vsub.f32 %v4886_v52, %v5025_v19  ;;  %4163 = vrcp.f32 %v886_v27 }
 0x37f   :  { %v4160_v11 = vpop.eup %4159  ;;  %v1000_v18 = vpack.c.bf16 %v968_v36, %v968_v36  ;;  %v966_v63 = vmul.f32 %v4158_v1, %v4964_v41 }
 0x380   :  { %v1150_v24 = vunpack.c.l.b16 %v1001_v55  ;;  %3803 = vmatmul.msk.bf16.vlgmr.msrb.gmra.mxu0 %vm637_vm2, %v1176_v8  ;;  %v978_v21 = vmul.f32 %v4160_v11, %v4955_v33  ;;  %v1011_v35 = vpack.c.bf16 %v979_v62, %v979_v62  ;;  %v816_v37 = vmul.f32 1.442695, %v759_v5 }
 0x381   :  { %v1149_v48 = vunpack.c.l.b16 %v1000_v18  ;;  %v998_v34 = vpack.c.bf16 %v966_v63, %v966_v63 }
 0x382   :  { %924 = vadd.xlane.f32.xlu0 %v923_v59  ;;  %v1010_v26 = vpack.c.bf16 %v978_v21, %v978_v21  ;;  %v1275_v33 = vunpack.c.l.b16 %v1011_v35  ;;  %4165 = vpow2.f32 %v816_v37 }
 0x383   :  { %v1151_v9 = vpack.c.b16 %v1150_v24, %v1149_v48  ;;  %v4162_v53 = vpop.eup %4161  ;;  %v1124_v23 = vunpack.c.l.b16 %v998_v34 }
 0x384   :  { %v898_v40 = vpop.xlane.xlu1 %897  ;;  %v967_v42 = vmul.f32 %v4162_v53, %v4979_v17  ;;  %v1274_v50 = vunpack.c.l.b16 %v1010_v26  ;;  %v4164_v14 = vpop.eup %4163 }
 0x385   :  { %3802 = vmatmul.msk.bf16.vlgmr.msrb.gmra.mxu3 %vm637_vm2, %v1151_v9  ;;  %v976_v52 = vmul.f32 %v4164_v14, %v4981_v4 }
 0x386   :  { %v999_v41 = vpack.c.bf16 %v967_v42, %v967_v42  ;;  %v1276_v43 = vpack.c.b16 %v1275_v33, %v1274_v50 }
 0x387   :  { %v1008_v54 = vpack.c.bf16 %v976_v52, %v976_v52 }
 0x388   :  { %v1125_v12 = vunpack.c.l.b16 %v999_v41  ;;  %v5087_v44 = vpop.eup %4165 }
 0x389   :  { %v905_v60 = vsel %vm637_vm2, %v5087_v44, 0.0  ;;  %v1249_v20 = vunpack.c.l.b16 %v1008_v54 }
 0x38a   :  { %v1126_v39 = vpack.c.b16 %v1125_v12, %v1124_v23 }
 0x38c   :  { %v880_v51 = vpop.xlane.xlu1 %879  ;;  %3801 = vmatmul.msk.bf16.vlgmr.msra.gmra.mxu2 %vm637_vm2, %v1126_v39 }
 0x390   :  { %3807 = vmatmul.msk.bf16.vlgmr.msra.gmra.mxu0 %vm637_vm2, %v1276_v43 }
 0x394   :  { %v889_v17 = vpop.xlane.xlu1 %888 }
 0x395   :  { %4167 = vrcp.f32 %v889_v17 }
 0x396   :  { %4169 = vrcp.f32 %v880_v51 }
 0x39b   :  { %v4168_v19 = vpop.eup %4167 }
 0x39c   :  { %v977_v28 = vmul.f32 %v4168_v19, %v4997_v30  ;;  %906 = vadd.xlane.f32.xlu2 %v905_v60  ;;  %v4170_v56 = vpop.eup %4169 }
 0x39d   :  { %v974_v30 = vmul.f32 %v4170_v56, %v4993_v25 }
 0x39e   :  { %v1009_v45 = vpack.c.bf16 %v977_v28, %v977_v28 }
 0x39f   :  { %v1006_v36 = vpack.c.bf16 %v974_v30, %v974_v30 }
 0x3a0   :  { %v1250_v32 = vunpack.c.l.b16 %v1009_v45 }
 0x3a2   :  { %v1251_v61 = vpack.c.b16 %v1250_v32, %v1249_v20 }
 0x3a4   :  { %3806 = vmatmul.msk.bf16.vlgmr.msra.gmra.mxu3 %vm637_vm2, %v1251_v61 }
 0x3ae   :  { %v901_v7 = vpop.xlane.xlu2 %900 }
 0x3af   :  { %v919_v4 = vpop.xlane.xlu1 %918 }
 0x3b4   :  { %1402 = vrot.lane.b32.xlu2 %v4720_v2, %s4497_s17  ;;  %v1224_v2 = vunpack.c.l.b16 %v1006_v36 }
 0x3b6   :  { %v883_v22 = vpop.xlane.xlu2 %882 }
 0x3b7   :  { %4171 = vrcp.f32 %v883_v22  ;;  %v5100_v62 = vpop.xlane.xlu0 %903 }
 0x3b8   :  { %4173 = vrcp.f32 %v901_v7 }
 0x3b9   :  { %4175 = vrcp.f32 %v898_v40 }
 0x3bd   :  { %v4172_v15 = vpop.eup %4171 }
 0x3be   :  { %v4174_v16 = vpop.eup %4173  ;;  %v975_v1 = vmul.f32 %v4172_v15, %v5016_v38  ;;  %v916_v8 = vpop.xlane.xlu2 %915 }
 0x3bf   :  { %v910_v55 = vpop.xlane.xlu1 %909  ;;  %v4176_v11 = vpop.eup %4175  ;;  %v981_v24 = vmul.f32 %v4174_v16, %v5005_v0 }
 0x3c0   :  { %v1007_v18 = vpack.c.bf16 %v975_v1, %v975_v1  ;;  %v980_v48 = vmul.f32 %v4176_v11, %v4988_v29  ;;  %4177 = vrcp.f32 %v910_v55 }
 0x3c1   :  { %v1013_v59 = vpack.c.bf16 %v981_v24, %v981_v24 }
 0x3c2   :  { %v1225_v63 = vunpack.c.l.b16 %v1007_v18  ;;  %v1012_v38 = vpack.c.bf16 %v980_v48, %v980_v48 }
 0x3c3   :  { %v1300_v53 = vunpack.c.l.b16 %v1013_v59 }
 0x3c4   :  { %v1226_v21 = vpack.c.b16 %v1225_v63, %v1224_v2  ;;  %v1299_v34 = vunpack.c.l.b16 %v1012_v38 }
 0x3c6   :  { %v922_v25 = vpop.xlane.xlu2 %921  ;;  %3805 = vmatmul.msk.bf16.vlgmr.msrb.gmra.mxu2 %vm637_vm2, %v1226_v21  ;;  %v4178_v40 = vpop.eup %4177  ;;  %v1301_v42 = vpack.c.b16 %v1300_v53, %v1299_v34 }
 0x3c7   :  { %v913_v9 = vpop.xlane.xlu1 %912  ;;  %v984_v35 = vmul.f32 %v4178_v40, %v5031_v47 }
 0x3c8   :  { %4179 = vrcp.f32 %v913_v9 }
 0x3c9   :  { %4181 = vrcp.f32 %v916_v8  ;;  %v1016_v5 = vpack.c.bf16 %v984_v35, %v984_v35 }
 0x3ca   :  { %v1303_v0 = vpop.permute.xlu0 %1302  ;;  %4183 = vrcp.f32 %v919_v4  ;;  %v5115_v4 = vpop.f32.mrf.mxu2 }
 0x3cb   :  { %1315 = vmatpush.bf16.msrb.mxu1 %v1303_v0  ;;  %v1349_v51 = vunpack.c.l.b16 %v1016_v5 }
 0x3ce   :  { %v4180_v29 = vpop.eup %4179  ;;  %v1328_v26 = vpop.permute.xlu2 %1327  ;;  %3808 = vmatmul.msk.bf16.vlgmr.msrb.gmra.mxu1 %vm637_vm2, %v1301_v42 }
 0x3cf   :  { %v985_v41 = vmul.f32 %v4180_v29, %v5039_v58  ;;  %1340 = vmatpush.bf16.msra.mxu2 %v1328_v26  ;;  %v4182_v23 = vpop.eup %4181 }
 0x3d0   :  { %v4184_v33 = vpop.eup %4183  ;;  %v986_v50 = vmul.f32 %v4182_v23, %v5029_v49 }
 0x3d1   :  { %v1017_v12 = vpack.c.bf16 %v985_v41, %v985_v41  ;;  %v987_v27 = vmul.f32 %v4184_v33, %v5008_v31 }
 0x3d2   :  { %v1018_v43 = vpack.c.bf16 %v986_v50, %v986_v50  ;;  %v5117_v15 = vpop.f32.mrf.mxu2 }
 0x3d3   :  { %v1350_v39 = vunpack.c.l.b16 %v1017_v12  ;;  %v1019_v58 = vpack.c.bf16 %v987_v27, %v987_v27 }
 0x3d4   :  { %v1374_v17 = vunpack.c.l.b16 %v1018_v43 }
 0x3d5   :  { %v1351_v47 = vpack.c.b16 %v1350_v39, %v1349_v51  ;;  %v1375_v14 = vunpack.c.l.b16 %v1019_v58 }
 0x3d6   :  { %v1353_v37 = vpop.permute.xlu2 %1352 }
 0x3d7   :  { %1365 = vmatpush.bf16.msrb.mxu3 %v1353_v37  ;;  %v1376_v49 = vpack.c.b16 %v1375_v14, %v1374_v17 }
 0x3da   :  { %3810 = vmatmul.msk.bf16.vlgmr.msrb.gmra.mxu3 %vm637_vm2, %v1351_v47 }
 0x3db   :  { %1732 = vmatpush.bf16.msra.mxu3 %v4546_v3 }
 0x3de   :  { %v1378_v52 = vpop.permute.xlu1 %1377 }
 0x3df   :  { %1733 = vmatpush.bf16.msra.mxu3 %v4550_v6  ;;  %1390 = vmatpush.bf16.msrb.mxu0 %v1378_v52  ;;  %v3892_v52 = vld [vmem:[#allocation7 + $0x24] sm:$0xf] }
 0x3e2   :  { %3811 = vmatmul.msk.bf16.vlgmr.msrb.gmra.mxu0 %vm637_vm2, %v1376_v49  ;;  %v3817_v49 = vld [vmem:[#allocation7 + $0x30] sm:$0xf0] }
 0x3e6   :  { %v1117_v31 = vpop.f32.mrf.mxu1 }
 0x3eb   :  { %v1067_v19 = vpop.f32.mrf.mxu3 }
 0x3ed   :  { %v1092_v60 = vpop.f32.mrf.mxu0 }
 0x3ee   :  { %v1119_v54 = vpop.f32.mrf.mxu1 }
 0x3ef   :  { %v3925_v28 = vpack.i.bf16 %v1119_v54, %v1117_v31  ;;  %v5137_v31 = vor.u32 %v3892_v52, %v3817_v49 }
 0x3f1   :  { %3926 = vrot.lane.b32.xlu2 %v3925_v28, %s4498_s18  ;;  %1593 = vmatpush.bf16.msrb.mxu2 %v5137_v31 }
 0x3f3   :  { %v1069_v45 = vpop.f32.mrf.mxu3 }
 0x3f4   :  { %v3935_v20 = vpack.i.bf16 %v1069_v45, %v1067_v19  ;;  %v3888_v19 = vld [vmem:[#allocation7 + $0x4] sm:$0xf] }
 0x3f5   :  { %v1094_v32 = vpop.f32.mrf.mxu0  ;;  %v925_v22 = vpop.xlane.xlu0 %924 }
 0x3f6   :  { %3936 = vrot.lane.b32.xlu0 %v3935_v20, %s4499_s19  ;;  %v3930_v61 = vpack.i.bf16 %v1094_v32, %v1092_v60  ;;  %4185 = vrcp.f32 %v925_v22  ;;  %v3813_v60 = vld [vmem:[#allocation7 + $0x10] sm:$0xf0] }
 0x3f7   :  { %4187 = vrcp.f32 %v922_v25  ;;  %v5140_v54 = vor.u32 %v3888_v19, %v3813_v60 }
 0x3f8   :  { %4189 = vrcp.f32 %v5100_v62  ;;  %v1217_v62 = vpop.f32.mrf.mxu1 }
 0x3f9   :  { %3931 = vrot.lane.b32.xlu2 %v3930_v61, %s4483_s24  ;;  %1594 = vmatpush.bf16.msrb.mxu2 %v5140_v54 }
 0x3fc   :  { %v4186_v36 = vpop.eup %4185 }
 0x3fd   :  { %v1192_v7 = vpop.f32.mrf.mxu0  ;;  %v4188_v1 = vpop.eup %4187  ;;  %v989_v8 = vmul.f32 %v4186_v36, %v5071_v57 }
 0x3fe   :  { %v988_v11 = vmul.f32 %v4188_v1, %v5037_v46  ;;  %v4190_v24 = vpop.eup %4189 }
 0x3ff   :  { %v1021_v48 = vpack.c.bf16 %v989_v8, %v989_v8  ;;  %v982_v59 = vmul.f32 %v4190_v24, %v5021_v10 }
 0x400   :  { %v1020_v25 = vpack.c.bf16 %v988_v11, %v988_v11  ;;  %v1219_v12 = vpop.f32.mrf.mxu1 }
 0x401   :  { %v1400_v9 = vunpack.c.l.b16 %v1021_v48  ;;  %v1014_v40 = vpack.c.bf16 %v982_v59, %v982_v59  ;;  %v3955_v5 = vpack.i.bf16 %v1219_v12, %v1217_v62 }
 0x402   :  { %v1399_v46 = vunpack.c.l.b16 %v1020_v25 }
 0x403   :  { %v1324_v26 = vunpack.c.l.b16 %v1014_v40 }
 0x404   :  { %v1401_v29 = vpack.c.b16 %v1400_v9, %v1399_v46 }
 0x405   :  { %v1194_v56 = vpop.f32.mrf.mxu0 }
 0x406   :  { %v3950_v30 = vpack.i.bf16 %v1194_v56, %v1192_v7 }
 0x408   :  { %3951 = vrot.lane.b32.xlu0 %v3950_v30, %s4500_s20  ;;  %v1167_v16 = vpop.f32.mrf.mxu3 }
 0x40d   :  { %v1292_v55 = vpop.f32.mrf.mxu0 }
 0x40f   :  { %v907_v18 = vpop.xlane.xlu2 %906  ;;  %v1142_v2 = vpop.f32.mrf.mxu2 }
 0x410   :  { %4191 = vrcp.f32 %v907_v18  ;;  %v1169_v63 = vpop.f32.mrf.mxu3 }
 0x411   :  { %v3945_v21 = vpack.i.bf16 %v1169_v63, %v1167_v16 }
 0x413   :  { %3946 = vrot.lane.b32.xlu2 %v3945_v21, %s4501_s21 }
 0x415   :  { %v1294_v38 = vpop.f32.mrf.mxu0 }
 0x416   :  { %v4192_v57 = vpop.eup %4191  ;;  %v3965_v53 = vpack.i.bf16 %v1294_v38, %v1292_v55 }
 0x417   :  { %v983_v34 = vmul.f32 %v4192_v57, %v5087_v44  ;;  %v1403_v0 = vpop.permute.xlu2 %1402  ;;  %v1144_v42 = vpop.f32.mrf.mxu2 }
 0x418   :  { %3966 = vrot.lane.b32.xlu0 %v3965_v53, %s4483_s24  ;;  %1415 = vmatpush.bf16.msra.mxu1 %v1403_v0  ;;  %v3940_v35 = vpack.i.bf16 %v1144_v42, %v1142_v2 }
 0x419   :  { %v1015_v10 = vpack.c.bf16 %v983_v34, %v983_v34 }
 0x41a   :  { %3941 = vrot.lane.b32.xlu1 %v3940_v35, %s4487_s8 }
 0x41b   :  { %v1325_v41 = vunpack.c.l.b16 %v1015_v10  ;;  %3812 = vmatmul.msk.bf16.vlgmr.msra.gmra.mxu1 %vm637_vm2, %v1401_v29 }
 0x41d   :  { %v1326_v23 = vpack.c.b16 %v1325_v41, %v1324_v26 }
 0x41f   :  { %3809 = vmatmul.msk.bf16.vlgmr.msra.gmra.mxu2 %vm637_vm2, %v1326_v23 }
 0x422   :  { %3956 = vrot.lane.b32.xlu1 %v3955_v5, %s4502_s22 }
 0x427   :  { %v1267_v44 = vpop.f32.mrf.mxu3 }
 0x42f   :  { %v1269_v33 = vpop.f32.mrf.mxu3 }
 0x430   :  { %v3970_v50 = vpack.i.bf16 %v1269_v33, %v1267_v44 }
 0x432   :  { %3971 = vrot.lane.b32.xlu2 %v3970_v50, %s4499_s19 }
 0x449   :  { %v1242_v2 = vpop.f32.mrf.mxu2 }
 0x44b   :  { %v1317_v39 = vpop.f32.mrf.mxu1  ;;  %v3927_v28 = vpop.permute.xlu2 %3926 }
 0x44c   :  { %v3929_v8 = vunpack.i.h.bf16 %v3927_v28  ;;  %v3928_v55 = vunpack.i.l.bf16 %v3927_v28 }
 0x451   :  { %v1244_v35 = vpop.f32.mrf.mxu2 }
 0x453   :  { %v1319_v27 = vpop.f32.mrf.mxu1  ;;  %v3932_v61 = vpop.permute.xlu2 %3931 }
 0x454   :  { %v3960_v51 = vpack.i.bf16 %v1319_v27, %v1317_v39  ;;  %v3934_v56 = vunpack.i.h.bf16 %v3932_v61  ;;  %v3933_v30 = vunpack.i.l.bf16 %v3932_v61 }
 0x456   :  { %3961 = vrot.lane.b32.xlu1 %v3960_v51, %s4498_s18 }
 0x45d   :  { %v1367_v37 = vpop.f32.mrf.mxu3 }
 0x45f   :  { %v1392_v43 = vpop.f32.mrf.mxu0 }
 0x465   :  { %v1369_v47 = vpop.f32.mrf.mxu3 }
 0x466   :  { %v3980_v58 = vpack.i.bf16 %v1369_v47, %v1367_v37 }
 0x467   :  { %v1394_v17 = vpop.f32.mrf.mxu0 }
 0x468   :  { %v3985_v14 = vpack.i.bf16 %v1394_v17, %v1392_v43  ;;  %3981 = vrot.lane.b32.xlu0 %v3980_v58, %s4501_s21  ;;  %v3937_v45 = vpop.permute.xlu0 %3936 }
 0x469   :  { %v3939_v20 = vunpack.i.h.bf16 %v3937_v45  ;;  %v3938_v32 = vunpack.i.l.bf16 %v3937_v45 }
 0x46a   :  { %3986 = vrot.lane.b32.xlu1 %v3985_v14, %s4500_s20 }
 0x46b   :  { %v1535_v7 = vsel %vm209_vm1, %v5117_v15, %v3939_v20  ;;  %v1534_v22 = vsel %vm209_vm1, %v5115_v4, %v3938_v32 }
 0x46c   :  { %v1539_v16 = vsel %vm1538_vm3, %v1534_v22, %v3933_v30  ;;  %v1540_v36 = vsel %vm1538_vm3, %v1535_v7, %v3934_v56 }
 0x46d   :  { %v3947_v24 = vpop.permute.xlu2 %3946  ;;  %v1544_v63 = vsel %vm1543_vm4, %v1539_v16, %v3928_v55  ;;  %v1545_v15 = vsel %vm1543_vm4, %v1540_v36, %v3929_v8 }
 0x46e   :  { %v3949_v21 = vunpack.i.h.bf16 %v3947_v24  ;;  %v3948_v59 = vunpack.i.l.bf16 %v3947_v24 }
 0x470   :  { %1578 = vrot.lane.b32.xlu0 %v4556_v13, %s4503_s23 }
 0x47a   :  { %v3952_v25 = vpop.permute.xlu0 %3951 }
 0x47b   :  { %v3954_v38 = vunpack.i.h.bf16 %v3952_v25  ;;  %v3953_v57 = vunpack.i.l.bf16 %v3952_v25  ;;  %v4347_v25 = vld [vmem:[#allocation2] sm:$0xff] }
 0x48a   :  { %v3967_v50 = vpop.permute.xlu0 %3966 }
 0x48b   :  { %v3969_v17 = vunpack.i.h.bf16 %v3967_v50  ;;  %v3968_v14 = vunpack.i.l.bf16 %v3967_v50 }
 0x48c   :  { %v3942_v1 = vpop.permute.xlu1 %3941  ;;  %v3972_v33 = vpop.permute.xlu2 %3971 }
 0x48d   :  { %v3944_v11 = vunpack.i.h.bf16 %v3942_v1  ;;  %v3943_v18 = vunpack.i.l.bf16 %v3942_v1  ;;  %v3974_v39 = vunpack.i.h.bf16 %v3972_v33  ;;  %v3973_v27 = vunpack.i.l.bf16 %v3972_v33  ;;  %v4349_v33 = vld [vmem:[#allocation2 + $0x10] sm:$0xff] }
 0x48f   :  { %v1549_v4 = vsel %vm637_vm2, %v1545_v15, %v3944_v11  ;;  %v1548_v48 = vsel %vm637_vm2, %v1544_v63, %v3943_v18  ;;  %v1537_v37 = vsel %vm209_vm1, %v1244_v35, %v3974_v39  ;;  %v1536_v43 = vsel %vm209_vm1, %v1242_v2, %v3973_v27 }
 0x490   :  { %v1554_v62 = vsel %vm1552_vm5, %v1549_v4, %v3949_v21  ;;  %v1553_v9 = vsel %vm1552_vm5, %v1548_v48, %v3948_v59  ;;  %v1541_v60 = vsel %vm1538_vm3, %v1536_v43, %v3968_v14  ;;  %v1542_v28 = vsel %vm1538_vm3, %v1537_v37, %v3969_v17  ;;  %v4350_v14 = vld [vmem:[#allocation2 + $0x18] sm:$0xff] }
 0x491   :  { %v1558_v34 = vsel %vm1557_vm6, %v1553_v9, %v3953_v57  ;;  %v1559_v0 = vsel %vm1557_vm6, %v1554_v62, %v3954_v38 }
 0x494   :  { %v3957_v53 = vpop.permute.xlu1 %3956 }
 0x495   :  { %v3959_v40 = vunpack.i.h.bf16 %v3957_v53  ;;  %v3958_v46 = vunpack.i.l.bf16 %v3957_v53  ;;  %v4348_v53 = vld [vmem:[#allocation2 + $0x8] sm:$0xff] }
 0x497   :  { %v1563_v42 = vsel %vm1562_vm7, %v1558_v34, %v3958_v46  ;;  %v1564_v29 = vsel %vm1562_vm7, %v1559_v0, %v3959_v40  ;;  %v4504_v34 = vmov 32.0  }
 0x498   :  { %v1567_v10 = vpack.c.bf16 %v1564_v29, %v1563_v42  ;;  %v1417_v41 = vpop.f32.mrf.mxu1  ;;  %4193 = vrcp.f32 %v4504_v34 }
 0x49a   :  { %3821 = vmatmul.msk.bf16.vlgmr.msrb.gmra.mxu2 %vm114_vm0, %v1567_v10 }
 0x49e   :  { %v4194_v0 = vpop.eup %4193 }
 0x49f   :  { %v1623_v42 = vmul.f32 32.0, %v4194_v0  ;;  %vm1627_vm8 = vweird.f32 %v4194_v0 }
 0x4a0   :  { %v1419_v5 = vpop.f32.mrf.mxu1 }
 0x4a1   :  { %v3990_v44 = vpack.i.bf16 %v1419_v5, %v1417_v41  ;;  %v1624_v29 = vsub.f32 1.0, %v1623_v42 }
 0x4a2   :  { %v1342_v26 = vpop.f32.mrf.mxu2 }
 0x4a3   :  { %v1625_v10 = vmul.f32 %v4194_v0, %v1624_v29 }
 0x4a5   :  { %v1626_v35 = vadd.f32 %v4194_v0, %v1625_v10 }
 0x4aa   :  { %v1344_v23 = vpop.f32.mrf.mxu2 }
 0x4ab   :  { %v3975_v12 = vpack.i.bf16 %v1344_v23, %v1342_v26  ;;  %v5183_v26 = vsel %vm1627_vm8, %v4194_v0, %v1626_v35 }
 0x4ad   :  { %3976 = vrot.lane.b32.xlu2 %v3975_v12, %s4487_s8 }
 0x4b5   :  { %3991 = vrot.lane.b32.xlu2 %v3990_v44, %s4502_s22 }
 0x4c8   :  { %v3962_v51 = vpop.permute.xlu1 %3961 }
 0x4c9   :  { %v3964_v47 = vunpack.i.h.bf16 %v3962_v51  ;;  %v3963_v58 = vunpack.i.l.bf16 %v3962_v51 }
 0x4cb   :  { %v1547_v20 = vsel %vm1543_vm4, %v1542_v28, %v3964_v47  ;;  %v1546_v32 = vsel %vm1543_vm4, %v1541_v60, %v3963_v58  ;;  %v4351_v28 = vld [vmem:[#allocation8] sm:$0xff] }
 0x4da   :  { %v3982_v45 = vpop.permute.xlu0 %3981 }
 0x4db   :  { %v3984_v22 = vunpack.i.h.bf16 %v3982_v45  ;;  %v3983_v56 = vunpack.i.l.bf16 %v3982_v45  ;;  %v5193_v45 = vperm.slane %v4351_v28, 2  ;;  %v98_v28 = vld [vmem:[#allocation5 + $0x8] sm:$0xff] }
 0x4dc   :  { %v3987_v30 = vpop.permute.xlu1 %3986 }
 0x4dd   :  { %v3989_v1 = vunpack.i.h.bf16 %v3987_v30  ;;  %v3988_v8 = vunpack.i.l.bf16 %v3987_v30 }
 0x4e2   :  { %v5177_v48 = vpop.permute.xlu0 %1578 }
 0x507   :  { %v3977_v52 = vpop.permute.xlu2 %3976 }
 0x508   :  { %v3979_v49 = vunpack.i.h.bf16 %v3977_v52  ;;  %v3978_v19 = vunpack.i.l.bf16 %v3977_v52 }
 0x50a   :  { %v1550_v61 = vsel %vm637_vm2, %v1546_v32, %v3978_v19  ;;  %v1551_v7 = vsel %vm637_vm2, %v1547_v20, %v3979_v49 }
 0x50b   :  { %v1555_v16 = vsel %vm1552_vm5, %v1550_v61, %v3983_v56  ;;  %v1556_v36 = vsel %vm1552_vm5, %v1551_v7, %v3984_v22 }
 0x50c   :  { %v1560_v24 = vsel %vm1557_vm6, %v1555_v16, %v3988_v8  ;;  %v1561_v2 = vsel %vm1557_vm6, %v1556_v36, %v3989_v1 }
 0x50f   :  { %v3992_v55 = vpop.permute.xlu2 %3991 }
 0x510   :  { %v3994_v11 = vunpack.i.h.bf16 %v3992_v55  ;;  %v3993_v18 = vunpack.i.l.bf16 %v3992_v55 }
 0x512   :  { %v1565_v63 = vsel %vm1562_vm7, %v1560_v24, %v3993_v18  ;;  %v1566_v15 = vsel %vm1562_vm7, %v1561_v2, %v3994_v11 }
 0x513   :  { %v1568_v4 = vpack.c.bf16 %v1566_v15, %v1565_v63 }
 0x515   :  { %3822 = vmatmul.msk.bf16.gmra.mxu2 %vm114_vm0, %v1568_v4 }
 0x51d   :  { %v1596_v21 = vpop.f32.mrf.mxu2 }
 0x51e   :  { %v1597_v59 = vadd.f32 %v1596_v21, %v5177_v48 }
 0x520   :  { %v1606_v62 = vadd.f32 %v4347_v25, %v1597_v59 }
 0x522   :  { %v1610_v9 = vsel %vm114_vm0, %v1606_v62, 0.0 }
 0x523   :  { %1611 = vadd.xlane.f32.xlu1 %v1610_v9 }
 0x525   :  { %v1598_v38 = vpop.f32.mrf.mxu2 }
 0x526   :  { %v1599_v57 = vadd.f32 %v1598_v38, %v5177_v48 }
 0x528   :  { %v1607_v40 = vadd.f32 %v4348_v53, %v1599_v57 }
 0x52a   :  { %v1613_v46 = vsel %vm114_vm0, %v1607_v40, 0.0 }
 0x52b   :  { %1614 = vadd.xlane.f32.xlu2 %v1613_v46 }
 0x596   :  { %v1612_v41 = vpop.xlane.xlu1 %1611 }
 0x597   :  { %v1629_v23 = vmul.f32 %v5183_v26, %v1612_v41 }
 0x598   :  { %v1601_v12 = vpop.f32.mrf.mxu2 }
 0x599   :  { %v1602_v5 = vadd.f32 %v1601_v12, %v5177_v48  ;;  %v1633_v44 = vsub.f32 %v1606_v62, %v1629_v23 }
 0x59b   :  { %v1608_v50 = vadd.f32 %v4349_v33, %v1602_v5  ;;  %v1637_v39 = vmul.f32 %v1633_v44, %v1633_v44 }
 0x59d   :  { %v1616_v27 = vsel %vm114_vm0, %v1608_v50, 0.0  ;;  %v1641_v51 = vsel %vm114_vm0, %v1637_v39, 0.0 }
 0x59e   :  { %1617 = vadd.xlane.f32.xlu0 %v1616_v27  ;;  %v1615_v37 = vpop.xlane.xlu2 %1614  ;;  %1642 = vadd.xlane.f32.xlu1 %v1641_v51 }
 0x59f   :  { %v1630_v43 = vmul.f32 %v5183_v26, %v1615_v37 }
 0x5a0   :  { %v1603_v47 = vpop.f32.mrf.mxu2 }
 0x5a1   :  { %v1604_v58 = vadd.f32 %v1603_v47, %v5177_v48  ;;  %v1634_v17 = vsub.f32 %v1607_v40, %v1630_v43 }
 0x5a3   :  { %v1609_v52 = vadd.f32 %v4350_v14, %v1604_v58  ;;  %v1638_v49 = vmul.f32 %v1634_v17, %v1634_v17 }
 0x5a5   :  { %v1619_v19 = vsel %vm114_vm0, %v1609_v52, 0.0  ;;  %v1644_v60 = vsel %vm114_vm0, %v1638_v49, 0.0 }
 0x5a6   :  { %1620 = vadd.xlane.f32.xlu2 %v1619_v19  ;;  %1645 = vadd.xlane.f32.xlu0 %v1644_v60  ;;  %v97_v60 = vld [vmem:[#allocation5] sm:$0xff] }
 0x5be   :  { %1711 = vrot.lane.b32.xlu2 %v5193_v45, %s4496_s16 }
 0x5c6   :  { %1752 = vrot.lane.b32.xlu2 %v4556_v13, %s4496_s16 }
 0x611   :  { %v1618_v20 = vpop.xlane.xlu0 %1617  ;;  %v1643_v61 = vpop.xlane.xlu1 %1642 }
 0x612   :  { %v1631_v32 = vmul.f32 %v5183_v26, %v1618_v20  ;;  %v1653_v7 = vmul.f32 %v1643_v61, %v5183_v26 }
 0x614   :  { %v5201_v22 = vsub.f32 %v1608_v50, %v1631_v32  ;;  %v1657_v56 = vadd.f32 1e-05, %v1653_v7 }
 0x616   :  { %v1639_v30 = vmul.f32 %v5201_v22, %v5201_v22  ;;  %4195 = vrsqrt.f32 %v1657_v56  ;;  %vm1667_vm10 = vweird.f32 %v1657_v56 }
 0x618   :  { %v1647_v16 = vsel %vm114_vm0, %v1639_v30, 0.0 }
 0x619   :  { %v1621_v36 = vpop.xlane.xlu2 %1620  ;;  %1648 = vadd.xlane.f32.xlu1 %v1647_v16  ;;  %v1646_v1 = vpop.xlane.xlu0 %1645 }
 0x61a   :  { %v1632_v8 = vmul.f32 %v5183_v26, %v1621_v36  ;;  %v1654_v55 = vmul.f32 %v1646_v1, %v5183_v26 }
 0x61c   :  { %v5208_v11 = vsub.f32 %v1609_v52, %v1632_v8  ;;  %v4196_v18 = vpop.eup %4195  ;;  %v1658_v24 = vadd.f32 1e-05, %v1654_v55 }
 0x61d   :  { %v1662_v2 = vmul.f32 %v4196_v18, %v1657_v56  ;;  %vm1668_vm9 = vweird.f32 %v4196_v18  ;;  %v1745_v56 = vpack.c.bf16 %v98_v28, %v97_v60 }
 0x61e   :  { %v1640_v63 = vmul.f32 %v5208_v11, %v5208_v11  ;;  %4197 = vrsqrt.f32 %v1658_v24  ;;  %vm1669_vm11 = vmor %vm1667_vm10, %vm1668_vm9  ;;  %vm1677_vm13 = vweird.f32 %v1658_v24 }
 0x61f   :  { %v1663_v15 = vmul.f32 %v4196_v18, %v1662_v2 }
 0x620   :  { %v1650_v4 = vsel %vm114_vm0, %v1640_v63, 0.0 }
 0x621   :  { %1651 = vadd.xlane.f32.xlu0 %v1650_v4  ;;  %v1664_v21 = vmul.f32 0.5, %v1663_v15  ;;  %v5214_v10 = vpop.permute.xlu2 %1711 }
 0x623   :  { %v1665_v59 = vsub.f32 1.5, %v1664_v21 }
 0x624   :  { %v4198_v25 = vpop.eup %4197 }
 0x625   :  { %v1666_v62 = vmul.f32 %v4196_v18, %v1665_v59  ;;  %v1672_v9 = vmul.f32 %v4198_v25, %v1658_v24  ;;  %vm1678_vm12 = vweird.f32 %v4198_v25 }
 0x626   :  { %vm1679_vm14 = vmor %vm1677_vm13, %vm1678_vm12  ;;  %vm2664_vm13 = vcmask 1043456  }
 0x627   :  { %v1673_v38 = vmul.f32 %v4198_v25, %v1672_v9  ;;  %v1670_v57 = vsel %vm1669_vm11, %v4196_v18, %v1666_v62 }
 0x628   :  { %v1701_v46 = vmul.f32 %v1670_v57, %v1633_v44 }
 0x629   :  { %v1674_v53 = vmul.f32 0.5, %v1673_v38 }
 0x62a   :  { %v1706_v42 = vmul.f32 %v5193_v45, %v1701_v46 }
 0x62b   :  { %v1675_v40 = vsub.f32 1.5, %v1674_v53 }
 0x62c   :  { %v5222_v41 = vadd.f32 %v5214_v10, %v1706_v42 }
 0x62d   :  { %v1676_v34 = vmul.f32 %v4198_v25, %v1675_v40 }
 0x62f   :  { %v1680_v0 = vsel %vm1679_vm14, %v4198_v25, %v1676_v34 }
 0x630   :  { %v1702_v29 = vmul.f32 %v1680_v0, %v1634_v17 }
 0x632   :  { %1748 = vrot.lane.b32.xlu1 %v4546_v3, %s4496_s16  ;;  %v1707_v35 = vmul.f32 %v5193_v45, %v1702_v29 }
 0x634   :  { %v5225_v23 = vadd.f32 %v5214_v10, %v1707_v35 }
 0x635   :  { %1746 = vrot.lane.b32.xlu0 %v4550_v6, %s4496_s16 }
 0x636   :  { %v1718_v12 = vpack.c.bf16 %v5225_v23, %v5222_v41 }
 0x638   :  { %3823 = vmatmul.msk.bf16.vlgmr.msra.gmra.mxu3 %vm114_vm0, %v1718_v12 }
 0x68c   :  { %v1649_v5 = vpop.xlane.xlu1 %1648 }
 0x68d   :  { %v1655_v44 = vmul.f32 %v1649_v5, %v5183_v26 }
 0x68f   :  { %v1659_v3 = vadd.f32 1e-05, %v1655_v44 }
 0x691   :  { %4199 = vrsqrt.f32 %v1659_v3  ;;  %vm1687_vm8 = vweird.f32 %v1659_v3 }
 0x694   :  { %v1652_v33 = vpop.xlane.xlu0 %1651 }
 0x695   :  { %v1656_v50 = vmul.f32 %v1652_v33, %v5183_v26 }
 0x697   :  { %v4200_v6 = vpop.eup %4199  ;;  %v1660_v39 = vadd.f32 1e-05, %v1656_v50 }
 0x698   :  { %v1682_v27 = vmul.f32 %v4200_v6, %v1659_v3  ;;  %vm1688_vm15 = vweird.f32 %v4200_v6 }
 0x699   :  { %4201 = vrsqrt.f32 %v1660_v39  ;;  %vm1689_vm9 = vmor %vm1687_vm8, %vm1688_vm15  ;;  %vm1697_vm11 = vweird.f32 %v1660_v39 }
 0x69a   :  { %v1683_v51 = vmul.f32 %v4200_v6, %v1682_v27 }
 0x69c   :  { %v1684_v37 = vmul.f32 0.5, %v1683_v51 }
 0x69e   :  { %v1685_v43 = vsub.f32 1.5, %v1684_v37 }
 0x69f   :  { %v4202_v47 = vpop.eup %4201 }
 0x6a0   :  { %v1686_v58 = vmul.f32 %v4200_v6, %v1685_v43  ;;  %v1692_v17 = vmul.f32 %v4202_v47, %v1660_v39  ;;  %vm1698_vm10 = vweird.f32 %v4202_v47 }
 0x6a1   :  { %vm1699_vm12 = vmor %vm1697_vm11, %vm1698_vm10  ;;  %vm3454_vm11 = vcmask 523264  }
 0x6a2   :  { %v1693_v14 = vmul.f32 %v4202_v47, %v1692_v17  ;;  %v1690_v52 = vsel %vm1689_vm9, %v4200_v6, %v1686_v58 }
 0x6a3   :  { %v1703_v61 = vmul.f32 %v1690_v52, %v5201_v22 }
 0x6a4   :  { %v1694_v49 = vmul.f32 0.5, %v1693_v14  ;;  %v1749_v19 = vpop.permute.xlu1 %1748 }
 0x6a5   :  { %1764 = vmatpush.bf16.msra.mxu0 %v1749_v19  ;;  %v1708_v36 = vmul.f32 %v5193_v45, %v1703_v61 }
 0x6a6   :  { %v1695_v20 = vsub.f32 1.5, %v1694_v49 }
 0x6a7   :  { %v1747_v32 = vpop.permute.xlu0 %1746  ;;  %v5238_v8 = vadd.f32 %v5214_v10, %v1708_v36 }
 0x6a8   :  { %v1696_v7 = vmul.f32 %v4202_v47, %v1695_v20 }
 0x6a9   :  { %1765 = vmatpush.bf16.msra.mxu0 %v1747_v32 }
 0x6aa   :  { %v1700_v30 = vsel %vm1699_vm12, %v4202_v47, %v1696_v7 }
 0x6ab   :  { %v1704_v16 = vmul.f32 %v1700_v30, %v5208_v11  ;;  %v1753_v11 = vpop.permute.xlu2 %1752 }
 0x6ac   :  { %3825 = vmatmul.msk.bf16.vlgmr.msra.gmra.mxu0 %vm114_vm0, %v1745_v56 }
 0x6ad   :  { %v1709_v1 = vmul.f32 %v5193_v45, %v1704_v16 }
 0x6af   :  { %v5241_v55 = vadd.f32 %v5214_v10, %v1709_v1 }
 0x6b1   :  { %v1719_v22 = vpack.c.bf16 %v5241_v55, %v5238_v8 }
 0x6b3   :  { %3824 = vmatmul.msk.bf16.gmra.mxu3 %vm114_vm0, %v1719_v22 }
 0x6bb   :  { %v1735_v18 = vpop.f32.mrf.mxu3 }
 0x6bc   :  { %v1736_v4 = vadd.f32 %v1735_v18, %v4556_v13 }
 0x6be   :  { %v1772_v62 = vpack.c.bf16 %v1736_v4, %v1736_v4 }
 0x6c0   :  { %v1868_v53 = vunpack.c.l.b16 %v1772_v62 }
 0x6c3   :  { %v1737_v24 = vpop.f32.mrf.mxu3 }
 0x6c4   :  { %v1738_v2 = vadd.f32 %v1737_v24, %v4556_v13 }
 0x6c6   :  { %v1773_v59 = vpack.c.bf16 %v1738_v2, %v1738_v2 }
 0x6c8   :  { %v1869_v38 = vunpack.c.l.b16 %v1773_v59 }
 0x6ca   :  { %v1870_v46 = vpack.c.b16 %v1869_v38, %v1868_v53 }
 0x729   :  { %v1767_v63 = vpop.f32.mrf.mxu0 }
 0x72a   :  { %v1768_v15 = vadd.f32 %v1767_v63, %v1753_v11 }
 0x72c   :  { %v5248_v21 = vpack.c.bf16 %v1768_v15, %v1768_v15 }
 0x72e   :  { %1852 = vrot.lane.b32.xlu1 %v5248_v21, %s4494_s14  ;;  %1844 = vrot.lane.b32.xlu2 %v5248_v21, %s4490_s3  ;;  %v1875_v25 = vsel %vm209_vm1, %v5248_v21, 0  ;;  %v2657_v33 = vunpack.c.l.b16 %v5248_v21 }
 0x72f   :  { %1848 = vrot.lane.b32.xlu0 %v5248_v21, %s4489_s2  ;;  %1884 = vmatpush.bf16.xpose.msrb.mxu1 %v1875_v25 }
 0x730   :  { %v2658_v39 = vpack.c.b16 %v2657_v33, %v2657_v33 }
 0x731   :  { %v1769_v9 = vpop.f32.mrf.mxu0 }
 0x732   :  { %v1770_v57 = vadd.f32 %v1769_v9, %v1753_v11 }
 0x734   :  { %v5258_v40 = vpack.c.bf16 %v1770_v57, %v1770_v57 }
 0x736   :  { %1854 = vrot.lane.b32.xlu1 %v5258_v40, %s4494_s14  ;;  %1864 = vrot.lane.b32.xlu2 %v5248_v21, %s4495_s15  ;;  %v1740_v34 = vpop.f32.mrf.mxu3  ;;  %v2059_v52 = vsel %vm209_vm1, %v5258_v40, 0  ;;  %v2890_v32 = vunpack.c.l.b16 %v5258_v40 }
 0x737   :  { %1840 = vrot.lane.b32.xlu0 %v5248_v21, %s4491_s11  ;;  %3826 = vmatmul.msk.bf16.vlgmr.msrb.gmra.mxu1 %vm209_vm1, %v1870_v46  ;;  %v1741_v0 = vadd.f32 %v1740_v34, %v4556_v13 }
 0x738   :  { %v2891_v16 = vpack.c.b16 %v2890_v32, %v2890_v32 }
 0x739   :  { %v5293_v42 = vpack.c.bf16 %v1741_v0, %v1741_v0 }
 0x73e   :  { %1788 = vrot.lane.b32.xlu1 %v1772_v62, %s4490_s3  ;;  %1860 = vrot.lane.b32.xlu2 %v5248_v21, %s4493_s13  ;;  %v1742_v29 = vpop.f32.mrf.mxu3 }
 0x73f   :  { %1856 = vrot.lane.b32.xlu0 %v5248_v21, %s4492_s12  ;;  %v1743_v35 = vadd.f32 %v1742_v29, %v4556_v13 }
 0x741   :  { %v5305_v12 = vpack.c.bf16 %v1743_v35, %v1743_v35 }
 0x746   :  { %1804 = vrot.lane.b32.xlu1 %v1772_v62, %s4494_s14  ;;  %1846 = vrot.lane.b32.xlu2 %v5258_v40, %s4490_s3 }
 0x747   :  { %1850 = vrot.lane.b32.xlu0 %v5258_v40, %s4489_s2 }
 0x74e   :  { %1812 = vrot.lane.b32.xlu1 %v1772_v62, %s4492_s12  ;;  %1866 = vrot.lane.b32.xlu2 %v5258_v40, %s4495_s15 }
 0x74f   :  { %1842 = vrot.lane.b32.xlu0 %v5258_v40, %s4491_s11 }
 0x756   :  { %1798 = vrot.lane.b32.xlu1 %v1773_v59, %s4489_s2  ;;  %1796 = vrot.lane.b32.xlu2 %v1772_v62, %s4489_s2 }
 0x757   :  { %1858 = vrot.lane.b32.xlu0 %v5258_v40, %s4492_s12 }
 0x75e   :  { %1830 = vrot.lane.b32.xlu1 %v1773_v59, %s4495_s15  ;;  %1828 = vrot.lane.b32.xlu2 %v1772_v62, %s4495_s15 }
 0x75f   :  { %1780 = vrot.lane.b32.xlu0 %v1772_v62, %s4491_s11 }
 0x766   :  { %1822 = vrot.lane.b32.xlu1 %v1773_v59, %s4493_s13  ;;  %1820 = vrot.lane.b32.xlu2 %v1772_v62, %s4493_s13 }
 0x767   :  { %1790 = vrot.lane.b32.xlu0 %v1773_v59, %s4490_s3 }
 0x76e   :  { %1792 = vrot.lane.b32.xlu1 %v5293_v42, %s4490_s3  ;;  %1782 = vrot.lane.b32.xlu2 %v1773_v59, %s4491_s11 }
 0x76f   :  { %1806 = vrot.lane.b32.xlu0 %v1773_v59, %s4494_s14 }
 0x776   :  { %1808 = vrot.lane.b32.xlu1 %v5293_v42, %s4494_s14  ;;  %1862 = vrot.lane.b32.xlu2 %v5258_v40, %s4493_s13 }
 0x777   :  { %1814 = vrot.lane.b32.xlu0 %v1773_v59, %s4492_s12 }
 0x77e   :  { %1802 = vrot.lane.b32.xlu1 %v5305_v12, %s4489_s2  ;;  %1800 = vrot.lane.b32.xlu2 %v5293_v42, %s4489_s2 }
 0x77f   :  { %1784 = vrot.lane.b32.xlu0 %v5293_v42, %s4491_s11 }
 0x786   :  { %1816 = vrot.lane.b32.xlu1 %v5293_v42, %s4492_s12  ;;  %1832 = vrot.lane.b32.xlu2 %v5293_v42, %s4495_s15 }
 0x787   :  { %1794 = vrot.lane.b32.xlu0 %v5305_v12, %s4490_s3 }
 0x788   :  { %v1845_v13 = vpop.permute.xlu2 %1844 }
 0x789   :  { %v1921_v5 = vsel %vm209_vm1, %v1845_v13, 0  ;;  %v2716_v50 = vunpack.c.l.b16 %v1845_v13 }
 0x78a   :  { %1930 = vmatpush.bf16.xpose.msra.mxu1 %v1921_v5 }
 0x78b   :  { %v2717_v27 = vpack.c.b16 %v2716_v50, %v2716_v50 }
 0x78e   :  { %1834 = vrot.lane.b32.xlu1 %v5305_v12, %s4495_s15  ;;  %1786 = vrot.lane.b32.xlu2 %v5305_v12, %s4491_s11 }
 0x78f   :  { %1810 = vrot.lane.b32.xlu0 %v5305_v12, %s4494_s14 }
 0x790   :  { %v1865_v44 = vpop.permute.xlu2 %1864 }
 0x791   :  { %v2861_v51 = vunpack.c.l.b16 %v1865_v44  ;;  %v2036_v49 = vsel %vm209_vm1, %v1865_v44, 0 }
 0x793   :  { %v2862_v19 = vpack.c.b16 %v2861_v51, %v2861_v51 }
 0x796   :  { %1826 = vrot.lane.b32.xlu1 %v5305_v12, %s4493_s13  ;;  %1824 = vrot.lane.b32.xlu2 %v5293_v42, %s4493_s13 }
 0x797   :  { %1818 = vrot.lane.b32.xlu0 %v5305_v12, %s4492_s12 }
 0x798   :  { %v1861_v3 = vpop.permute.xlu2 %1860 }
 0x799   :  { %v2013_v6 = vsel %vm209_vm1, %v1861_v3, 0  ;;  %v2832_v15 = vunpack.c.l.b16 %v1861_v3 }
 0x79a   :  { %2022 = vmatpush.bf16.xpose.msrb.mxu1 %v2013_v6 }
 0x79b   :  { %v2833_v62 = vpack.c.b16 %v2832_v15, %v2832_v15 }
 0x79e   :  { %2659 = vrot.lane.b32.xlu2 %v2658_v39, %s4496_s16 }
 0x79f   :  { %2718 = vrot.lane.b32.xlu0 %v2717_v27, %s4496_s16 }
 0x7a0   :  { %v1853_v37 = vpop.permute.xlu1 %1852  ;;  %v5336_v43 = vpop.permute.xlu2 %1846 }
 0x7a1   :  { %v1849_v47 = vpop.permute.xlu0 %1848  ;;  %v1967_v58 = vsel %vm209_vm1, %v1853_v37, 0  ;;  %v2774_v36 = vunpack.c.l.b16 %v1853_v37  ;;  %v2948_v0 = vunpack.c.l.b16 %v5336_v43 }
 0x7a2   :  { %v2745_v17 = vunpack.c.l.b16 %v1849_v47  ;;  %v1944_v14 = vsel %vm209_vm1, %v1849_v47, 0  ;;  %1976 = vmatpush.bf16.xpose.msrb.mxu3 %v1967_v58 }
 0x7a3   :  { %1953 = vmatpush.bf16.xpose.msra.mxu2 %v1944_v14  ;;  %v2775_v2 = vpack.c.b16 %v2774_v36, %v2774_v36  ;;  %v2949_v33 = vpack.c.b16 %v2948_v0, %v2948_v0 }
 0x7a4   :  { %v2746_v60 = vpack.c.b16 %v2745_v17, %v2745_v17 }
 0x7a6   :  { %2747 = vrot.lane.b32.xlu1 %v2746_v60, %s4496_s16  ;;  %2863 = vrot.lane.b32.xlu2 %v2862_v19, %s4496_s16 }
 0x7a8   :  { %v5345_v28 = vpop.permute.xlu1 %1854  ;;  %v5347_v20 = vpop.permute.xlu2 %1866 }
 0x7a9   :  { %v1841_v61 = vpop.permute.xlu0 %1840  ;;  %v2220_v36 = vsel %vm209_vm1, %v5347_v20, 0  ;;  %v2151_v15 = vsel %vm209_vm1, %v5345_v28, 0 }
 0x7aa   :  { %2068 = vmatpush.bf16.xpose.msra.mxu3 %v2059_v52  ;;  %v2687_v7 = vunpack.c.l.b16 %v1841_v61  ;;  %v1898_v56 = vsel %vm209_vm1, %v1841_v61, 0 }
 0x7ab   :  { %2045 = vmatpush.bf16.xpose.msrb.mxu2 %v2036_v49  ;;  %1907 = vmatpush.bf16.xpose.msrb.mxu0 %v1898_v56 }
 0x7ac   :  { %v2688_v30 = vpack.c.b16 %v2687_v7, %v2687_v7 }
 0x7ae   :  { %2689 = vrot.lane.b32.xlu1 %v2688_v30, %s4496_s16  ;;  %2892 = vrot.lane.b32.xlu2 %v2891_v16, %s4496_s16 }
 0x7b0   :  { %v1789_v1 = vpop.permute.xlu1 %1788  ;;  %v1797_v22 = vpop.permute.xlu2 %1796 }
 0x7b1   :  { %v1857_v18 = vpop.permute.xlu0 %1856  ;;  %v1937_v13 = vunpack.c.l.b16 %v1797_v22  ;;  %v1914_v7 = vunpack.c.l.b16 %v1789_v1  ;;  %v2105_v22 = vsel %vm209_vm1, %v5336_v43, 0 }
 0x7b2   :  { %v2803_v24 = vunpack.c.l.b16 %v1857_v18  ;;  %v1990_v11 = vsel %vm209_vm1, %v1857_v18, 0 }
 0x7b3   :  { %1999 = vmatpush.bf16.xpose.msra.mxu0 %v1990_v11 }
 0x7b4   :  { %v2804_v63 = vpack.c.b16 %v2803_v24, %v2803_v24  ;;  %v5362_v34 = vpop.f32.mrf.mxu1 }
 0x7b6   :  { %2776 = vrot.lane.b32.xlu1 %v2775_v2, %s4496_s16  ;;  %2805 = vrot.lane.b32.xlu0 %v2804_v63, %s4496_s16 }
 0x7b8   :  { %v1805_v4 = vpop.permute.xlu1 %1804  ;;  %v1829_v21 = vpop.permute.xlu2 %1828 }
 0x7b9   :  { %v1851_v59 = vpop.permute.xlu0 %1850  ;;  %v2029_v32 = vunpack.c.l.b16 %v1829_v21  ;;  %v1960_v2 = vunpack.c.l.b16 %v1805_v4 }
 0x7ba   :  { %v2977_v25 = vunpack.c.l.b16 %v1851_v59  ;;  %v2128_v50 = vsel %vm209_vm1, %v1851_v59, 0 }
 0x7bc   :  { %v2978_v9 = vpack.c.b16 %v2977_v25, %v2977_v25  ;;  %v1888_v6 = vpop.f32.mrf.mxu1 }
 0x7bd   :  { %v5373_v37 = vmul.f32 0.5, %v1888_v6 }
 0x7be   :  { %2834 = vrot.lane.b32.xlu0 %v2833_v62, %s4496_s16  ;;  %2979 = vrot.lane.b32.xlu1 %v2978_v9, %s4496_s16 }
 0x7bf   :  { %v2271_v52 = vsel %vm1538_vm3, %v5373_v37, -inf }
 0x7c0   :  { %v5358_v38 = vpop.permute.xlu1 %1812  ;;  %v5360_v57 = vpop.permute.xlu2 %1820 }
 0x7c1   :  { %v1843_v53 = vpop.permute.xlu0 %1842  ;;  %v1983_v43 = vunpack.c.l.b16 %v5358_v38  ;;  %v2006_v9 = vunpack.c.l.b16 %v5360_v57  ;;  %v2053_v38 = vunpack.c.l.b16 %v5305_v12 }
 0x7c2   :  { %v2919_v40 = vunpack.c.l.b16 %v1843_v53  ;;  %v2082_v14 = vsel %vm209_vm1, %v1843_v53, 0 }
 0x7c4   :  { %v2920_v46 = vpack.c.b16 %v2919_v40, %v2919_v40 }
 0x7c6   :  { %2921 = vrot.lane.b32.xlu0 %v2920_v46, %s4496_s16 }
 0x7c8   :  { %v1799_v29 = vpop.permute.xlu1 %1798  ;;  %v1783_v35 = vpop.permute.xlu2 %1782 }
 0x7c9   :  { %v1938_v5 = vunpack.c.l.b16 %v1799_v29  ;;  %v5366_v44 = vpop.permute.xlu0 %1858  ;;  %v1892_v47 = vunpack.c.l.b16 %v1783_v35 }
 0x7ca   :  { %v2174_v4 = vsel %vm209_vm1, %v5366_v44, 0 }
 0x7cb   :  { %v1939_v3 = vpack.c.b16 %v1938_v5, %v1937_v13 }
 0x7cd   :  { %3829 = vmatmul.msk.bf16.vlgmr.msra.gmra.mxu2 %vm209_vm1, %v1939_v3  ;;  %v2052_v3 = vunpack.c.l.b16 %v5293_v42 }
 0x7ce   :  { %2137 = vmatpush.bf16.xpose.msra.mxu2 %v2128_v50  ;;  %2950 = vrot.lane.b32.xlu0 %v2949_v33, %s4496_s16  ;;  %v5399_v33 = vmul.f32 0.5, %v5362_v34 }
 0x7cf   :  { %v2054_v6 = vpack.c.b16 %v2053_v38, %v2052_v3 }
 0x7d0   :  { %v1831_v39 = vpop.permute.xlu1 %1830  ;;  %v5371_v27 = vpop.permute.xlu2 %1862 }
 0x7d1   :  { %v1781_v51 = vpop.permute.xlu0 %1780  ;;  %v2030_v49 = vunpack.c.l.b16 %v1831_v39  ;;  %v2197_v0 = vsel %vm209_vm1, %v5371_v27, 0  ;;  %v2268_v39 = vsel %vm1538_vm3, %v5399_v33, -inf }
 0x7d2   :  { %v1891_v58 = vunpack.c.l.b16 %v1781_v51 }
 0x7d3   :  { %v2031_v30 = vpack.c.b16 %v2030_v49, %v2029_v32 }
 0x7d4   :  { %v1893_v17 = vpack.c.b16 %v1892_v47, %v1891_v58 }
 0x7d6   :  { %3827 = vmatmul.msk.bf16.vlgmr.msrb.gmra.mxu0 %vm209_vm1, %v1893_v17 }
 0x7d7   :  { %2091 = vmatpush.bf16.xpose.msrb.mxu0 %v2082_v14  ;;  %2272 = vmax.xlane.f32.xlu2 %v2271_v52 }
 0x7d8   :  { %v1823_v19 = vpop.permute.xlu1 %1822  ;;  %v1801_v60 = vpop.permute.xlu2 %1800 }
 0x7d9   :  { %v1791_v61 = vpop.permute.xlu0 %1790  ;;  %v2007_v21 = vunpack.c.l.b16 %v1823_v19  ;;  %v2121_v57 = vunpack.c.l.b16 %v1801_v60 }
 0x7da   :  { %v1915_v56 = vunpack.c.l.b16 %v1791_v61 }
 0x7db   :  { %v2008_v40 = vpack.c.b16 %v2007_v21, %v2006_v9 }
 0x7dc   :  { %v1916_v16 = vpack.c.b16 %v1915_v56, %v1914_v7 }
 0x7dd   :  { %3833 = vmatmul.msk.bf16.vlgmr.msrb.gmra.mxu2 %vm209_vm1, %v2031_v30 }
 0x7de   :  { %3828 = vmatmul.msk.bf16.vlgmr.msra.gmra.mxu1 %vm209_vm1, %v1916_v16  ;;  %2229 = vmatpush.bf16.xpose.msrb.mxu2 %v2220_v36 }
 0x7df   :  { %2114 = vmatpush.bf16.xpose.msra.mxu1 %v2105_v22 }
 0x7e0   :  { %v1793_v18 = vpop.permute.xlu1 %1792  ;;  %v1833_v24 = vpop.permute.xlu2 %1832 }
 0x7e1   :  { %v1807_v11 = vpop.permute.xlu0 %1806  ;;  %v2098_v17 = vunpack.c.l.b16 %v1793_v18  ;;  %v2213_v60 = vunpack.c.l.b16 %v1833_v24 }
 0x7e2   :  { %v1961_v1 = vunpack.c.l.b16 %v1807_v11 }
 0x7e4   :  { %v1962_v63 = vpack.c.b16 %v1961_v1, %v1960_v2 }
 0x7e6   :  { %3830 = vmatmul.msk.bf16.vlgmr.msrb.gmra.mxu3 %vm209_vm1, %v1962_v63 }
 0x7e7   :  { %2160 = vmatpush.bf16.xpose.msrb.mxu3 %v2151_v15 }
 0x7e8   :  { %v1809_v59 = vpop.permute.xlu1 %1808  ;;  %v1787_v25 = vpop.permute.xlu2 %1786 }
 0x7e9   :  { %v1815_v62 = vpop.permute.xlu0 %1814  ;;  %v2076_v34 = vunpack.c.l.b16 %v1787_v25  ;;  %v2144_v7 = vunpack.c.l.b16 %v1809_v59 }
 0x7ea   :  { %v1984_v53 = vunpack.c.l.b16 %v1815_v62 }
 0x7ec   :  { %v1985_v46 = vpack.c.b16 %v1984_v53, %v1983_v43 }
 0x7ee   :  { %3831 = vmatmul.msk.bf16.vlgmr.msra.gmra.mxu0 %vm209_vm1, %v1985_v46  ;;  %3832 = vmatmul.msk.bf16.vlgmr.msrb.gmra.mxu1 %vm209_vm1, %v2008_v40 }
 0x7ef   :  { %2183 = vmatpush.bf16.xpose.msra.mxu0 %v2174_v4  ;;  %2206 = vmatpush.bf16.xpose.msrb.mxu1 %v2197_v0 }
 0x7f0   :  { %v1803_v29 = vpop.permute.xlu1 %1802  ;;  %v1825_v35 = vpop.permute.xlu2 %1824 }
 0x7f1   :  { %v2122_v13 = vunpack.c.l.b16 %v1803_v29  ;;  %v1785_v5 = vpop.permute.xlu0 %1784  ;;  %v2190_v22 = vunpack.c.l.b16 %v1825_v35 }
 0x7f2   :  { %v2075_v51 = vunpack.c.l.b16 %v1785_v5 }
 0x7f3   :  { %v2123_v50 = vpack.c.b16 %v2122_v13, %v2121_v57 }
 0x7f4   :  { %v2077_v52 = vpack.c.b16 %v2076_v34, %v2075_v51 }
 0x7f5   :  { %3837 = vmatmul.msk.bf16.vlgmr.msra.gmra.mxu2 %vm209_vm1, %v2123_v50 }
 0x7f6   :  { %3834 = vmatmul.msk.bf16.vlgmr.msra.gmra.mxu3 %vm209_vm1, %v2054_v6 }
 0x7f8   :  { %2269 = vmax.xlane.f32.xlu0 %v2268_v39  ;;  %v1817_v12 = vpop.permute.xlu1 %1816  ;;  %v2660_v47 = vpop.permute.xlu2 %2659 }
 0x7f9   :  { %v1795_v58 = vpop.permute.xlu0 %1794  ;;  %v2666_v42 = vsel %vm2664_vm13, %v2660_v47, 0  ;;  %v2167_v2 = vunpack.c.l.b16 %v1817_v12 }
 0x7fa   :  { %v2099_v14 = vunpack.c.l.b16 %v1795_v58  ;;  %2675 = vmatpush.bf16.msra.mxu3 %v2666_v42 }
 0x7fc   :  { %v2100_v49 = vpack.c.b16 %v2099_v14, %v2098_v17 }
 0x7fe   :  { %3835 = vmatmul.msk.bf16.vlgmr.msrb.gmra.mxu0 %vm209_vm1, %v2077_v52  ;;  %3836 = vmatmul.msk.bf16.vlgmr.msra.gmra.mxu1 %vm209_vm1, %v2100_v49 }
 0x800   :  { %v1835_v19 = vpop.permute.xlu1 %1834  ;;  %v2864_v59 = vpop.permute.xlu2 %2863 }
 0x801   :  { %v2214_v32 = vunpack.c.l.b16 %v1835_v19  ;;  %v1811_v61 = vpop.permute.xlu0 %1810  ;;  %v2869_v43 = vsel %vm2664_vm13, %v2864_v59, 0 }
 0x802   :  { %v2145_v56 = vunpack.c.l.b16 %v1811_v61 }
 0x803   :  { %v2215_v30 = vpack.c.b16 %v2214_v32, %v2213_v60 }
 0x804   :  { %v2146_v16 = vpack.c.b16 %v2145_v56, %v2144_v7 }
 0x805   :  { %3841 = vmatmul.msk.bf16.vlgmr.msrb.gmra.mxu2 %vm209_vm1, %v2215_v30 }
 0x806   :  { %3838 = vmatmul.msk.bf16.vlgmr.msrb.gmra.mxu3 %vm209_vm1, %v2146_v16 }
 0x808   :  { %v1827_v36 = vpop.permute.xlu1 %1826  ;;  %v5443_v49 = vpop.permute.xlu2 %2892 }
 0x809   :  { %v2191_v18 = vunpack.c.l.b16 %v1827_v36  ;;  %v1819_v11 = vpop.permute.xlu0 %1818 }
 0x80a   :  { %v2168_v1 = vunpack.c.l.b16 %v1819_v11 }
 0x80b   :  { %v2192_v63 = vpack.c.b16 %v2191_v18, %v2190_v22 }
 0x80c   :  { %v2169_v15 = vpack.c.b16 %v2168_v1, %v2167_v2 }
 0x80e   :  { %3839 = vmatmul.msk.bf16.vlgmr.msra.gmra.mxu0 %vm209_vm1, %v2169_v15  ;;  %3840 = vmatmul.msk.bf16.vlgmr.msrb.gmra.mxu1 %vm209_vm1, %v2192_v63 }
 0x811   :  { %v2719_v24 = vpop.permute.xlu0 %2718 }
 0x812   :  { %v2724_v21 = vsel %vm2664_vm13, %v2719_v24, 0 }
 0x813   :  { %2733 = vmatpush.bf16.msra.mxu1 %v2724_v21 }
 0x818   :  { %v2748_v25 = vpop.permute.xlu1 %2747 }
 0x819   :  { %v2753_v62 = vsel %vm2664_vm13, %v2748_v25, 0 }
 0x81a   :  { %2762 = vmatpush.bf16.msra.mxu2 %v2753_v62 }
 0x81e   :  { %2878 = vmatpush.bf16.msrb.mxu2 %v2869_v43 }
 0x820   :  { %v2690_v9 = vpop.permute.xlu1 %2689 }
 0x821   :  { %v2695_v53 = vsel %vm2664_vm13, %v2690_v9, 0 }
 0x822   :  { %2704 = vmatpush.bf16.msrb.mxu0 %v2695_v53 }
 0x828   :  { %v2777_v40 = vpop.permute.xlu1 %2776  ;;  %v2806_v46 = vpop.permute.xlu0 %2805 }
 0x829   :  { %v2782_v4 = vsel %vm2664_vm13, %v2777_v40, 0  ;;  %v2811_v0 = vsel %vm2664_vm13, %v2806_v46, 0 }
 0x82a   :  { %2791 = vmatpush.bf16.msrb.mxu3 %v2782_v4  ;;  %2820 = vmatpush.bf16.msra.mxu0 %v2811_v0 }
 0x830   :  { %v2835_v29 = vpop.permute.xlu0 %2834 }
 0x831   :  { %v2840_v35 = vsel %vm2664_vm13, %v2835_v29, 0 }
 0x832   :  { %2849 = vmatpush.bf16.msrb.mxu1 %v2840_v35 }
 0x838   :  { %v5427_v6 = vpop.permute.xlu0 %2921 }
 0x840   :  { %v5435_v42 = vpop.permute.xlu0 %2950 }
 0x84a   :  { %v2273_v16 = vpop.xlane.xlu2 %2272 }
 0x84b   :  { %v2365_v11 = vsub.f32 %v5373_v37, %v2273_v16 }
 0x84d   :  { %v2398_v21 = vmul.f32 1.442695, %v2365_v11 }
 0x850   :  { %v1955_v38 = vpop.f32.mrf.mxu2 }
 0x851   :  { %v5419_v57 = vmul.f32 0.5, %v1955_v38 }
 0x853   :  { %v1909_v13 = vpop.f32.mrf.mxu0  ;;  %v2286_v5 = vsel %vm1538_vm3, %v5419_v57, -inf }
 0x854   :  { %v5423_v3 = vmul.f32 0.5, %v1909_v13  ;;  %2287 = vmax.xlane.f32.xlu1 %v2286_v5 }
 0x856   :  { %v2274_v50 = vsel %vm1538_vm3, %v5423_v3, -inf }
 0x857   :  { %2275 = vmax.xlane.f32.xlu2 %v2274_v50 }
 0x858   :  { %v1957_v47 = vpop.f32.mrf.mxu2 }
 0x859   :  { %v5433_v58 = vmul.f32 0.5, %v1957_v47 }
 0x85b   :  { %v1932_v39 = vpop.f32.mrf.mxu1  ;;  %v2289_v14 = vsel %vm1538_vm3, %v5433_v58, -inf  ;;  %v1911_v56 = vpop.f32.mrf.mxu0 }
 0x85c   :  { %v5429_v51 = vmul.f32 0.5, %v1932_v39  ;;  %v5450_v36 = vmul.f32 0.5, %v1911_v56 }
 0x85e   :  { %v2280_v12 = vsel %vm1538_vm3, %v5429_v51, -inf }
 0x85f   :  { %2281 = vmax.xlane.f32.xlu0 %v2280_v12 }
 0x860   :  { %v2047_v2 = vpop.f32.mrf.mxu2 }
 0x861   :  { %v5467_v43 = vmul.f32 0.5, %v2047_v2 }
 0x863   :  { %v1934_v17 = vpop.f32.mrf.mxu1  ;;  %v2310_v0 = vsel %vm1538_vm3, %v5467_v43, -inf }
 0x864   :  { %v5437_v34 = vmul.f32 0.5, %v1934_v17 }
 0x866   :  { %v2283_v52 = vsel %vm1538_vm3, %v5437_v34, -inf }
 0x867   :  { %2290 = vmax.xlane.f32.xlu0 %v2289_v14  ;;  %2284 = vmax.xlane.f32.xlu2 %v2283_v52 }
 0x868   :  { %v2049_v40 = vpop.f32.mrf.mxu2 }
 0x869   :  { %v1978_v19 = vpop.f32.mrf.mxu3  ;;  %v5487_v47 = vmul.f32 0.5, %v2049_v40 }
 0x86a   :  { %v5445_v60 = vmul.f32 0.5, %v1978_v19 }
 0x86b   :  { %v2270_v32 = vpop.xlane.xlu0 %2269  ;;  %v2024_v1 = vpop.f32.mrf.mxu1  ;;  %v2313_v19 = vsel %vm1538_vm3, %v5487_v47, -inf }
 0x86c   :  { %v2364_v61 = vsub.f32 %v5399_v33, %v2270_v32  ;;  %v2292_v7 = vsel %vm1538_vm3, %v5445_v60, -inf  ;;  %v2277_v33 = vsel %vm1538_vm3, %v5450_v36, -inf  ;;  %v2001_v15 = vpop.f32.mrf.mxu0  ;;  %v5465_v37 = vmul.f32 0.5, %v2024_v1 }
 0x86d   :  { %2293 = vmax.xlane.f32.xlu1 %v2292_v7  ;;  %v5463_v25 = vmul.f32 0.5, %v2001_v15 }
 0x86e   :  { %v2396_v30 = vmul.f32 1.442695, %v2364_v61  ;;  %v2304_v53 = vsel %vm1538_vm3, %v5465_v37, -inf }
 0x86f   :  { %v2298_v9 = vsel %vm1538_vm3, %v5463_v25, -inf }
 0x870   :  { %4203 = vpow2.f32 %v2396_v30 }
 0x871   :  { %v1980_v22 = vpop.f32.mrf.mxu3  ;;  %4205 = vpow2.f32 %v2398_v21 }
 0x872   :  { %v5452_v18 = vmul.f32 0.5, %v1980_v22 }
 0x873   :  { %v2026_v46 = vpop.f32.mrf.mxu1 }
 0x874   :  { %v2295_v63 = vsel %vm1538_vm3, %v5452_v18, -inf  ;;  %v2003_v4 = vpop.f32.mrf.mxu0  ;;  %v5475_v29 = vmul.f32 0.5, %v2026_v46 }
 0x875   :  { %2278 = vmax.xlane.f32.xlu1 %v2277_v33  ;;  %2296 = vmax.xlane.f32.xlu0 %v2295_v63  ;;  %v5491_v52 = vmul.f32 0.5, %v2003_v4 }
 0x876   :  { %v5459_v24 = vpop.eup %4203  ;;  %v2307_v50 = vsel %vm1538_vm3, %v5475_v29, -inf }
 0x877   :  { %v2460_v59 = vsel %vm1538_vm3, %v5459_v24, 0.0  ;;  %v5477_v35 = vpop.eup %4205  ;;  %v2301_v56 = vsel %vm1538_vm3, %v5491_v52, -inf }
 0x878   :  { %2461 = vadd.xlane.f32.xlu2 %v2460_v59  ;;  %v2463_v5 = vsel %vm1538_vm3, %v5477_v35, 0.0  ;;  %v2139_v39 = vpop.f32.mrf.mxu2 }
 0x879   :  { %v2070_v62 = vpop.f32.mrf.mxu3  ;;  %v5489_v17 = vmul.f32 0.5, %v2139_v39 }
 0x87a   :  { %v5479_v38 = vmul.f32 0.5, %v2070_v62 }
 0x87b   :  { %v2334_v32 = vsel %vm1538_vm3, %v5489_v17, -inf  ;;  %v2116_v7 = vpop.f32.mrf.mxu1 }
 0x87c   :  { %v2316_v12 = vsel %vm1538_vm3, %v5479_v38, -inf  ;;  %v2093_v14 = vpop.f32.mrf.mxu0  ;;  %v5503_v11 = vmul.f32 0.5, %v2116_v7 }
 0x87d   :  { %2299 = vmax.xlane.f32.xlu0 %v2298_v9  ;;  %2305 = vmax.xlane.f32.xlu1 %v2304_v53  ;;  %v5511_v15 = vmul.f32 0.5, %v2093_v14 }
 0x87e   :  { %v2328_v63 = vsel %vm1538_vm3, %v5503_v11, -inf }
 0x87f   :  { %v2322_v53 = vsel %vm1538_vm3, %v5511_v15, -inf }
 0x880   :  { %2311 = vmax.xlane.f32.xlu2 %v2310_v0  ;;  %v2141_v22 = vpop.f32.mrf.mxu2 }
 0x881   :  { %v2072_v13 = vpop.f32.mrf.mxu3  ;;  %v5515_v62 = vmul.f32 0.5, %v2141_v22 }
 0x882   :  { %v5499_v30 = vmul.f32 0.5, %v2072_v13 }
 0x883   :  { %v2118_v59 = vpop.f32.mrf.mxu1  ;;  %v2337_v4 = vsel %vm1538_vm3, %v5515_v62, -inf }
 0x884   :  { %v2095_v2 = vpop.f32.mrf.mxu0  ;;  %v2319_v1 = vsel %vm1538_vm3, %v5499_v30, -inf  ;;  %v5523_v0 = vmul.f32 0.5, %v2118_v59 }
 0x885   :  { %2464 = vadd.xlane.f32.xlu1 %v2463_v5  ;;  %2308 = vmax.xlane.f32.xlu0 %v2307_v50  ;;  %v5513_v21 = vmul.f32 0.5, %v2095_v2 }
 0x886   :  { %v2331_v14 = vsel %vm1538_vm3, %v5523_v0, -inf }
 0x887   :  { %v2325_v40 = vsel %vm1538_vm3, %v5513_v21, -inf }
 0x888   :  { %2317 = vmax.xlane.f32.xlu2 %v2316_v12  ;;  %v2231_v9 = vpop.f32.mrf.mxu2 }
 0x889   :  { %v2162_v61 = vpop.f32.mrf.mxu3 }
 0x88a   :  { %v5501_v16 = vmul.f32 0.5, %v2162_v61  ;;  %v5535_v61 = vmul.f32 0.5, %v2231_v9 }
 0x88b   :  { %v2208_v50 = vpop.f32.mrf.mxu1 }
 0x88c   :  { %v2340_v33 = vsel %vm1538_vm3, %v5501_v16, -inf  ;;  %v2185_v46 = vpop.f32.mrf.mxu0  ;;  %v2358_v2 = vsel %vm1538_vm3, %v5535_v61, -inf }
 0x88d   :  { %2314 = vmax.xlane.f32.xlu1 %v2313_v19  ;;  %2335 = vmax.xlane.f32.xlu0 %v2334_v32  ;;  %v5525_v13 = vmul.f32 0.5, %v2185_v46  ;;  %v5555_v46 = vpop.permute.xlu1 %2979 }
 0x88f   :  { %v2346_v12 = vsel %vm1538_vm3, %v5525_v13, -inf }
 0x890   :  { %2302 = vmax.xlane.f32.xlu2 %v2301_v56  ;;  %v2233_v19 = vpop.f32.mrf.mxu2  ;;  %v5539_v56 = vmul.f32 0.5, %v2208_v50 }
 0x891   :  { %v2164_v5 = vpop.f32.mrf.mxu3  ;;  %v5537_v7 = vmul.f32 0.5, %v2233_v19 }
 0x892   :  { %v5527_v39 = vmul.f32 0.5, %v2164_v5 }
 0x893   :  { %v2361_v22 = vsel %vm1538_vm3, %v5537_v7, -inf }
 0x894   :  { %v2343_v32 = vsel %vm1538_vm3, %v5527_v39, -inf }
 0x895   :  { %2320 = vmax.xlane.f32.xlu1 %v2319_v1  ;;  %2341 = vmax.xlane.f32.xlu0 %v2340_v33  ;;  %v2210_v1 = vpop.f32.mrf.mxu1  ;;  %v2352_v33 = vsel %vm1538_vm3, %v5539_v56, -inf }
 0x896   :  { %v5547_v59 = vmul.f32 0.5, %v2210_v1 }
 0x898   :  { %2329 = vmax.xlane.f32.xlu2 %v2328_v63  ;;  %v2187_v63 = vpop.f32.mrf.mxu0 }
 0x899   :  { %v5549_v9 = vmul.f32 0.5, %v2187_v63 }
 0x89d   :  { %2323 = vmax.xlane.f32.xlu1 %v2322_v53  ;;  %2326 = vmax.xlane.f32.xlu0 %v2325_v40  ;;  %v2355_v53 = vsel %vm1538_vm3, %v5547_v59, -inf  ;;  %v2349_v40 = vsel %vm1538_vm3, %v5549_v9, -inf }
 0x8a0   :  { %2338 = vmax.xlane.f32.xlu2 %v2337_v4 }
 0x8a5   :  { %2347 = vmax.xlane.f32.xlu0 %v2346_v12  ;;  %2332 = vmax.xlane.f32.xlu1 %v2331_v14 }
 0x8a8   :  { %2344 = vmax.xlane.f32.xlu2 %v2343_v32 }
 0x8ad   :  { %2362 = vmax.xlane.f32.xlu0 %v2361_v22  ;;  %2359 = vmax.xlane.f32.xlu1 %v2358_v2 }
 0x8b0   :  { %2353 = vmax.xlane.f32.xlu2 %v2352_v33 }
 0x8b5   :  { %2356 = vmax.xlane.f32.xlu1 %v2355_v53 }
 0x8b8   :  { %2350 = vmax.xlane.f32.xlu2 %v2349_v40 }
 0x8c7   :  { %v2288_v12 = vpop.xlane.xlu1 %2287 }
 0x8c8   :  { %v2370_v22 = vsub.f32 %v5419_v57, %v2288_v12 }
 0x8ca   :  { %v2276_v4 = vpop.xlane.xlu2 %2275  ;;  %v2408_v33 = vmul.f32 1.442695, %v2370_v22 }
 0x8cb   :  { %v2366_v5 = vsub.f32 %v5423_v3, %v2276_v4 }
 0x8cd   :  { %v2400_v50 = vmul.f32 1.442695, %v2366_v5 }
 0x8cf   :  { %4207 = vpow2.f32 %v2400_v50 }
 0x8d2   :  { %v2282_v14 = vpop.xlane.xlu0 %2281 }
 0x8d3   :  { %v2368_v19 = vsub.f32 %v5429_v51, %v2282_v14 }
 0x8d5   :  { %v5559_v32 = vpop.eup %4207  ;;  %v2404_v2 = vmul.f32 1.442695, %v2368_v19 }
 0x8d6   :  { %v2466_v1 = vsel %vm1538_vm3, %v5559_v32, 0.0 }
 0x8d7   :  { %4209 = vpow2.f32 %v2404_v2  ;;  %2467 = vadd.xlane.f32.xlu0 %v2466_v1 }
 0x8d8   :  { %4211 = vpow2.f32 %v2408_v33 }
 0x8da   :  { %v2291_v53 = vpop.xlane.xlu0 %2290  ;;  %v2285_v51 = vpop.xlane.xlu2 %2284 }
 0x8db   :  { %v2369_v5 = vsub.f32 %v5437_v34, %v2285_v51  ;;  %v2371_v1 = vsub.f32 %v5433_v58, %v2291_v53 }
 0x8dd   :  { %v5564_v63 = vpop.eup %4209  ;;  %v2406_v14 = vmul.f32 1.442695, %v2369_v5  ;;  %v2410_v51 = vmul.f32 1.442695, %v2371_v1 }
 0x8de   :  { %v2472_v3 = vsel %vm1538_vm3, %v5564_v63, 0.0  ;;  %v5569_v57 = vpop.eup %4211 }
 0x8df   :  { %2473 = vadd.xlane.f32.xlu1 %v2472_v3  ;;  %v2478_v12 = vsel %vm1538_vm3, %v5569_v57, 0.0 }
 0x8e0   :  { %v2294_v40 = vpop.xlane.xlu1 %2293 }
 0x8e1   :  { %v2372_v4 = vsub.f32 %v5445_v60, %v2294_v40 }
 0x8e3   :  { %v2412_v50 = vmul.f32 1.442695, %v2372_v4 }
 0x8e5   :  { %4213 = vpow2.f32 %v2412_v50 }
 0x8e6   :  { %4215 = vpow2.f32 %v2406_v14 }
 0x8e7   :  { %2479 = vadd.xlane.f32.xlu1 %v2478_v12 }
 0x8e8   :  { %v2279_v19 = vpop.xlane.xlu1 %2278  ;;  %v2297_v22 = vpop.xlane.xlu0 %2296 }
 0x8e9   :  { %v2367_v2 = vsub.f32 %v5450_v36, %v2279_v19  ;;  %v2373_v53 = vsub.f32 %v5452_v18, %v2297_v22 }
 0x8eb   :  { %v5576_v33 = vpop.eup %4213  ;;  %v2402_v60 = vmul.f32 1.442695, %v2367_v2  ;;  %v2462_v3 = vpop.xlane.xlu2 %2461 }
 0x8ec   :  { %v2484_v34 = vsel %vm1538_vm3, %v5576_v33, 0.0  ;;  %v5580_v5 = vpop.eup %4215 }
 0x8ed   :  { %4217 = vpow2.f32 %v2402_v60  ;;  %2485 = vadd.xlane.f32.xlu0 %v2484_v34  ;;  %v2475_v2 = vsel %vm1538_vm3, %v5580_v5, 0.0 }
 0x8ee   :  { %4219 = vpow2.f32 %v2410_v51 }
 0x8ef   :  { %4221 = vrcp.f32 %v2462_v3 }
 0x8f0   :  { %v2300_v40 = vpop.xlane.xlu0 %2299  ;;  %v2306_v4 = vpop.xlane.xlu1 %2305 }
 0x8f1   :  { %v2374_v50 = vsub.f32 %v5463_v25, %v2300_v40  ;;  %v2376_v36 = vsub.f32 %v5465_v37, %v2306_v4  ;;  %v2414_v25 = vmul.f32 1.442695, %v2373_v53 }
 0x8f3   :  { %v5584_v58 = vpop.eup %4217  ;;  %v2416_v12 = vmul.f32 1.442695, %v2374_v50  ;;  %v2420_v14 = vmul.f32 1.442695, %v2376_v36  ;;  %v2312_v19 = vpop.xlane.xlu2 %2311 }
 0x8f4   :  { %v2469_v1 = vsel %vm1538_vm3, %v5584_v58, 0.0  ;;  %v5591_v37 = vpop.eup %4219  ;;  %v2378_v51 = vsub.f32 %v5467_v43, %v2312_v19 }
 0x8f5   :  { %4223 = vpow2.f32 %v2416_v12  ;;  %2476 = vadd.xlane.f32.xlu0 %v2475_v2  ;;  %2470 = vadd.xlane.f32.xlu2 %v2469_v1  ;;  %v4222_v18 = vpop.eup %4221  ;;  %v2481_v53 = vsel %vm1538_vm3, %v5591_v37, 0.0 }
 0x8f6   :  { %4225 = vpow2.f32 %v2420_v14  ;;  %v2588_v36 = vmul.f32 %v4222_v18, %v5459_v24  ;;  %v2424_v14 = vmul.f32 1.442695, %v2378_v51 }
 0x8f8   :  { %v2465_v60 = vpop.xlane.xlu1 %2464  ;;  %v2309_v34 = vpop.xlane.xlu0 %2308  ;;  %v2620_v19 = vpack.c.bf16 %v2588_v36, %v2588_v36 }
 0x8f9   :  { %4227 = vrcp.f32 %v2465_v60  ;;  %v2377_v22 = vsub.f32 %v5475_v29, %v2309_v34 }
 0x8fa   :  { %4229 = vpow2.f32 %v2414_v25  ;;  %v2654_v36 = vunpack.c.l.b16 %v2620_v19 }
 0x8fb   :  { %v5594_v3 = vpop.eup %4223  ;;  %v2422_v40 = vmul.f32 1.442695, %v2377_v22  ;;  %v2318_v4 = vpop.xlane.xlu2 %2317 }
 0x8fc   :  { %v5597_v50 = vpop.eup %4225  ;;  %v2490_v12 = vsel %vm1538_vm3, %v5594_v3, 0.0 }
 0x8fd   :  { %4231 = vpow2.f32 %v2422_v40  ;;  %2482 = vadd.xlane.f32.xlu0 %v2481_v53  ;;  %v2496_v29 = vsel %vm1538_vm3, %v5597_v50, 0.0  ;;  %2491 = vadd.xlane.f32.xlu1 %v2490_v12  ;;  %v2380_v40 = vsub.f32 %v5479_v38, %v2318_v4  ;;  %v2898_v38 = vsel %vm2664_vm13, %v5443_v49, 0 }
 0x8fe   :  { %2497 = vadd.xlane.f32.xlu2 %v2496_v29  ;;  %4233 = vpow2.f32 %v2424_v14 }
 0x8ff   :  { %v4228_v43 = vpop.eup %4227 }
 0x900   :  { %v2589_v2 = vmul.f32 %v4228_v43, %v5477_v35  ;;  %v2315_v1 = vpop.xlane.xlu1 %2314  ;;  %v2336_v24 = vpop.xlane.xlu0 %2335 }
 0x901   :  { %v5607_v25 = vpop.eup %4229  ;;  %v2379_v60 = vsub.f32 %v5487_v47, %v2315_v1  ;;  %v2386_v34 = vsub.f32 %v5489_v17, %v2336_v24  ;;  %v2428_v17 = vmul.f32 1.442695, %v2380_v40 }
 0x902   :  { %v2621_v18 = vpack.c.bf16 %v2589_v2, %v2589_v2  ;;  %v2487_v35 = vsel %vm1538_vm3, %v5607_v25, 0.0 }
 0x903   :  { %v5611_v22 = vpop.eup %4231  ;;  %v2426_v53 = vmul.f32 1.442695, %v2379_v60  ;;  %v2440_v12 = vmul.f32 1.442695, %v2386_v34  ;;  %v2303_v51 = vpop.xlane.xlu2 %2302 }
 0x904   :  { %v2655_v29 = vunpack.c.l.b16 %v2621_v18  ;;  %v2499_v43 = vsel %vm1538_vm3, %v5611_v22, 0.0  ;;  %v5621_v19 = vpop.eup %4233  ;;  %v2375_v1 = vsub.f32 %v5491_v52, %v2303_v51 }
 0x905   :  { %4235 = vpow2.f32 %v2426_v53  ;;  %2488 = vadd.xlane.f32.xlu0 %v2487_v35  ;;  %v2502_v49 = vsel %vm1538_vm3, %v5621_v19, 0.0 }
 0x906   :  { %v2656_v47 = vpack.c.b16 %v2655_v29, %v2654_v36  ;;  %4237 = vpow2.f32 %v2440_v12  ;;  %2500 = vadd.xlane.f32.xlu2 %v2499_v43  ;;  %v2418_v52 = vmul.f32 1.442695, %v2375_v1 }
 0x907   :  { %4239 = vpow2.f32 %v2428_v17 }
 0x908   :  { %3842 = vmatmul.msk.bf16.vlgmr.msra.gmra.mxu3 %vm1538_vm3, %v2656_v47  ;;  %v2321_v4 = vpop.xlane.xlu1 %2320  ;;  %v2342_v14 = vpop.xlane.xlu0 %2341 }
 0x909   :  { %2907 = vmatpush.bf16.msra.mxu3 %v2898_v38  ;;  %v2388_v40 = vsub.f32 %v5501_v16, %v2342_v14  ;;  %v2381_v43 = vsub.f32 %v5499_v30, %v2321_v4 }
 0x90b   :  { %v5623_v2 = vpop.eup %4235  ;;  %v2330_v24 = vpop.xlane.xlu2 %2329  ;;  %v2444_v29 = vmul.f32 1.442695, %v2388_v40  ;;  %v2430_v1 = vmul.f32 1.442695, %v2381_v43 }
 0x90c   :  { %v5626_v60 = vpop.eup %4237  ;;  %v2384_v34 = vsub.f32 %v5503_v11, %v2330_v24  ;;  %v2505_v18 = vsel %vm1538_vm3, %v5623_v2, 0.0 }
 0x90d   :  { %2503 = vadd.xlane.f32.xlu0 %v2502_v49  ;;  %v2526_v53 = vsel %vm1538_vm3, %v5626_v60, 0.0  ;;  %v5636_v11 = vpop.eup %4239 }
 0x90e   :  { %v2436_v12 = vmul.f32 1.442695, %v2384_v34  ;;  %2506 = vadd.xlane.f32.xlu2 %v2505_v18  ;;  %2527 = vadd.xlane.f32.xlu1 %v2526_v53  ;;  %v2508_v17 = vsel %vm1538_vm3, %v5636_v11, 0.0 }
 0x910   :  { %4241 = vpow2.f32 %v2436_v12  ;;  %v2324_v51 = vpop.xlane.xlu1 %2323  ;;  %v2327_v36 = vpop.xlane.xlu0 %2326 }
 0x911   :  { %v2383_v35 = vsub.f32 %v5513_v21, %v2327_v36  ;;  %4243 = vpow2.f32 %v2418_v52 }
 0x912   :  { %4245 = vpow2.f32 %v2444_v29 }
 0x913   :  { %v2434_v16 = vmul.f32 1.442695, %v2383_v35  ;;  %v2339_v47 = vpop.xlane.xlu2 %2338 }
 0x914   :  { %v2387_v38 = vsub.f32 %v5515_v62, %v2339_v47  ;;  %v2382_v62 = vsub.f32 %v5511_v15, %v2324_v51 }
 0x915   :  { %2509 = vadd.xlane.f32.xlu0 %v2508_v17  ;;  %4247 = vpow2.f32 %v2434_v16 }
 0x916   :  { %v5643_v14 = vpop.eup %4241  ;;  %v2442_v30 = vmul.f32 1.442695, %v2387_v38  ;;  %4249 = vpow2.f32 %v2430_v1  ;;  %v2432_v29 = vmul.f32 1.442695, %v2382_v62 }
 0x917   :  { %v2520_v24 = vsel %vm1538_vm3, %v5643_v14, 0.0  ;;  %v5647_v34 = vpop.eup %4243 }
 0x918   :  { %v2333_v21 = vpop.xlane.xlu1 %2332  ;;  %2521 = vadd.xlane.f32.xlu2 %v2520_v24  ;;  %v2348_v49 = vpop.xlane.xlu0 %2347  ;;  %v2493_v52 = vsel %vm1538_vm3, %v5647_v34, 0.0  ;;  %4251 = vpow2.f32 %v2442_v30 }
 0x919   :  { %v2385_v4 = vsub.f32 %v5523_v0, %v2333_v21  ;;  %v5650_v18 = vpop.eup %4245  ;;  %v2390_v36 = vsub.f32 %v5525_v13, %v2348_v49 }
 0x91a   :  { %v2532_v15 = vsel %vm1538_vm3, %v5650_v18, 0.0 }
 0x91b   :  { %v2438_v40 = vmul.f32 1.442695, %v2385_v4  ;;  %v2345_v53 = vpop.xlane.xlu2 %2344  ;;  %v5653_v12 = vpop.eup %4247  ;;  %v2448_v43 = vmul.f32 1.442695, %v2390_v36 }
 0x91c   :  { %v2517_v0 = vsel %vm1538_vm3, %v5653_v12, 0.0  ;;  %v5662_v35 = vpop.eup %4249  ;;  %v2389_v13 = vsub.f32 %v5527_v39, %v2345_v53 }
 0x91d   :  { %2494 = vadd.xlane.f32.xlu0 %v2493_v52  ;;  %4253 = vpow2.f32 %v2438_v40  ;;  %2518 = vadd.xlane.f32.xlu1 %v2517_v0  ;;  %v2511_v24 = vsel %vm1538_vm3, %v5662_v35, 0.0 }
 0x91e   :  { %v5665_v47 = vpop.eup %4251  ;;  %4255 = vpow2.f32 %v2432_v29  ;;  %v2446_v30 = vmul.f32 1.442695, %v2389_v13 }
 0x91f   :  { %4257 = vpow2.f32 %v2448_v43  ;;  %v2529_v39 = vsel %vm1538_vm3, %v5665_v47, 0.0 }
 0x920   :  { %v2360_v51 = vpop.xlane.xlu1 %2359  ;;  %2533 = vadd.xlane.f32.xlu2 %v2532_v15  ;;  %v2363_v4 = vpop.xlane.xlu0 %2362 }
 0x921   :  { %v2394_v16 = vsub.f32 %v5535_v61, %v2360_v51  ;;  %v2395_v36 = vsub.f32 %v5537_v7, %v2363_v4 }
 0x923   :  { %v2456_v17 = vmul.f32 1.442695, %v2394_v16  ;;  %v2354_v38 = vpop.xlane.xlu2 %2353  ;;  %v5668_v1 = vpop.eup %4253 }
 0x924   :  { %v2523_v21 = vsel %vm1538_vm3, %v5668_v1, 0.0  ;;  %v2392_v61 = vsub.f32 %v5539_v56, %v2354_v38  ;;  %v5677_v62 = vpop.eup %4255 }
 0x925   :  { %2512 = vadd.xlane.f32.xlu0 %v2511_v24  ;;  %4259 = vpow2.f32 %v2456_v17  ;;  %2524 = vadd.xlane.f32.xlu1 %v2523_v21  ;;  %v5680_v52 = vpop.eup %4257  ;;  %v2514_v29 = vsel %vm1538_vm3, %v5677_v62, 0.0 }
 0x926   :  { %v2452_v53 = vmul.f32 1.442695, %v2392_v61  ;;  %4261 = vpow2.f32 %v2446_v30  ;;  %v2538_v51 = vsel %vm1538_vm3, %v5680_v52, 0.0 }
 0x928   :  { %2530 = vadd.xlane.f32.xlu2 %v2529_v39  ;;  %v2357_v49 = vpop.xlane.xlu1 %2356 }
 0x929   :  { %v2393_v40 = vsub.f32 %v5547_v59, %v2357_v49  ;;  %v2458_v59 = vmul.f32 1.442695, %v2395_v36  ;;  %v3093_v49 = vunpack.c.l.b16 %v5347_v20 }
 0x92b   :  { %v2454_v0 = vmul.f32 1.442695, %v2393_v40  ;;  %v5683_v56 = vpop.eup %4259  ;;  %v2351_v43 = vpop.xlane.xlu2 %2350  ;;  %v3006_v40 = vunpack.c.l.b16 %v5345_v28 }
 0x92c   :  { %v2550_v15 = vsel %vm1538_vm3, %v5683_v56, 0.0  ;;  %v5691_v7 = vpop.eup %4261  ;;  %v2391_v13 = vsub.f32 %v5549_v9, %v2351_v43 }
 0x92d   :  { %4263 = vpow2.f32 %v2454_v0  ;;  %2515 = vadd.xlane.f32.xlu0 %v2514_v29  ;;  %2551 = vadd.xlane.f32.xlu1 %v2550_v15  ;;  %v2535_v38 = vsel %vm1538_vm3, %v5691_v7, 0.0  ;;  %v3007_v36 = vpack.c.b16 %v3006_v40, %v3006_v40  ;;  %v3064_v0 = vunpack.c.l.b16 %v5371_v27 }
 0x92e   :  { %4265 = vpow2.f32 %v2452_v53  ;;  %v2450_v21 = vmul.f32 1.442695, %v2391_v13  ;;  %v3094_v53 = vpack.c.b16 %v3093_v49, %v3093_v49  ;;  %v3035_v29 = vunpack.c.l.b16 %v5366_v44 }
 0x92f   :  { %4267 = vpow2.f32 %v2458_v59  ;;  %v3065_v15 = vpack.c.b16 %v3064_v0, %v3064_v0 }
 0x930   :  { %2539 = vadd.xlane.f32.xlu2 %v2538_v51  ;;  %4269 = vpow2.f32 %v2450_v21  ;;  %v3036_v59 = vpack.c.b16 %v3035_v29, %v3035_v29 }
 0x933   :  { %v5693_v16 = vpop.eup %4263 }
 0x934   :  { %v5696_v17 = vpop.eup %4265  ;;  %v2547_v24 = vsel %vm1538_vm3, %v5693_v16, 0.0 }
 0x935   :  { %2536 = vadd.xlane.f32.xlu0 %v2535_v38  ;;  %2548 = vadd.xlane.f32.xlu1 %v2547_v24  ;;  %v2544_v61 = vsel %vm1538_vm3, %v5696_v17, 0.0  ;;  %v5704_v30 = vpop.eup %4267 }
 0x936   :  { %v2553_v9 = vsel %vm1538_vm3, %v5704_v30, 0.0  ;;  %v5708_v39 = vpop.eup %4269 }
 0x937   :  { %v2541_v4 = vsel %vm1538_vm3, %v5708_v39, 0.0 }
 0x938   :  { %2545 = vadd.xlane.f32.xlu2 %v2544_v61 }
 0x93d   :  { %2554 = vadd.xlane.f32.xlu0 %v2553_v9 }
 0x945   :  { %2542 = vadd.xlane.f32.xlu0 %v2541_v4 }
 0x94a   :  { %v2468_v51 = vpop.xlane.xlu0 %2467 }
 0x94e   :  { %3095 = vrot.lane.b32.xlu1 %v3094_v53, %s4496_s16 }
 0x950   :  { %3008 = vrot.lane.b32.xlu2 %v3007_v36, %s4496_s16 }
 0x952   :  { %v2474_v20 = vpop.xlane.xlu1 %2473 }
 0x953   :  { %4271 = vrcp.f32 %v2474_v20 }
 0x954   :  { %4273 = vrcp.f32 %v2468_v51 }
 0x956   :  { %3066 = vrot.lane.b32.xlu1 %v3065_v15, %s4496_s16 }
 0x958   :  { %3037 = vrot.lane.b32.xlu2 %v3036_v59, %s4496_s16 }
 0x959   :  { %v4272_v24 = vpop.eup %4271 }
 0x95a   :  { %v2480_v28 = vpop.xlane.xlu1 %2479  ;;  %v4274_v21 = vpop.eup %4273  ;;  %v2592_v44 = vmul.f32 %v4272_v24, %v5564_v63  ;;  %v2956_v24 = vsel %vm2664_vm13, %v5435_v42, 0 }
 0x95b   :  { %v2590_v27 = vmul.f32 %v4274_v21, %v5559_v32 }
 0x95c   :  { %v2624_v4 = vpack.c.bf16 %v2592_v44, %v2592_v44 }
 0x95d   :  { %v2622_v36 = vpack.c.bf16 %v2590_v27, %v2590_v27 }
 0x95e   :  { %v2713_v51 = vunpack.c.l.b16 %v2624_v4 }
 0x95f   :  { %v2684_v32 = vunpack.c.l.b16 %v2622_v36 }
 0x960   :  { %v2486_v43 = vpop.xlane.xlu0 %2485 }
 0x968   :  { %v2477_v13 = vpop.xlane.xlu0 %2476  ;;  %v2471_v38 = vpop.xlane.xlu2 %2470 }
 0x969   :  { %4275 = vrcp.f32 %v2477_v13 }
 0x96a   :  { %4277 = vrcp.f32 %v2471_v38 }
 0x96b   :  { %4279 = vrcp.f32 %v2480_v28 }
 0x96f   :  { %v4276_v61 = vpop.eup %4275 }
 0x970   :  { %v4278_v9 = vpop.eup %4277  ;;  %v2593_v49 = vmul.f32 %v4276_v61, %v5580_v5  ;;  %v2483_v40 = vpop.xlane.xlu0 %2482 }
 0x971   :  { %v4280_v53 = vpop.eup %4279  ;;  %v2591_v0 = vmul.f32 %v4278_v9, %v5584_v58  ;;  %4281 = vrcp.f32 %v2483_v40  ;;  %v2498_v29 = vpop.xlane.xlu2 %2497 }
 0x972   :  { %v2625_v15 = vpack.c.bf16 %v2593_v49, %v2593_v49  ;;  %4283 = vrcp.f32 %v2486_v43  ;;  %v2594_v63 = vmul.f32 %v4280_v53, %v5569_v57  ;;  %v2927_v57 = vsel %vm2664_vm13, %v5427_v6, 0 }
 0x973   :  { %v2623_v59 = vpack.c.bf16 %v2591_v0, %v2591_v0  ;;  %4285 = vrcp.f32 %v2498_v29  ;;  %v2985_v6 = vsel %vm2664_vm13, %v5555_v46, 0 }
 0x974   :  { %v2714_v20 = vunpack.c.l.b16 %v2625_v15  ;;  %v2626_v21 = vpack.c.bf16 %v2594_v63, %v2594_v63 }
 0x975   :  { %v2685_v28 = vunpack.c.l.b16 %v2623_v59 }
 0x976   :  { %v2715_v13 = vpack.c.b16 %v2714_v20, %v2713_v51  ;;  %v2742_v42 = vunpack.c.l.b16 %v2626_v21  ;;  %v2492_v51 = vpop.xlane.xlu1 %2491 }
 0x977   :  { %v4282_v38 = vpop.eup %4281  ;;  %v2686_v5 = vpack.c.b16 %v2685_v28, %v2684_v32 }
 0x978   :  { %v2595_v58 = vmul.f32 %v4282_v38, %v5591_v37  ;;  %v2489_v44 = vpop.xlane.xlu0 %2488  ;;  %3844 = vmatmul.msk.bf16.vlgmr.msra.gmra.mxu1 %vm1538_vm3, %v2715_v13  ;;  %v4284_v43 = vpop.eup %4283 }
 0x979   :  { %4287 = vrcp.f32 %v2489_v44  ;;  %3843 = vmatmul.msk.bf16.vlgmr.msrb.gmra.mxu0 %vm1538_vm3, %v2686_v5  ;;  %v2501_v27 = vpop.xlane.xlu2 %2500  ;;  %2965 = vmatpush.bf16.msra.mxu1 %v2956_v24  ;;  %v4286_v61 = vpop.eup %4285  ;;  %v2596_v4 = vmul.f32 %v4284_v43, %v5576_v33 }
 0x97a   :  { %v2627_v9 = vpack.c.bf16 %v2595_v58, %v2595_v58  ;;  %2936 = vmatpush.bf16.msrb.mxu0 %v2927_v57  ;;  %4289 = vrcp.f32 %v2501_v27  ;;  %v2600_v49 = vmul.f32 %v4286_v61, %v5597_v50 }
 0x97b   :  { %v2628_v0 = vpack.c.bf16 %v2596_v4, %v2596_v4 }
 0x97c   :  { %v2743_v37 = vunpack.c.l.b16 %v2627_v9  ;;  %v2632_v59 = vpack.c.bf16 %v2600_v49, %v2600_v49 }
 0x97d   :  { %v2771_v32 = vunpack.c.l.b16 %v2628_v0 }
 0x97e   :  { %v2744_v40 = vpack.c.b16 %v2743_v37, %v2742_v42  ;;  %v2829_v13 = vunpack.c.l.b16 %v2632_v59 }
 0x97f   :  { %v4288_v53 = vpop.eup %4287 }
 0x980   :  { %v4290_v36 = vpop.eup %4289  ;;  %v2597_v29 = vmul.f32 %v4288_v53, %v5607_v25  ;;  %v2504_v15 = vpop.xlane.xlu0 %2503  ;;  %3845 = vmatmul.msk.bf16.vlgmr.msra.gmra.mxu2 %vm1538_vm3, %v2744_v40 }
 0x981   :  { %v2601_v63 = vmul.f32 %v4290_v36, %v5611_v22  ;;  %4291 = vrcp.f32 %v2504_v15  ;;  %v2507_v33 = vpop.xlane.xlu2 %2506  ;;  %2994 = vmatpush.bf16.msra.mxu2 %v2985_v6  ;;  %v2528_v44 = vpop.xlane.xlu1 %2527 }
 0x982   :  { %v2629_v50 = vpack.c.bf16 %v2597_v29, %v2597_v29  ;;  %4293 = vrcp.f32 %v2507_v33 }
 0x983   :  { %v2633_v20 = vpack.c.bf16 %v2601_v63, %v2601_v63  ;;  %4295 = vrcp.f32 %v2492_v51 }
 0x984   :  { %v2772_v28 = vunpack.c.l.b16 %v2629_v50 }
 0x985   :  { %v2830_v46 = vunpack.c.l.b16 %v2633_v20 }
 0x986   :  { %v2773_v38 = vpack.c.b16 %v2772_v28, %v2771_v32 }
 0x987   :  { %v4292_v5 = vpop.eup %4291  ;;  %v2831_v25 = vpack.c.b16 %v2830_v46, %v2829_v13 }
 0x988   :  { %v4294_v24 = vpop.eup %4293  ;;  %v2602_v21 = vmul.f32 %v4292_v5, %v5621_v19  ;;  %3846 = vmatmul.msk.bf16.vlgmr.msrb.gmra.mxu3 %vm1538_vm3, %v2773_v38  ;;  %v2510_v58 = vpop.xlane.xlu0 %2509 }
 0x989   :  { %v2603_v22 = vmul.f32 %v4294_v24, %v5623_v2  ;;  %3848 = vmatmul.msk.bf16.vlgmr.msrb.gmra.mxu1 %vm1538_vm3, %v2831_v25  ;;  %v4296_v37 = vpop.eup %4295 }
 0x98a   :  { %v2634_v43 = vpack.c.bf16 %v2602_v21, %v2602_v21  ;;  %v2598_v2 = vmul.f32 %v4296_v37, %v5594_v3 }
 0x98b   :  { %v2635_v57 = vpack.c.bf16 %v2603_v22, %v2603_v22  ;;  %v2522_v27 = vpop.xlane.xlu2 %2521 }
 0x98c   :  { %v2858_v61 = vunpack.c.l.b16 %v2634_v43  ;;  %v2630_v53 = vpack.c.bf16 %v2598_v2, %v2598_v2 }
 0x98d   :  { %v2859_v9 = vunpack.c.l.b16 %v2635_v57 }
 0x98e   :  { %v2800_v33 = vunpack.c.l.b16 %v2630_v53 }
 0x98f   :  { %v2860_v42 = vpack.c.b16 %v2859_v9, %v2858_v61 }
 0x990   :  { %v2495_v4 = vpop.xlane.xlu0 %2494  ;;  %v2519_v19 = vpop.xlane.xlu1 %2518 }
 0x991   :  { %4297 = vrcp.f32 %v2495_v4  ;;  %3849 = vmatmul.msk.bf16.vlgmr.msrb.gmra.mxu2 %vm1538_vm3, %v2860_v42 }
 0x992   :  { %4299 = vrcp.f32 %v2510_v58 }
 0x993   :  { %v2534_v49 = vpop.xlane.xlu2 %2533  ;;  %4301 = vrcp.f32 %v2522_v27 }
 0x994   :  { %4303 = vrcp.f32 %v2528_v44 }
 0x997   :  { %v4298_v40 = vpop.eup %4297 }
 0x998   :  { %v2599_v36 = vmul.f32 %v4298_v40, %v5647_v34  ;;  %v2513_v6 = vpop.xlane.xlu0 %2512  ;;  %v4300_v0 = vpop.eup %4299 }
 0x999   :  { %4305 = vrcp.f32 %v2513_v6  ;;  %v2525_v29 = vpop.xlane.xlu1 %2524  ;;  %v4302_v15 = vpop.eup %4301  ;;  %v2604_v50 = vmul.f32 %v4300_v0, %v5636_v11 }
 0x99a   :  { %v2631_v59 = vpack.c.bf16 %v2599_v36, %v2599_v36  ;;  %4307 = vrcp.f32 %v2525_v29  ;;  %v4304_v63 = vpop.eup %4303  ;;  %v2608_v20 = vmul.f32 %v4302_v15, %v5643_v14 }
 0x99b   :  { %4309 = vrcp.f32 %v2519_v19  ;;  %v2531_v51 = vpop.xlane.xlu2 %2530  ;;  %v2610_v34 = vmul.f32 %v4304_v63, %v5626_v60  ;;  %v2636_v46 = vpack.c.bf16 %v2604_v50, %v2604_v50 }
 0x99c   :  { %v2801_v3 = vunpack.c.l.b16 %v2631_v59  ;;  %4311 = vrcp.f32 %v2531_v51  ;;  %v2640_v24 = vpack.c.bf16 %v2608_v20, %v2608_v20 }
 0x99d   :  { %v2642_v22 = vpack.c.bf16 %v2610_v34, %v2610_v34  ;;  %v2887_v43 = vunpack.c.l.b16 %v2636_v46 }
 0x99e   :  { %v2802_v32 = vpack.c.b16 %v2801_v3, %v2800_v33  ;;  %v2945_v27 = vunpack.c.l.b16 %v2640_v24 }
 0x99f   :  { %v4306_v28 = vpop.eup %4305  ;;  %v2974_v37 = vunpack.c.l.b16 %v2642_v22 }
 0x9a0   :  { %v4308_v13 = vpop.eup %4307  ;;  %v2605_v38 = vmul.f32 %v4306_v28, %v5662_v35  ;;  %v2516_v5 = vpop.xlane.xlu0 %2515  ;;  %3847 = vmatmul.msk.bf16.vlgmr.msra.gmra.mxu0 %vm1538_vm3, %v2802_v32 }
 0x9a1   :  { %v4310_v25 = vpop.eup %4309  ;;  %v2609_v21 = vmul.f32 %v4308_v13, %v5668_v1  ;;  %4313 = vrcp.f32 %v2516_v5  ;;  %v2552_v36 = vpop.xlane.xlu1 %2551 }
 0x9a2   :  { %v4312_v11 = vpop.eup %4311  ;;  %v2637_v58 = vpack.c.bf16 %v2605_v38, %v2605_v38  ;;  %4315 = vrcp.f32 %v2534_v49  ;;  %v2607_v57 = vmul.f32 %v4310_v25, %v5653_v12 }
 0x9a3   :  { %v2641_v14 = vpack.c.bf16 %v2609_v21, %v2609_v21  ;;  %v2611_v44 = vmul.f32 %v4312_v11, %v5665_v47  ;;  %v2540_v60 = vpop.xlane.xlu2 %2539 }
 0x9a4   :  { %v2888_v35 = vunpack.c.l.b16 %v2637_v58  ;;  %v2639_v2 = vpack.c.bf16 %v2607_v57, %v2607_v57 }
 0x9a5   :  { %v2946_v61 = vunpack.c.l.b16 %v2641_v14  ;;  %v2643_v9 = vpack.c.bf16 %v2611_v44, %v2611_v44 }
 0x9a6   :  { %v2889_v42 = vpack.c.b16 %v2888_v35, %v2887_v43  ;;  %v2917_v0 = vunpack.c.l.b16 %v2639_v2 }
 0x9a7   :  { %v4314_v4 = vpop.eup %4313  ;;  %v2947_v1 = vpack.c.b16 %v2946_v61, %v2945_v27  ;;  %v2975_v19 = vunpack.c.l.b16 %v2643_v9 }
 0x9a8   :  { %v2606_v40 = vmul.f32 %v4314_v4, %v5677_v62  ;;  %3850 = vmatmul.msk.bf16.vlgmr.msra.gmra.mxu3 %vm1538_vm3, %v2889_v42  ;;  %v2537_v49 = vpop.xlane.xlu0 %2536  ;;  %v4316_v47 = vpop.eup %4315 }
 0x9a9   :  { %v2976_v53 = vpack.c.b16 %v2975_v19, %v2974_v37  ;;  %4317 = vrcp.f32 %v2537_v49  ;;  %3852 = vmatmul.msk.bf16.vlgmr.msra.gmra.mxu1 %vm1538_vm3, %v2947_v1  ;;  %v2612_v29 = vmul.f32 %v4316_v47, %v5650_v18  ;;  %v2549_v34 = vpop.xlane.xlu1 %2548  ;;  %v5777_v47 = vpop.f32.mrf.mxu3 }
 0x9aa   :  { %v2638_v12 = vpack.c.bf16 %v2606_v40, %v2606_v40  ;;  %4319 = vrcp.f32 %v2552_v36 }
 0x9ab   :  { %v2546_v6 = vpop.xlane.xlu2 %2545  ;;  %3853 = vmatmul.msk.bf16.vlgmr.msra.gmra.mxu2 %vm1538_vm3, %v2976_v53  ;;  %v2644_v62 = vpack.c.bf16 %v2612_v29, %v2612_v29 }
 0x9ac   :  { %v2916_v15 = vunpack.c.l.b16 %v2638_v12 }
 0x9ad   :  { %v3003_v20 = vunpack.c.l.b16 %v2644_v62 }
 0x9ae   :  { %v2918_v59 = vpack.c.b16 %v2917_v0, %v2916_v15 }
 0x9af   :  { %v4318_v51 = vpop.eup %4317 }
 0x9b0   :  { %v2613_v63 = vmul.f32 %v4318_v51, %v5691_v7  ;;  %v2555_v33 = vpop.xlane.xlu0 %2554  ;;  %3851 = vmatmul.msk.bf16.vlgmr.msrb.gmra.mxu0 %vm1538_vm3, %v2918_v59  ;;  %v4320_v18 = vpop.eup %4319 }
 0x9b1   :  { %4321 = vrcp.f32 %v2555_v33  ;;  %v2618_v25 = vmul.f32 %v4320_v18, %v5683_v56  ;;  %v2679_v0 = vpop.f32.mrf.mxu3 }
 0x9b2   :  { %v2645_v50 = vpack.c.bf16 %v2613_v63, %v2613_v63  ;;  %4323 = vrcp.f32 %v2540_v60 }
 0x9b3   :  { %v3009_v3 = vpop.permute.xlu2 %3008  ;;  %4325 = vrcp.f32 %v2546_v6  ;;  %v2650_v14 = vpack.c.bf16 %v2618_v25, %v2618_v25 }
 0x9b4   :  { %v3004_v32 = vunpack.c.l.b16 %v2645_v50  ;;  %v3014_v28 = vsel %vm2664_vm13, %v3009_v3, 0  ;;  %4327 = vrcp.f32 %v2549_v34 }
 0x9b5   :  { %3023 = vmatpush.bf16.msrb.mxu3 %v3014_v28  ;;  %v3090_v35 = vunpack.c.l.b16 %v2650_v14 }
 0x9b6   :  { %v3005_v13 = vpack.c.b16 %v3004_v32, %v3003_v20 }
 0x9b7   :  { %v4322_v46 = vpop.eup %4321 }
 0x9b8   :  { %v2619_v7 = vmul.f32 %v4322_v46, %v5704_v30  ;;  %v2543_v38 = vpop.xlane.xlu0 %2542  ;;  %3854 = vmatmul.msk.bf16.vlgmr.msrb.gmra.mxu3 %vm1538_vm3, %v3005_v13  ;;  %v4324_v5 = vpop.eup %4323 }
 0x9b9   :  { %3271 = vmatpush.bf16.msra.mxu3 %v5137_v31  ;;  %4329 = vrcp.f32 %v2543_v38  ;;  %v2614_v21 = vmul.f32 %v4324_v5, %v5680_v52  ;;  %v4326_v58 = vpop.eup %4325 }
 0x9ba   :  { %v2651_v11 = vpack.c.bf16 %v2619_v7, %v2619_v7  ;;  %v4328_v22 = vpop.eup %4327  ;;  %v2616_v60 = vmul.f32 %v4326_v58, %v5696_v17 }
 0x9bb   :  { %v3038_v24 = vpop.permute.xlu2 %3037  ;;  %v2646_v44 = vpack.c.bf16 %v2614_v21, %v2614_v21 }
 0x9bc   :  { %v3043_v31 = vsel %vm2664_vm13, %v3038_v24, 0  ;;  %v3091_v43 = vunpack.c.l.b16 %v2651_v11  ;;  %v2648_v9 = vpack.c.bf16 %v2616_v60, %v2616_v60 }
 0x9bd   :  { %3272 = vmatpush.bf16.msra.mxu3 %v5140_v54  ;;  %3052 = vmatpush.bf16.msra.mxu0 %v3043_v31  ;;  %v2617_v54 = vmul.f32 %v4328_v22, %v5693_v16  ;;  %v3032_v61 = vunpack.c.l.b16 %v2646_v44 }
 0x9be   :  { %v3092_v42 = vpack.c.b16 %v3091_v43, %v3090_v35  ;;  %v3061_v17 = vunpack.c.l.b16 %v2648_v9 }
 0x9bf   :  { %v4330_v30 = vpop.eup %4329  ;;  %v2649_v37 = vpack.c.bf16 %v2617_v54, %v2617_v54 }
 0x9c0   :  { %v2615_v57 = vmul.f32 %v4330_v30, %v5708_v39  ;;  %v3096_v56 = vpop.permute.xlu1 %3095 }
 0x9c1   :  { %v3101_v52 = vsel %vm2664_vm13, %v3096_v56, 0  ;;  %v3062_v19 = vunpack.c.l.b16 %v2649_v37 }
 0x9c2   :  { %v2647_v27 = vpack.c.bf16 %v2615_v57, %v2615_v57  ;;  %3110 = vmatpush.bf16.msrb.mxu2 %v3101_v52 }
 0x9c3   :  { %v3063_v16 = vpack.c.b16 %v3062_v19, %v3061_v17 }
 0x9c4   :  { %v3033_v4 = vunpack.c.l.b16 %v2647_v27 }
 0x9c5   :  { %3857 = vmatmul.msk.bf16.vlgmr.msrb.gmra.mxu2 %vm1538_vm3, %v3092_v42 }
 0x9c6   :  { %v3034_v1 = vpack.c.b16 %v3033_v4, %v3032_v61 }
 0x9c8   :  { %3855 = vmatmul.msk.bf16.vlgmr.msra.gmra.mxu0 %vm1538_vm3, %v3034_v1  ;;  %v3067_v39 = vpop.permute.xlu1 %3066 }
 0x9c9   :  { %v3072_v2 = vsel %vm2664_vm13, %v3067_v39, 0 }
 0x9ca   :  { %3081 = vmatpush.bf16.msrb.mxu1 %v3072_v2 }
 0x9cd   :  { %3856 = vmatmul.msk.bf16.vlgmr.msrb.gmra.mxu1 %vm1538_vm3, %v3063_v16 }
 0x9f5   :  { %v2735_v40 = vpop.f32.mrf.mxu1 }
 0x9f6   :  { %v2706_v49 = vpop.f32.mrf.mxu0 }
 0x9fd   :  { %v2737_v53 = vpop.f32.mrf.mxu1 }
 0x9fe   :  { %v2708_v12 = vpop.f32.mrf.mxu0  ;;  %v4000_v36 = vpack.i.bf16 %v2737_v53, %v2735_v40 }
 0x9ff   :  { %v3995_v6 = vpack.i.bf16 %v2708_v12, %v2706_v49 }
 0xa00   :  { %4001 = vrot.lane.b32.xlu2 %v4000_v36, %s4483_s24 }
 0xa01   :  { %3996 = vrot.lane.b32.xlu0 %v3995_v6, %s4499_s19 }
 0xa03   :  { %v2764_v29 = vpop.f32.mrf.mxu2 }
 0xa06   :  { %v2851_v62 = vpop.f32.mrf.mxu1 }
 0xa0b   :  { %v2766_v15 = vpop.f32.mrf.mxu2  ;;  %v2793_v59 = vpop.f32.mrf.mxu3 }
 0xa0c   :  { %v4005_v51 = vpack.i.bf16 %v2766_v15, %v2764_v29 }
 0xa0e   :  { %4006 = vrot.lane.b32.xlu1 %v4005_v51, %s4498_s18  ;;  %v2853_v50 = vpop.f32.mrf.mxu1 }
 0xa0f   :  { %v4020_v3 = vpack.i.bf16 %v2853_v50, %v2851_v62 }
 0xa13   :  { %v2795_v63 = vpop.f32.mrf.mxu3 }
 0xa14   :  { %v4010_v33 = vpack.i.bf16 %v2795_v63, %v2793_v59  ;;  %v2880_v20 = vpop.f32.mrf.mxu2 }
 0xa16   :  { %4011 = vrot.lane.b32.xlu2 %v4010_v33, %s4487_s8 }
 0xa1c   :  { %v2882_v34 = vpop.f32.mrf.mxu2 }
 0xa1d   :  { %v2822_v32 = vpop.f32.mrf.mxu0  ;;  %v4025_v38 = vpack.i.bf16 %v2882_v34, %v2880_v20 }
 0xa1e   :  { %4021 = vrot.lane.b32.xlu2 %v4020_v3, %s4500_s20 }
 0xa25   :  { %v2824_v28 = vpop.f32.mrf.mxu0 }
 0xa26   :  { %v4015_v18 = vpack.i.bf16 %v2824_v28, %v2822_v32  ;;  %v2967_v13 = vpop.f32.mrf.mxu1 }
 0xa28   :  { %4016 = vrot.lane.b32.xlu1 %v4015_v18, %s4501_s21 }
 0xa2b   :  { %v5785_v46 = vpop.f32.mrf.mxu3 }
 0xa2d   :  { %v2938_v7 = vpop.f32.mrf.mxu0 }
 0xa2e   :  { %v2969_v5 = vpop.f32.mrf.mxu1  ;;  %v2996_v25 = vpop.f32.mrf.mxu2 }
 0xa2f   :  { %v4035_v24 = vpack.i.bf16 %v2969_v5, %v2967_v13 }
 0xa30   :  { %4026 = vrot.lane.b32.xlu1 %v4025_v38, %s4502_s22 }
 0xa31   :  { %4036 = vrot.lane.b32.xlu2 %v4035_v24, %s4483_s24  ;;  %s4505_s24 = smov [#allocation10]  }
 0xa32   :  { %s3754_s25 = sshll.u32 %s4505_s24, 4  ;;  %s3755_s25 = int_to_ptr.vmem [resolvable:$true] %s3754_s25 }
 0xa33   :  { %v5789_v21 = vpop.f32.mrf.mxu3 }
 0xa35   :  { %v2940_v11 = vpop.f32.mrf.mxu0 }
 0xa36   :  { %v4030_v31 = vpack.i.bf16 %v2940_v11, %v2938_v7  ;;  %v2998_v58 = vpop.f32.mrf.mxu2 }
 0xa37   :  { %v4040_v22 = vpack.i.bf16 %v2998_v58, %v2996_v25 }
 0xa38   :  { %4031 = vrot.lane.b32.xlu0 %v4030_v31, %s4499_s19 }
 0xa39   :  { %4041 = vrot.lane.b32.xlu1 %v4040_v22, %s4498_s18 }
 0xa3b   :  { %v3025_v14 = vpop.f32.mrf.mxu3 }
 0xa43   :  { %v3027_v30 = vpop.f32.mrf.mxu3 }
 0xa44   :  { %v4045_v44 = vpack.i.bf16 %v3027_v30, %v3025_v14 }
 0xa45   :  { %v3054_v60 = vpop.f32.mrf.mxu0 }
 0xa46   :  { %4046 = vrot.lane.b32.xlu0 %v4045_v44, %s4487_s8 }
 0xa48   :  { %v3112_v43 = vpop.f32.mrf.mxu2 }
 0xa4a   :  { %v3083_v57 = vpop.f32.mrf.mxu1 }
 0xa4d   :  { %v3056_v56 = vpop.f32.mrf.mxu0 }
 0xa4e   :  { %v4050_v35 = vpack.i.bf16 %v3056_v56, %v3054_v60 }
 0xa50   :  { %4051 = vrot.lane.b32.xlu2 %v4050_v35, %s4501_s21  ;;  %v3114_v54 = vpop.f32.mrf.mxu2 }
 0xa51   :  { %v4060_v27 = vpack.i.bf16 %v3114_v54, %v3112_v43 }
 0xa52   :  { %v3085_v52 = vpop.f32.mrf.mxu1 }
 0xa53   :  { %v4055_v61 = vpack.i.bf16 %v3085_v52, %v3083_v57  ;;  %4061 = vrot.lane.b32.xlu0 %v4060_v27, %s4502_s22 }
 0xa55   :  { %4056 = vrot.lane.b32.xlu1 %v4055_v61, %s4500_s20 }
 0xa5a   :  { %v4002_v9 = vpop.permute.xlu2 %4001 }
 0xa5b   :  { %v4004_v40 = vunpack.i.h.bf16 %v4002_v9  ;;  %v4003_v49 = vunpack.i.l.bf16 %v4002_v9 }
 0xa70   :  { %v4012_v37 = vpop.permute.xlu2 %4011 }
 0xa71   :  { %v4014_v51 = vunpack.i.h.bf16 %v4012_v37 }
 0xa73   :  { %v3997_v42 = vpop.permute.xlu0 %3996 }
 0xa74   :  { %v3999_v1 = vunpack.i.h.bf16 %v3997_v42  ;;  %v3998_v17 = vunpack.i.l.bf16 %v3997_v42 }
 0xa76   :  { %v3230_v39 = vsel %vm209_vm1, %v2679_v0, %v3999_v1  ;;  %v3229_v19 = vsel %vm209_vm1, %v5777_v47, %v3998_v17  ;;  %v4013_v0 = vunpack.i.l.bf16 %v4012_v37 }
 0xa77   :  { %v3233_v12 = vsel %vm1538_vm3, %v3229_v19, %v4003_v49  ;;  %v3234_v36 = vsel %vm1538_vm3, %v3230_v39, %v4004_v40 }
 0xa78   :  { %v4022_v62 = vpop.permute.xlu2 %4021 }
 0xa79   :  { %v4024_v3 = vunpack.i.h.bf16 %v4022_v62  ;;  %v4023_v20 = vunpack.i.l.bf16 %v4022_v62 }
 0xa80   :  { %v4007_v4 = vpop.permute.xlu1 %4006 }
 0xa81   :  { %v4009_v2 = vunpack.i.h.bf16 %v4007_v4  ;;  %v4008_v16 = vunpack.i.l.bf16 %v4007_v4 }
 0xa83   :  { %v3238_v6 = vsel %vm1543_vm4, %v3234_v36, %v4009_v2  ;;  %v3237_v29 = vsel %vm1543_vm4, %v3233_v12, %v4008_v16 }
 0xa84   :  { %v3241_v47 = vsel %vm637_vm2, %v3237_v29, %v4013_v0  ;;  %v3242_v63 = vsel %vm637_vm2, %v3238_v6, %v4014_v51 }
 0xa8b   :  { %v4037_v31 = vpop.permute.xlu2 %4036 }
 0xa8c   :  { %v4039_v44 = vunpack.i.h.bf16 %v4037_v31  ;;  %v4038_v60 = vunpack.i.l.bf16 %v4037_v31 }
 0xa9a   :  { %v4017_v53 = vpop.permute.xlu1 %4016 }
 0xa9b   :  { %v4019_v15 = vunpack.i.h.bf16 %v4017_v53  ;;  %v4018_v59 = vunpack.i.l.bf16 %v4017_v53 }
 0xa9d   :  { %v3245_v33 = vsel %vm1552_vm5, %v3241_v47, %v4018_v59  ;;  %v3246_v50 = vsel %vm1552_vm5, %v3242_v63, %v4019_v15 }
 0xa9e   :  { %v3249_v18 = vsel %vm1557_vm6, %v3245_v33, %v4023_v20  ;;  %v3250_v13 = vsel %vm1557_vm6, %v3246_v50, %v4024_v3 }
 0xaa2   :  { %v4027_v32 = vpop.permute.xlu1 %4026 }
 0xaa3   :  { %v4029_v28 = vunpack.i.h.bf16 %v4027_v32  ;;  %v4028_v34 = vunpack.i.l.bf16 %v4027_v32 }
 0xaa5   :  { %v3253_v7 = vsel %vm1562_vm7, %v3249_v18, %v4028_v34  ;;  %v3254_v38 = vsel %vm1562_vm7, %v3250_v13, %v4029_v28 }
 0xaa6   :  { %v3257_v5 = vpack.c.bf16 %v3254_v38, %v3253_v7 }
 0xaa8   :  { %3858 = vmatmul.msk.bf16.vlgmr.msra.gmra.mxu3 %vm114_vm0, %v3257_v5 }
 0xaaa   :  { %v4032_v25 = vpop.permute.xlu0 %4031  ;;  %v4052_v52 = vpop.permute.xlu2 %4051 }
 0xaab   :  { %v4034_v24 = vunpack.i.h.bf16 %v4032_v25  ;;  %v4033_v11 = vunpack.i.l.bf16 %v4032_v25  ;;  %v4042_v58 = vpop.permute.xlu1 %4041  ;;  %v4054_v4 = vunpack.i.h.bf16 %v4052_v52  ;;  %v4053_v37 = vunpack.i.l.bf16 %v4052_v52 }
 0xaac   :  { %v4044_v43 = vunpack.i.h.bf16 %v4042_v58  ;;  %v4043_v57 = vunpack.i.l.bf16 %v4042_v58 }
 0xaad   :  { %v3232_v14 = vsel %vm209_vm1, %v5789_v21, %v4034_v24  ;;  %v3231_v30 = vsel %vm209_vm1, %v5785_v46, %v4033_v11 }
 0xaae   :  { %v3235_v56 = vsel %vm1538_vm3, %v3231_v30, %v4038_v60  ;;  %v3236_v35 = vsel %vm1538_vm3, %v3232_v14, %v4039_v44 }
 0xaaf   :  { %v3240_v61 = vsel %vm1543_vm4, %v3236_v35, %v4044_v43  ;;  %v3239_v9 = vsel %vm1543_vm4, %v3235_v56, %v4043_v57  ;;  %v3866_v57 = vld [vmem:[#allocation7 + $0x28] sm:$0xf]  ;;  %v3895_v56 = vld [vmem:[#allocation7 + $0x34] sm:$0xf0] }
 0xab8   :  { %v4047_v22 = vpop.permute.xlu0 %4046 }
 0xab9   :  { %v4049_v54 = vunpack.i.h.bf16 %v4047_v22  ;;  %v4048_v27 = vunpack.i.l.bf16 %v4047_v22 }
 0xabb   :  { %v3243_v21 = vsel %vm637_vm2, %v3239_v9, %v4048_v27  ;;  %v3244_v42 = vsel %vm637_vm2, %v3240_v61, %v4049_v54  ;;  %v3867_v54 = vor.u32 %v3895_v56, %v3866_v57  ;;  %v3862_v61 = vld [vmem:[#allocation7 + $0x8] sm:$0xf]  ;;  %v3891_v9 = vld [vmem:[#allocation7 + $0x14] sm:$0xf0] }
 0xabc   :  { %v3247_v16 = vsel %vm1552_vm5, %v3243_v21, %v4053_v37  ;;  %v3248_v40 = vsel %vm1552_vm5, %v3244_v42, %v4054_v4  ;;  %v3863_v21 = vor.u32 %v3891_v9, %v3862_v61  ;;  %v3878_v61 = vld [vmem:[#allocation7 + $0x58] sm:$0xf0] }
 0xabd   :  { %3411 = vmatpush.bf16.msrb.mxu0 %v3867_v54  ;;  %v3897_v54 = vld [vmem:[#allocation7 + $0x6c] sm:$0xf] }
 0xac1   :  { %3412 = vmatpush.bf16.msrb.mxu0 %v3863_v21  ;;  %v3874_v21 = vld [vmem:[#allocation7 + $0x38] sm:$0xf0] }
 0xac5   :  { %v4062_v46 = vpop.permute.xlu0 %4061 }
 0xac6   :  { %v4064_v19 = vunpack.i.h.bf16 %v4062_v46  ;;  %v4063_v2 = vunpack.i.l.bf16 %v4062_v46 }
 0xac7   :  { %v4057_v1 = vpop.permute.xlu1 %4056 }
 0xac8   :  { %v4059_v17 = vunpack.i.h.bf16 %v4057_v1  ;;  %v4058_v39 = vunpack.i.l.bf16 %v4057_v1 }
 0xaca   :  { %v3251_v49 = vsel %vm1557_vm6, %v3247_v16, %v4058_v39  ;;  %v3252_v53 = vsel %vm1557_vm6, %v3248_v40, %v4059_v17 }
 0xacb   :  { %v3255_v12 = vsel %vm1562_vm7, %v3251_v49, %v4063_v2  ;;  %v3256_v36 = vsel %vm1562_vm7, %v3252_v53, %v4064_v19 }
 0xacc   :  { %v3258_v6 = vpack.c.bf16 %v3256_v36, %v3255_v12 }
 0xace   :  { %3859 = vmatmul.msk.bf16.gmra.mxu3 %vm114_vm0, %v3258_v6 }
 0xb2b   :  { %v3274_v29 = vpop.f32.mrf.mxu3 }
 0xb2c   :  { %v3275_v15 = vadd.f32 %v3274_v29, %v5177_v48 }
 0xb2e   :  { %v3284_v59 = vadd.f32 %v3275_v15, %v5222_v41 }
 0xb30   :  { %v3288_v51 = vsel %vm114_vm0, %v3284_v59, 0.0 }
 0xb31   :  { %3289 = vadd.xlane.f32.xlu2 %v3288_v51 }
 0xb33   :  { %v3276_v0 = vpop.f32.mrf.mxu3 }
 0xb34   :  { %v3277_v62 = vadd.f32 %v3276_v0, %v5177_v48 }
 0xb36   :  { %v3285_v47 = vadd.f32 %v3277_v62, %v5225_v23 }
 0xb38   :  { %v3291_v63 = vsel %vm114_vm0, %v3285_v47, 0.0 }
 0xb39   :  { %3292 = vadd.xlane.f32.xlu1 %v3291_v63 }
 0xb51   :  { %v3279_v33 = vpop.f32.mrf.mxu3 }
 0xb52   :  { %v3280_v50 = vadd.f32 %v3279_v33, %v5177_v48 }
 0xb54   :  { %v3286_v3 = vadd.f32 %v3280_v50, %v5238_v8 }
 0xb56   :  { %v3294_v20 = vsel %vm114_vm0, %v3286_v3, 0.0 }
 0xb57   :  { %3295 = vadd.xlane.f32.xlu0 %v3294_v20  ;;  %v4352_v20 = vld [vmem:[#allocation8] sm:$0xff] }
 0xb59   :  { %v3281_v41 = vpop.f32.mrf.mxu3 }
 0xb5a   :  { %v3282_v32 = vadd.f32 %v3281_v41, %v5177_v48  ;;  %v3386_v41 = vperm.slane %v4352_v20, 1 }
 0xb5c   :  { %v3287_v28 = vadd.f32 %v3282_v32, %v5241_v55 }
 0xb5e   :  { %v3297_v34 = vsel %vm114_vm0, %v3287_v28, 0.0 }
 0xb5f   :  { %3298 = vadd.xlane.f32.xlu2 %v3297_v34 }
 0xba4   :  { %v3290_v23 = vpop.xlane.xlu2 %3289 }
 0xba5   :  { %v3300_v18 = vmul.f32 %v3290_v23, %v5183_v26 }
 0xba7   :  { %v3304_v13 = vsub.f32 %v3284_v59, %v3300_v18 }
 0xba9   :  { %v3308_v7 = vmul.f32 %v3304_v13, %v3304_v13 }
 0xbab   :  { %v3312_v38 = vsel %vm114_vm0, %v3308_v7, 0.0 }
 0xbac   :  { %v3293_v5 = vpop.xlane.xlu1 %3292  ;;  %3313 = vadd.xlane.f32.xlu1 %v3312_v38 }
 0xbad   :  { %v3301_v8 = vmul.f32 %v3293_v5, %v5183_v26 }
 0xbaf   :  { %v3305_v25 = vsub.f32 %v3285_v47, %v3301_v8 }
 0xbb1   :  { %v3309_v24 = vmul.f32 %v3305_v25, %v3305_v25 }
 0xbb3   :  { %v3315_v48 = vsel %vm114_vm0, %v3309_v24, 0.0 }
 0xbb4   :  { %3316 = vadd.xlane.f32.xlu0 %v3315_v48 }
 0xbc8   :  { %3451 = vrot.lane.b32.xlu0 %v3386_v41, %s4497_s17 }
 0xbca   :  { %v3296_v55 = vpop.xlane.xlu0 %3295 }
 0xbcb   :  { %v3302_v11 = vmul.f32 %v3296_v55, %v5183_v26 }
 0xbcd   :  { %v5847_v31 = vsub.f32 %v3286_v3, %v3302_v11 }
 0xbcf   :  { %v3310_v58 = vmul.f32 %v5847_v31, %v5847_v31 }
 0xbd1   :  { %v3318_v22 = vsel %vm114_vm0, %v3310_v58, 0.0 }
 0xbd2   :  { %3319 = vadd.xlane.f32.xlu2 %v3318_v22  ;;  %v3299_v14 = vpop.xlane.xlu2 %3298 }
 0xbd3   :  { %v3303_v30 = vmul.f32 %v3299_v14, %v5183_v26 }
 0xbd5   :  { %v5853_v44 = vsub.f32 %v3287_v28, %v3303_v30 }
 0xbd7   :  { %v3311_v60 = vmul.f32 %v5853_v44, %v5853_v44 }
 0xbd9   :  { %v3321_v43 = vsel %vm114_vm0, %v3311_v60, 0.0 }
 0xbda   :  { %3322 = vadd.xlane.f32.xlu1 %v3321_v43 }
 0xc1f   :  { %v3314_v35 = vpop.xlane.xlu1 %3313 }
 0xc20   :  { %v3324_v27 = vmul.f32 %v3314_v35, %v5183_v26 }
 0xc22   :  { %v3328_v52 = vadd.f32 1e-05, %v3324_v27  ;;  %v3882_v27 = vld [vmem:[#allocation7 + $0x78] sm:$0xf0] }
 0xc24   :  { %4331 = vrsqrt.f32 %v3328_v52  ;;  %vm3338_vm2 = vweird.f32 %v3328_v52 }
 0xc27   :  { %v3317_v42 = vpop.xlane.xlu0 %3316 }
 0xc28   :  { %v3325_v46 = vmul.f32 %v3317_v42, %v5183_v26 }
 0xc2a   :  { %v4332_v4 = vpop.eup %4331  ;;  %v3329_v37 = vadd.f32 1e-05, %v3325_v46  ;;  %v3889_v46 = vld [vmem:[#allocation7 + $0xc] sm:$0xf] }
 0xc2b   :  { %v3333_v1 = vmul.f32 %v4332_v4, %v3328_v52  ;;  %vm3339_vm1 = vweird.f32 %v4332_v4  ;;  %v3896_v52 = vld [vmem:[#allocation7 + $0x4c] sm:$0xf] }
 0xc2c   :  { %4333 = vrsqrt.f32 %v3329_v37  ;;  %vm3340_vm3 = vmor %vm3338_vm2, %vm3339_vm1  ;;  %vm3348_vm5 = vweird.f32 %v3329_v37  ;;  %v3881_v9 = vor.u32 %v3896_v52, %v3878_v61 }
 0xc2d   :  { %v3334_v17 = vmul.f32 %v4332_v4, %v3333_v1 }
 0xc2f   :  { %v3335_v39 = vmul.f32 0.5, %v3334_v17 }
 0xc31   :  { %v3336_v19 = vsub.f32 1.5, %v3335_v39 }
 0xc32   :  { %v4334_v2 = vpop.eup %4333 }
 0xc33   :  { %v3337_v16 = vmul.f32 %v4332_v4, %v3336_v19  ;;  %v3343_v40 = vmul.f32 %v4334_v2, %v3329_v37  ;;  %vm3349_vm4 = vweird.f32 %v4334_v2 }
 0xc34   :  { %vm3350_vm6 = vmor %vm3348_vm5, %vm3349_vm4 }
 0xc35   :  { %v3344_v49 = vmul.f32 %v4334_v2, %v3343_v40  ;;  %v3341_v53 = vsel %vm3340_vm3, %v4332_v4, %v3337_v16  ;;  %v3870_v4 = vld [vmem:[#allocation7 + $0x18] sm:$0xf0] }
 0xc36   :  { %v3372_v6 = vmul.f32 %v3341_v53, %v3304_v13  ;;  %v3873_v37 = vor.u32 %v3889_v46, %v3870_v4 }
 0xc37   :  { %v3345_v12 = vmul.f32 0.5, %v3344_v49 }
 0xc38   :  { %v3376_v59 = vmul.f32 %v3372_v6, %v5193_v45 }
 0xc39   :  { %v3346_v36 = vsub.f32 1.5, %v3345_v12 }
 0xc3a   :  { %v5863_v62 = vadd.f32 %v3376_v59, %v5214_v10 }
 0xc3b   :  { %v3347_v29 = vmul.f32 %v4334_v2, %v3346_v36 }
 0xc3d   :  { %v3351_v15 = vsel %vm3350_vm6, %v4334_v2, %v3347_v29 }
 0xc3e   :  { %v3373_v51 = vmul.f32 %v3351_v15, %v3305_v25  ;;  %v3452_v15 = vpop.permute.xlu0 %3451 }
 0xc40   :  { %v3377_v0 = vmul.f32 %v3373_v51, %v5193_v45 }
 0xc42   :  { %v5866_v47 = vadd.f32 %v3377_v0, %v5214_v10 }
 0xc44   :  { %v3384_v63 = vpack.c.bf16 %v5866_v47, %v5863_v62 }
 0xc45   :  { %v3320_v33 = vpop.xlane.xlu2 %3319 }
 0xc46   :  { %3868 = vmatmul.msk.bf16.vlgmr.msrb.gmra.mxu0 %vm114_vm0, %v3384_v63  ;;  %v3326_v50 = vmul.f32 %v3320_v33, %v5183_v26 }
 0xc48   :  { %v3330_v3 = vadd.f32 1e-05, %v3326_v50 }
 0xc4a   :  { %4335 = vrsqrt.f32 %v3330_v3  ;;  %vm3358_vm14 = vweird.f32 %v3330_v3 }
 0xc4d   :  { %v3323_v32 = vpop.xlane.xlu1 %3322 }
 0xc4e   :  { %v3327_v28 = vmul.f32 %v3323_v32, %v5183_v26 }
 0xc50   :  { %v4336_v34 = vpop.eup %4335  ;;  %v3331_v23 = vadd.f32 1e-05, %v3327_v28 }
 0xc51   :  { %v3353_v18 = vmul.f32 %v4336_v34, %v3330_v3  ;;  %vm3359_vm7 = vweird.f32 %v4336_v34 }
 0xc52   :  { %4337 = vrsqrt.f32 %v3331_v23  ;;  %vm3360_vm15 = vmor %vm3358_vm14, %vm3359_vm7  ;;  %vm3368_vm9 = vweird.f32 %v3331_v23 }
 0xc53   :  { %v3354_v13 = vmul.f32 %v4336_v34, %v3353_v18 }
 0xc55   :  { %v3355_v7 = vmul.f32 0.5, %v3354_v13 }
 0xc57   :  { %v3356_v38 = vsub.f32 1.5, %v3355_v7 }
 0xc58   :  { %v4338_v5 = vpop.eup %4337 }
 0xc59   :  { %v3357_v8 = vmul.f32 %v4336_v34, %v3356_v38  ;;  %v3363_v25 = vmul.f32 %v4338_v5, %v3331_v23  ;;  %vm3369_vm8 = vweird.f32 %v4338_v5 }
 0xc5a   :  { %vm3370_vm10 = vmor %vm3368_vm9, %vm3369_vm8  ;;  %vm3698_vm9 = vcmask 785408  }
 0xc5b   :  { %v3364_v24 = vmul.f32 %v4338_v5, %v3363_v25  ;;  %v3361_v48 = vsel %vm3360_vm15, %v4336_v34, %v3357_v8 }
 0xc5c   :  { %v3374_v58 = vmul.f32 %v3361_v48, %v5847_v31  ;;  %v3885_v31 = vor.u32 %v3897_v54, %v3882_v27 }
 0xc5d   :  { %v3365_v55 = vmul.f32 0.5, %v3364_v24 }
 0xc5e   :  { %v3378_v60 = vmul.f32 %v3374_v58, %v5193_v45  ;;  %3465 = vmatpush.bf16.msra.mxu1 %v3885_v31 }
 0xc5f   :  { %v3366_v11 = vsub.f32 1.5, %v3365_v55 }
 0xc60   :  { %v3382_v57 = vadd.f32 %v3378_v60, %v5214_v10 }
 0xc61   :  { %v3367_v22 = vmul.f32 %v4338_v5, %v3366_v11 }
 0xc62   :  { %3466 = vmatpush.bf16.msra.mxu1 %v3881_v9 }
 0xc63   :  { %v3371_v14 = vsel %vm3370_vm10, %v4338_v5, %v3367_v22  ;;  %vm3733_vm10 = vcmask 1040384  }
 0xc64   :  { %v3375_v30 = vmul.f32 %v3371_v14, %v5853_v44  ;;  %v3893_v44 = vld [vmem:[#allocation7 + $0x2c] sm:$0xf] }
 0xc65   :  { %v3877_v42 = vor.u32 %v3893_v44, %v3874_v21 }
 0xc66   :  { %v3379_v43 = vmul.f32 %v3375_v30, %v5193_v45 }
 0xc67   :  { %3467 = vmatpush.bf16.msra.mxu1 %v3877_v42 }
 0xc68   :  { %v3383_v56 = vadd.f32 %v3379_v43, %v5214_v10 }
 0xc6a   :  { %v3385_v35 = vpack.c.bf16 %v3383_v56, %v3382_v57 }
 0xc6b   :  { %3468 = vmatpush.bf16.msra.mxu1 %v3873_v37 }
 0xc6c   :  { %3869 = vmatmul.msk.bf16.gmra.mxu0 %vm114_vm0, %v3385_v35 }
 0xcc3   :  { %v3414_v10 = vpop.f32.mrf.mxu0 }
 0xcc4   :  { %v3415_v1 = vadd.f32 %v3414_v10, %v3386_v41 }
 0xcc6   :  { %v3424_v19 = vmax.f32 %v3415_v1, 0.0 }
 0xccb   :  { %v3416_v17 = vpop.f32.mrf.mxu0 }
 0xccc   :  { %v3417_v39 = vadd.f32 %v3416_v17, %v3386_v41 }
 0xcce   :  { %v3425_v2 = vmax.f32 %v3417_v39, 0.0 }
 0xcd0   :  { %v3428_v16 = vpack.c.bf16 %v3425_v2, %v3424_v19 }
 0xcd2   :  { %3886 = vmatmul.msk.bf16.vlgmr.msra.gmra.mxu1 %vm3454_vm11, %v3428_v16 }
 0xce9   :  { %v3419_v40 = vpop.f32.mrf.mxu0 }
 0xcea   :  { %v3420_v49 = vadd.f32 %v3419_v40, %v3386_v41 }
 0xcec   :  { %v3426_v36 = vmax.f32 %v3420_v49, 0.0 }
 0xcf1   :  { %v3421_v53 = vpop.f32.mrf.mxu0 }
 0xcf2   :  { %v3422_v12 = vadd.f32 %v3421_v53, %v3386_v41 }
 0xcf4   :  { %v3427_v6 = vmax.f32 %v3422_v12, 0.0 }
 0xcf6   :  { %v3429_v29 = vpack.c.bf16 %v3427_v6, %v3426_v36 }
 0xcf8   :  { %3887 = vmatmul.msk.bf16.gmra.mxu1 %vm3454_vm11, %v3429_v29 }
 0xd4f   :  { %v3470_v59 = vpop.f32.mrf.mxu1 }
 0xd50   :  { %v3471_v51 = vadd.f32 %v3470_v59, %v3452_v15 }
 0xd52   :  { %v3480_v0 = vadd.f32 %v3471_v51, %v5863_v62 }
 0xd54   :  { %v3484_v63 = vsel %vm114_vm0, %v3480_v0, 0.0 }
 0xd55   :  { %3485 = vadd.xlane.f32.xlu2 %v3484_v63 }
 0xd57   :  { %v3472_v33 = vpop.f32.mrf.mxu1 }
 0xd58   :  { %v3473_v50 = vadd.f32 %v3472_v33, %v3452_v15 }
 0xd5a   :  { %v3481_v3 = vadd.f32 %v3473_v50, %v5866_v47 }
 0xd5c   :  { %v3487_v20 = vsel %vm114_vm0, %v3481_v3, 0.0 }
 0xd5d   :  { %3488 = vadd.xlane.f32.xlu1 %v3487_v20 }
 0xd75   :  { %v3475_v41 = vpop.f32.mrf.mxu1 }
 0xd76   :  { %v3476_v32 = vadd.f32 %v3475_v41, %v3452_v15 }
 0xd78   :  { %v3482_v28 = vadd.f32 %v3476_v32, %v3382_v57 }
 0xd7a   :  { %v3490_v34 = vsel %vm114_vm0, %v3482_v28, 0.0 }
 0xd7b   :  { %3491 = vadd.xlane.f32.xlu2 %v3490_v34 }
 0xd7d   :  { %v3477_v23 = vpop.f32.mrf.mxu1 }
 0xd7e   :  { %v3478_v18 = vadd.f32 %v3477_v23, %v3452_v15 }
 0xd80   :  { %v3483_v13 = vadd.f32 %v3478_v18, %v3383_v56 }
 0xd82   :  { %v3493_v62 = vsel %vm114_vm0, %v3483_v13, 0.0 }
 0xd83   :  { %3494 = vadd.xlane.f32.xlu1 %v3493_v62 }
 0xd93   :  { %3579 = vrot.lane.b32.xlu2 %v5193_v45, %s4503_s23 }
 0xd9c   :  { %3572 = vrot.lane.b32.xlu1 %v5193_v45, %s4497_s17 }
 0xdc8   :  { %v3486_v47 = vpop.xlane.xlu2 %3485 }
 0xdc9   :  { %v3496_v7 = vmul.f32 %v3486_v47, %v5183_v26 }
 0xdcb   :  { %v3500_v38 = vsub.f32 %v3480_v0, %v3496_v7 }
 0xdcd   :  { %v3504_v5 = vmul.f32 %v3500_v38, %v3500_v38 }
 0xdcf   :  { %v3508_v8 = vsel %vm114_vm0, %v3504_v5, 0.0 }
 0xdd0   :  { %v3489_v25 = vpop.xlane.xlu1 %3488  ;;  %3509 = vadd.xlane.f32.xlu0 %v3508_v8 }
 0xdd1   :  { %v3497_v24 = vmul.f32 %v3489_v25, %v5183_v26 }
 0xdd3   :  { %v3501_v48 = vsub.f32 %v3481_v3, %v3497_v24 }
 0xdd5   :  { %v3505_v55 = vmul.f32 %v3501_v48, %v3501_v48 }
 0xdd7   :  { %v3511_v11 = vsel %vm114_vm0, %v3505_v55, 0.0 }
 0xdd8   :  { %3512 = vadd.xlane.f32.xlu2 %v3511_v11 }
 0xdee   :  { %v3492_v58 = vpop.xlane.xlu2 %3491 }
 0xdef   :  { %v3498_v22 = vmul.f32 %v3492_v58, %v5183_v26 }
 0xdf1   :  { %v5898_v45 = vsub.f32 %v3482_v28, %v3498_v22 }
 0xdf3   :  { %v3506_v14 = vmul.f32 %v5898_v45, %v5898_v45 }
 0xdf5   :  { %v3514_v30 = vsel %vm114_vm0, %v3506_v14, 0.0 }
 0xdf6   :  { %v3495_v60 = vpop.xlane.xlu1 %3494  ;;  %3515 = vadd.xlane.f32.xlu1 %v3514_v30  ;;  %v5909_v54 = vpop.permute.xlu2 %3579 }
 0xdf7   :  { %v3499_v43 = vmul.f32 %v3495_v60, %v5183_v26 }
 0xdf9   :  { %v5904_v57 = vsub.f32 %v3483_v13, %v3499_v43 }
 0xdfb   :  { %v3507_v56 = vmul.f32 %v5904_v57, %v5904_v57 }
 0xdfd   :  { %v3517_v35 = vsel %vm114_vm0, %v3507_v56, 0.0 }
 0xdfe   :  { %3518 = vadd.xlane.f32.xlu2 %v3517_v35 }
 0xe0e   :  { %v5913_v16 = vpop.permute.xlu1 %3572 }
 0xe43   :  { %v3510_v27 = vpop.xlane.xlu0 %3509 }
 0xe44   :  { %v3520_v31 = vmul.f32 %v3510_v27, %v5183_v26 }
 0xe46   :  { %v3524_v52 = vadd.f32 1e-05, %v3520_v31 }
 0xe48   :  { %4339 = vrsqrt.f32 %v3524_v52  ;;  %vm3534_vm13 = vweird.f32 %v3524_v52 }
 0xe4b   :  { %v3513_v61 = vpop.xlane.xlu2 %3512 }
 0xe4c   :  { %v3521_v9 = vmul.f32 %v3513_v61, %v5183_v26 }
 0xe4e   :  { %v4340_v44 = vpop.eup %4339  ;;  %v3525_v21 = vadd.f32 1e-05, %v3521_v9 }
 0xe4f   :  { %v3529_v42 = vmul.f32 %v4340_v44, %v3524_v52  ;;  %vm3535_vm12 = vweird.f32 %v4340_v44 }
 0xe50   :  { %4341 = vrsqrt.f32 %v3525_v21  ;;  %vm3536_vm1 = vmor %vm3534_vm13, %vm3535_vm12  ;;  %vm3544_vm3 = vweird.f32 %v3525_v21  ;;  %vm3737_vm12 = vcmask 1041408   ;;  %vm3735_vm13 = vcmask 1042434  }
 0xe51   :  { %v3530_v46 = vmul.f32 %v4340_v44, %v3529_v42 }
 0xe53   :  { %v3531_v4 = vmul.f32 0.5, %v3530_v46 }
 0xe55   :  { %v3532_v37 = vsub.f32 1.5, %v3531_v4 }
 0xe56   :  { %v4342_v10 = vpop.eup %4341 }
 0xe57   :  { %v3533_v1 = vmul.f32 %v4340_v44, %v3532_v37  ;;  %v3539_v17 = vmul.f32 %v4342_v10, %v3525_v21  ;;  %vm3545_vm2 = vweird.f32 %v4342_v10 }
 0xe58   :  { %vm3546_vm4 = vmor %vm3544_vm3, %vm3545_vm2 }
 0xe59   :  { %v3537_v39 = vsel %vm3536_vm1, %v4340_v44, %v3533_v1  ;;  %v3540_v19 = vmul.f32 %v4342_v10, %v3539_v17 }
 0xe5a   :  { %v3568_v2 = vmul.f32 %v3537_v39, %v3500_v38 }
 0xe5b   :  { %v3541_v40 = vmul.f32 0.5, %v3540_v19 }
 0xe5c   :  { %v3575_v49 = vmul.f32 %v5913_v16, %v3568_v2 }
 0xe5d   :  { %v3542_v53 = vsub.f32 1.5, %v3541_v40 }
 0xe5e   :  { %v5917_v12 = vadd.f32 %v5909_v54, %v3575_v49 }
 0xe5f   :  { %v3543_v36 = vmul.f32 %v4342_v10, %v3542_v53 }
 0xe60   :  { %v3632_v6 = vrot.slane %v5917_v12, 7  ;;  %v3624_v29 = vrot.slane %v5917_v12, 6  ;;  %v3616_v15 = vrot.slane %v5917_v12, 5  ;;  %v3596_v33 = vrot.slane %v5917_v12, 2 }
 0xe61   :  { %v3547_v59 = vsel %vm3546_vm4, %v4342_v10, %v3543_v36  ;;  %v3588_v50 = vrot.slane %v5917_v12, 1  ;;  %v3604_v1 = vrot.slane %v5917_v12, 3 }
 0xe62   :  { %v3569_v51 = vmul.f32 %v3547_v59, %v3501_v48  ;;  %3634 = vrot.lane.b32.xlu0 %v3632_v6, %s4496_s16  ;;  %3626 = vrot.lane.b32.xlu2 %v3624_v29, %s4497_s17 }
 0xe63   :  { %3618 = vrot.lane.b32.xlu1 %v3616_v15, %s4503_s23 }
 0xe64   :  { %v3576_v0 = vmul.f32 %v5913_v16, %v3569_v51 }
 0xe66   :  { %v5927_v63 = vadd.f32 %v5909_v54, %v3576_v0 }
 0xe68   :  { %v3678_v3 = vrot.slane %v5927_v63, 6  ;;  %v3670_v28 = vrot.slane %v5927_v63, 5  ;;  %v3642_v34 = vrot.slane %v5927_v63, 1  ;;  %v3658_v23 = vrot.slane %v5927_v63, 3 }
 0xe69   :  { %v3516_v20 = vpop.xlane.xlu1 %3515  ;;  %v3686_v5 = vrot.slane %v5927_v63, 7  ;;  %v3650_v8 = vrot.slane %v5927_v63, 2 }
 0xe6a   :  { %3598 = vrot.lane.b32.xlu0 %v3596_v33, %s4497_s17  ;;  %3590 = vrot.lane.b32.xlu2 %v3588_v50, %s4503_s23  ;;  %v3522_v41 = vmul.f32 %v3516_v20, %v5183_v26 }
 0xe6b   :  { %3680 = vrot.lane.b32.xlu1 %v3678_v3, %s4497_s17 }
 0xe6c   :  { %v3526_v32 = vadd.f32 1e-05, %v3522_v41 }
 0xe6e   :  { %4343 = vrsqrt.f32 %v3526_v32  ;;  %vm3554_vm6 = vweird.f32 %v3526_v32 }
 0xe71   :  { %v3519_v18 = vpop.xlane.xlu2 %3518 }
 0xe72   :  { %3672 = vrot.lane.b32.xlu2 %v3670_v28, %s4503_s23  ;;  %3644 = vrot.lane.b32.xlu0 %v3642_v34, %s4503_s23  ;;  %v3523_v13 = vmul.f32 %v3519_v18, %v5183_v26  ;;  %v3612_v34 = vrot.slane %v5917_v12, 4 }
 0xe73   :  { %3660 = vrot.lane.b32.xlu1 %v3658_v23, %s4496_s16 }
 0xe74   :  { %v4344_v62 = vpop.eup %4343  ;;  %v3527_v47 = vadd.f32 1e-05, %v3523_v13  ;;  %v3666_v13 = vrot.slane %v5927_v63, 4 }
 0xe75   :  { %v3549_v7 = vmul.f32 %v4344_v62, %v3526_v32  ;;  %vm3555_vm5 = vweird.f32 %v4344_v62 }
 0xe76   :  { %4345 = vrsqrt.f32 %v3527_v47  ;;  %vm3556_vm7 = vmor %vm3554_vm6, %vm3555_vm5  ;;  %vm3564_vm15 = vweird.f32 %v3527_v47 }
 0xe77   :  { %v3550_v38 = vmul.f32 %v4344_v62, %v3549_v7 }
 0xe79   :  { %v3551_v25 = vmul.f32 0.5, %v3550_v38 }
 0xe7a   :  { %3688 = vrot.lane.b32.xlu2 %v3686_v5, %s4496_s16  ;;  %3652 = vrot.lane.b32.xlu0 %v3650_v8, %s4497_s17 }
 0xe7b   :  { %v3552_v24 = vsub.f32 1.5, %v3551_v25 }
 0xe7c   :  { %v4346_v48 = vpop.eup %4345 }
 0xe7d   :  { %v3553_v26 = vmul.f32 %v4344_v62, %v3552_v24  ;;  %v3559_v55 = vmul.f32 %v4346_v48, %v3527_v47  ;;  %vm3565_vm14 = vweird.f32 %v4346_v48 }
 0xe7e   :  { %vm3566_vm8 = vmor %vm3564_vm15, %vm3565_vm14 }
 0xe7f   :  { %v3557_v11 = vsel %vm3556_vm7, %v4344_v62, %v3553_v26  ;;  %v3560_v58 = vmul.f32 %v4346_v48, %v3559_v55 }
 0xe80   :  { %v3570_v22 = vmul.f32 %v3557_v11, %v5898_v45  ;;  %v3744_v11 = vlaneseq }
 0xe81   :  { %v3561_v14 = vmul.f32 0.5, %v3560_v58 }
 0xe82   :  { %v3577_v30 = vmul.f32 %v5913_v16, %v3570_v22  ;;  %vm6001_vm1 = vcmp.lt.s32.totalorder %v3744_v11, 512 }
 0xe83   :  { %v3562_v60 = vsub.f32 1.5, %v3561_v14 }
 0xe84   :  { %v5950_v43 = vadd.f32 %v5909_v54, %v3577_v30 }
 0xe85   :  { %v3563_v56 = vmul.f32 %v4346_v48, %v3562_v60 }
 0xe86   :  { %v3617_v35 = vrot.slane %v5950_v43, 5  ;;  %v3625_v27 = vrot.slane %v5950_v43, 6  ;;  %v3633_v9 = vrot.slane %v5950_v43, 7  ;;  %v3589_v44 = vrot.slane %v5950_v43, 1 }
 0xe87   :  { %v3567_v31 = vsel %vm3566_vm8, %v4346_v48, %v3563_v56  ;;  %v3605_v37 = vrot.slane %v5950_v43, 3  ;;  %v3613_v32 = vrot.slane %v5950_v43, 4 }
 0xe88   :  { %v3571_v52 = vmul.f32 %v3567_v31, %v5904_v57  ;;  %3620 = vrot.lane.b32.xlu2 %v3617_v35, %s4503_s23  ;;  %3628 = vrot.lane.b32.xlu1 %v3625_v27, %s4497_s17 }
 0xe8a   :  { %v3578_v45 = vmul.f32 %v5913_v16, %v3571_v52 }
 0xe8c   :  { %v3585_v61 = vadd.f32 %v5909_v54, %v3578_v45  ;;  %v3597_v54 = vrot.slane %v5950_v43, 2 }
 0xe8e   :  { %v3679_v21 = vrot.slane %v3585_v61, 6  ;;  %v3651_v57 = vrot.slane %v3585_v61, 2  ;;  %v3643_v42 = vrot.slane %v3585_v61, 1  ;;  %v3659_v46 = vrot.slane %v3585_v61, 3 }
 0xe8f   :  { %v3671_v4 = vrot.slane %v3585_v61, 5  ;;  %v3687_v10 = vrot.slane %v3585_v61, 7  ;;  %v3667_v18 = vrot.slane %v3585_v61, 4 }
 0xe90   :  { %3636 = vrot.lane.b32.xlu2 %v3633_v9, %s4496_s16  ;;  %3592 = vrot.lane.b32.xlu1 %v3589_v44, %s4503_s23 }
 0xe91   :  { %3682 = vrot.lane.b32.xlu0 %v3679_v21, %s4497_s17 }
 0xe98   :  { %3654 = vrot.lane.b32.xlu2 %v3651_v57, %s4497_s17  ;;  %3646 = vrot.lane.b32.xlu1 %v3643_v42, %s4503_s23 }
 0xe99   :  { %3662 = vrot.lane.b32.xlu0 %v3659_v46, %s4496_s16 }
 0xea0   :  { %3600 = vrot.lane.b32.xlu2 %v3597_v54, %s4497_s17  ;;  %3674 = vrot.lane.b32.xlu1 %v3671_v4, %s4503_s23 }
 0xea1   :  { %3608 = vrot.lane.b32.xlu0 %v3605_v37, %s4496_s16 }
 0xea8   :  { %3690 = vrot.lane.b32.xlu1 %v3687_v10, %s4496_s16 }
 0xeb0   :  { %3606 = vrot.lane.b32.xlu1 %v3604_v1, %s4496_s16 }
 0xebc   :  { %v3627_v17 = vpop.permute.xlu2 %3626 }
 0xec4   :  { %v3591_v2 = vpop.permute.xlu2 %3590 }
 0xec5   :  { %v3694_v46 = vsel %vm114_vm0, %v5917_v12, %v3591_v2 }
 0xecc   :  { %v3673_v49 = vpop.permute.xlu2 %3672 }
 0xecd   :  { %v3713_v8 = vsel %vm114_vm0, %v3666_v13, %v3673_v49 }
 0xed4   :  { %v3635_v39 = vpop.permute.xlu0 %3634  ;;  %v3689_v6 = vpop.permute.xlu2 %3688 }
 0xed5   :  { %v3619_v19 = vpop.permute.xlu1 %3618 }
 0xed6   :  { %v3701_v7 = vsel %vm114_vm0, %v3612_v34, %v3619_v19 }
 0xed7   :  { %v3703_v58 = vsel %vm3454_vm11, %v3701_v7, %v3627_v17 }
 0xed8   :  { %v3705_v44 = vsel %vm3698_vm9, %v3703_v58, %v3635_v39 }
 0xed9   :  { %v3727_v54 = vrot.slane %v3705_v44, 7 }
 0xedc   :  { %v5975_v16 = vpop.permute.xlu0 %3598 }
 0xedd   :  { %v3681_v40 = vpop.permute.xlu1 %3680  ;;  %v3696_v4 = vsel %vm3454_vm11, %v3694_v46, %v5975_v16 }
 0xee2   :  { %v3621_v15 = vpop.permute.xlu2 %3620 }
 0xee3   :  { %v3702_v23 = vsel %vm114_vm0, %v3613_v32, %v3621_v15 }
 0xee4   :  { %v3645_v36 = vpop.permute.xlu0 %3644 }
 0xee5   :  { %v3661_v53 = vpop.permute.xlu1 %3660  ;;  %v3707_v24 = vsel %vm114_vm0, %v5927_v63, %v3645_v36 }
 0xeea   :  { %v3637_v33 = vpop.permute.xlu2 %3636 }
 0xeec   :  { %v3653_v59 = vpop.permute.xlu0 %3652 }
 0xeed   :  { %v3709_v22 = vsel %vm3454_vm11, %v3707_v24, %v3653_v59 }
 0xeee   :  { %v3711_v52 = vsel %vm3698_vm9, %v3709_v22, %v3661_v53 }
 0xeef   :  { %v3728_v42 = vrot.slane %v3711_v52, 6 }
 0xef2   :  { %v3655_v20 = vpop.permute.xlu2 %3654 }
 0xefa   :  { %v3629_v29 = vpop.permute.xlu1 %3628  ;;  %v3601_v26 = vpop.permute.xlu2 %3600 }
 0xefb   :  { %v3704_v62 = vsel %vm3454_vm11, %v3702_v23, %v3629_v29 }
 0xefc   :  { %v3706_v48 = vsel %vm3698_vm9, %v3704_v62, %v3637_v33 }
 0xefd   :  { %v3730_v35 = vrot.slane %v3706_v48, 7 }
 0xf02   :  { %v3593_v51 = vpop.permute.xlu1 %3592 }
 0xf03   :  { %v3683_v0 = vpop.permute.xlu0 %3682  ;;  %v3695_v38 = vsel %vm114_vm0, %v5950_v43, %v3593_v51  ;;  %v3715_v43 = vsel %vm3454_vm11, %v3713_v8, %v3681_v40 }
 0xf04   :  { %v3697_v14 = vsel %vm3454_vm11, %v3695_v38, %v3601_v26  ;;  %v3717_v21 = vsel %vm3698_vm9, %v3715_v43, %v3689_v6 }
 0xf05   :  { %v3729_v37 = vrot.slane %v3717_v21, 5 }
 0xf07   :  { %v3736_v39 = vsel %vm3735_vm13, %v3728_v42, %v3729_v37 }
 0xf0a   :  { %v3647_v50 = vpop.permute.xlu1 %3646 }
 0xf0b   :  { %v3663_v3 = vpop.permute.xlu0 %3662  ;;  %v3708_v28 = vsel %vm114_vm0, %v3585_v61, %v3647_v50 }
 0xf0c   :  { %v3710_v47 = vsel %vm3454_vm11, %v3708_v28, %v3655_v20 }
 0xf0d   :  { %v3712_v55 = vsel %vm3698_vm9, %v3710_v47, %v3663_v3 }
 0xf0e   :  { %v3731_v27 = vrot.slane %v3712_v55, 6 }
 0xf12   :  { %v3675_v41 = vpop.permute.xlu1 %3674 }
 0xf13   :  { %v3714_v5 = vsel %vm114_vm0, %v3667_v18, %v3675_v41  ;;  %v3609_v25 = vpop.permute.xlu0 %3608 }
 0xf14   :  { %v3716_v30 = vsel %vm3454_vm11, %v3714_v5, %v3683_v0  ;;  %v3700_v63 = vsel %vm3698_vm9, %v3697_v14, %v3609_v25 }
 0xf15   :  { %v3739_v61 = vsel %vm3733_vm10, %v3700_v63, %v3730_v35 }
 0xf1a   :  { %v3691_v60 = vpop.permute.xlu1 %3690 }
 0xf1b   :  { %v3718_v56 = vsel %vm3698_vm9, %v3716_v30, %v3691_v60 }
 0xf1c   :  { %v3732_v31 = vrot.slane %v3718_v56, 5 }
 0xf1e   :  { %v3740_v9 = vsel %vm3735_vm13, %v3731_v27, %v3732_v31 }
 0xf1f   :  { %v3741_v57 = vsel %vm3737_vm12, %v3739_v61, %v3740_v9 }
 0xf20   :  { %3749 = vst.msk [vmem:[#allocation10 + $0x4] sm:$0xf] %vm6001_vm1, %v3741_v57 }
 0xf22   :  { %v3607_v10 = vpop.permute.xlu1 %3606 }
 0xf23   :  { %v3699_v1 = vsel %vm3698_vm9, %v3696_v4, %v3607_v10 }
 0xf24   :  { %v3734_v17 = vsel %vm3733_vm10, %v3699_v1, %v3727_v54 }
 0xf25   :  { %v3738_v12 = vsel %vm3737_vm12, %v3734_v17, %v3736_v39 }
 0xf26   :  { %3748 = vst.msk [vmem:[#allocation10] sm:$0xf] %vm6001_vm1, %v3738_v12 }
 0xf27   :  { %3762 = dma.vmem_to_hbm [thread:$0]  %s3755_s25, 128, %s3757_s28, [#allocation4], %s4497_s17, %s4497_s17, %s4499_s19  }
 0xf28   :  { %4479 = dma.done.wait [#allocation4], 128  }
 0xf29   :  { %4480 = vsyncadd [#allocation4], 4294967168 }
 0xf2a   :  { %3767 = vsyncpa [#allocation3], 1 }
 0xf2b   :  { %3768 = vsyncpa [#allocation6], 1 }
 0xf2c   :  { %3769 = vsyncpa [#allocation9], 1 }
 0xf2d   :  { %3770 = vsyncpa [#allocation4], 1 }

</bundles_post_ra>
